<compile_context>
chip_gen: v6e
topology: v6e:2x2x1
jax: 0.10.0
libtpu: 0.0.40
codegen_flags: <defaults>
</compile_context>

<pallas_src>
import functools

import jax
import jax.numpy as jnp
from jax import lax
from jax.experimental import pallas as pl
from jax.experimental.pallas import tpu as pltpu

EPS = 1e-5          # nn.InstanceNorm3d default eps
NEG_SLOPE = 0.01    # nn.LeakyReLU default negative_slope
VMEM_LIMIT = 48 * 1024 * 1024


def _ceil_to(x, m):
    return (x + m - 1) // m * m


# ---------------- Stage 1: InstanceNorm3d + LeakyReLU (row-tiled) ----------------

def _inorm_lrelu_kernel(x_ref, g_ref, b_ref, o_ref, *, inv_n):
    x = x_ref[...].astype(jnp.float32)                    # (R, DHW)
    s1 = jnp.sum(x, axis=1, keepdims=True)
    s2 = jnp.sum(x * x, axis=1, keepdims=True)
    mean = s1 * inv_n
    var = jnp.maximum(s2 * inv_n - mean * mean, 0.0)      # single-pass variance
    g = g_ref[:, 0:1]                                     # lane-dense (R,128) -> (R,1)
    b = b_ref[:, 0:1]
    scale = g * lax.rsqrt(var + EPS)
    shift = b - mean * scale
    y = x * scale + shift
    o_ref[...] = jnp.where(y >= 0, y, NEG_SLOPE * y).astype(o_ref.dtype)


def instance_norm_leaky_relu(x, gamma, beta):
    """x: (N, C, D, H, W) f32 -> bf16 normalized + LeakyReLU'd activation."""
    n, c, d, h, w = x.shape
    nc, dhw = n * c, d * h * w

    # rows per block: keep (f32 in + bf16 out), double-buffered, around <=24 MiB
    row_bytes = dhw * (4 + 2) * 2
    r = max(8, ((24 * 1024 * 1024) // row_bytes) // 8 * 8)
    r = min(r, _ceil_to(nc, 8))
    nc_pad = _ceil_to(nc, r)

    x2 = x.reshape(nc, dhw)
    if nc_pad != nc:
        x2 = jnp.pad(x2, ((0, nc_pad - nc), (0, 0)))
    g_rows = jnp.pad(jnp.tile(gamma.astype(jnp.float32), n), (0, nc_pad - nc))
    b_rows = jnp.pad(jnp.tile(beta.astype(jnp.float32), n), (0, nc_pad - nc))
    g2 = jnp.broadcast_to(g_rows[:, None], (nc_pad, 128))
    b2 = jnp.broadcast_to(b_rows[:, None], (nc_pad, 128))

    out = pl.pallas_call(
        functools.partial(_inorm_lrelu_kernel, inv_n=1.0 / dhw),
        out_shape=jax.ShapeDtypeStruct((nc_pad, dhw), jnp.bfloat16),
        grid=(nc_pad // r,),
        in_specs=[
            pl.BlockSpec((r, dhw), lambda i: (i, 0)),
            pl.BlockSpec((r, 128), lambda i: (i, 0)),
            pl.BlockSpec((r, 128), lambda i: (i, 0)),
        ],
        out_specs=pl.BlockSpec((r, dhw), lambda i: (i, 0)),
        compiler_params=pltpu.CompilerParams(
            dimension_semantics=("parallel",),
            vmem_limit_bytes=VMEM_LIMIT),
    )(x2, g2, b2)
    return out[:nc].reshape(n, c, d, h, w)


# ---------------- Stage 2: Conv3d(k=3, pad=1, stride=2), fused in-kernel im2col ----------------

def _conv_kernel(sa_ref, sb_ref, sc_ref, w_ref, o_ref, *, oh, ow, c, k_pad, o_pad):
    # slab refs: (1, 1, 4, OH1, OW1, C); the 4-dim is (ph, pw) parities for one pd.
    # (pd, dd) -> slab holding ypad depth parity pd at output depth od+dd.
    refs = {(0, 0): sa_ref, (1, 0): sb_ref, (0, 1): sc_ref}
    cols = []
    for kd in range(3):
        sref = refs[(kd % 2, kd // 2)]
        for kh in range(3):
            ph, dh = kh % 2, kh // 2
            for kw in range(3):
                pw, dw = kw % 2, kw // 2
                cols.append(sref[0, 0, ph * 2 + pw, dh:dh + oh, dw:dw + ow, :])
    # spare (zero-pad) K columns are set to 1.0; row 27*C of w holds the bias.
    cols.append(jnp.ones((oh, ow, k_pad - 27 * c), dtype=sa_ref.dtype))
    a = jnp.concatenate(cols, axis=-1).reshape(oh * ow, k_pad)       # (M_tile, K_pad) bf16
    acc = jnp.dot(a, w_ref[...], preferred_element_type=jnp.float32)  # MXU, f32 acc
    o_ref[...] = acc.reshape(1, 1, oh * ow, o_pad).astype(o_ref.dtype)


def conv3d_s2_k3(y, weight, bias):
    """y: (N,C,D,H,W) bf16; weight: (O,C,3,3,3); bias: (O,).
    Matches nn.Conv3d(C, O, kernel_size=3, padding=1, stride=2); output f32 NCDHW."""
    n, c, d, h, w = y.shape
    o = weight.shape[0]
    od, oh, ow = (d - 1) // 2 + 1, (h - 1) // 2 + 1, (w - 1) // 2 + 1
    od1, oh1, ow1 = od + 1, oh + 1, ow + 1

    # zero-pad (left 1, right up to the even parity extent) and space-to-depth so
    # every stride-2 conv tap becomes a unit-stride window of a (parity, ...) slab.
    yp = jnp.pad(y, ((0, 0), (0, 0),
                     (1, 2 * od1 - d - 1), (1, 2 * oh1 - h - 1), (1, 2 * ow1 - w - 1)))
    s = yp.reshape(n, c, od1, 2, oh1, 2, ow1, 2)
    s = s.transpose(0, 2, 3, 5, 7, 4, 6, 1)            # (N, OD1, pd, ph, pw, OH1, OW1, C)
    s = s.reshape(n, od1, 8, oh1, ow1, c)              # merge (pd, ph, pw) -> 8

    k = 27 * c
    k_pad = _ceil_to(k + 1, 128)                       # K padded to 128, +1 row for bias
    o_pad = _ceil_to(o, 128)                           # lane-dense output
    wmat = weight.astype(jnp.float32).transpose(2, 3, 4, 1, 0).reshape(k, o)
    wfull = jnp.zeros((k_pad, o_pad), jnp.float32)
    wfull = wfull.at[:k, :o].set(wmat)
    wfull = wfull.at[k, :o].set(bias.astype(jnp.float32))   # bias folded into matmul
    wfull = wfull.astype(jnp.bfloat16)

    slab_block = (1, 1, 4, oh1, ow1, c)
    kern = functools.partial(_conv_kernel, oh=oh, ow=ow, c=c, k_pad=k_pad, o_pad=o_pad)
    out = pl.pallas_call(
        kern,
        out_shape=jax.ShapeDtypeStruct((n, od, oh * ow, o_pad), jnp.float32),
        grid=(n, od),
        in_specs=[
            pl.BlockSpec(slab_block, lambda i, j: (i, j, 0, 0, 0, 0)),      # pd=0, od
            pl.BlockSpec(slab_block, lambda i, j: (i, j, 1, 0, 0, 0)),      # pd=1, od
            pl.BlockSpec(slab_block, lambda i, j: (i, j + 1, 0, 0, 0, 0)),  # pd=0, od+1
            pl.BlockSpec((k_pad, o_pad), lambda i, j: (0, 0)),              # resident weights
        ],
        out_specs=pl.BlockSpec((1, 1, oh * ow, o_pad), lambda i, j: (i, j, 0, 0)),
        compiler_params=pltpu.CompilerParams(
            dimension_semantics=("parallel", "parallel"),
            vmem_limit_bytes=VMEM_LIMIT),
    )(s, s, s, wfull)

    out = out[:, :, :, :o].reshape(n, od, oh, ow, o)
    return out.transpose(0, 4, 1, 2, 3)                # back to NCDHW


def downsample_forward(x, params):
    y = instance_norm_leaky_relu(x, params["gamma"], params["beta"])
    return conv3d_s2_k3(y, params["weight"], params["bias"])


# ---------------- Pure-JAX reference (correctness check only) ----------------

def downsample_ref(x, params):
    c = x.shape[1]
    mean = jnp.mean(x, axis=(2, 3, 4), keepdims=True)
    var = jnp.mean(jnp.square(x - mean), axis=(2, 3, 4), keepdims=True)
    y = (x - mean) * lax.rsqrt(var + EPS)
    y = y * params["gamma"].reshape(1, c, 1, 1, 1) + params["beta"].reshape(1, c, 1, 1, 1)
    y = jnp.where(y >= 0, y, NEG_SLOPE * y)
    out = lax.conv_general_dilated(
        y, params["weight"], window_strides=(2, 2, 2),
        padding=((1, 1), (1, 1), (1, 1)),
        dimension_numbers=("NCDHW", "OIDHW", "NCDHW"))
    return out + params["bias"].reshape(1, -1, 1, 1, 1)


if __name__ == "__main__":
    key = jax.random.PRNGKey(0)
    kx, kw = jax.random.split(key)
    N, C, D, H, W, O = 2, 4, 16, 16, 16, 8
    x = jax.random.normal(kx, (N, C, D, H, W), dtype=jnp.float32)
    params = {
        "gamma": 1.0 + 0.1 * jnp.arange(C, dtype=jnp.float32),
        "beta": 0.05 * jnp.arange(C, dtype=jnp.float32),
        "weight": 0.1 * jax.random.normal(kw, (O, C, 3, 3, 3), dtype=jnp.float32),
        "bias": 0.01 * jnp.arange(O, dtype=jnp.float32),
    }

    out = jax.jit(downsample_forward)(x, params)
    out = jax.block_until_ready(out)

    OD, OH, OW = (D - 1) // 2 + 1, (H - 1) // 2 + 1, (W - 1) // 2 + 1
    assert out.shape == (N, O, OD, OH, OW), out.shape
    ref = downsample_ref(x, params)
    err = float(jnp.max(jnp.abs(out - ref)))
    # bf16 activation + weight feed into the MXU (f32 accumulate) -> bf16-level tolerance.
    assert jnp.allclose(out, ref, rtol=2e-2, atol=2e-2), err
    print("KERNEL_OK")
</pallas_src>

<mosaic_0001>
module attributes {stable_mosaic.version = 11 : i64} {
  func.func @_inorm_lrelu_kernel(%arg0: i32, %arg1: memref<8x4096xf32, #tpu.memory_space<vmem>>, %arg2: memref<8x128xf32, #tpu.memory_space<vmem>>, %arg3: memref<8x128xf32, #tpu.memory_space<vmem>>, %arg4: memref<8x4096xbf16, #tpu.memory_space<vmem>>) attributes {dimension_semantics = [#tpu.dimension_semantics<parallel>], iteration_bounds = array<i64: 1>, scalar_prefetch = 0 : i64, scratch_operands = 0 : i64, tpu.core_type = #tpu.core_type<tc>, window_params = [{transform_indices = @transform_0, window_bounds = array<i64: 8, 4096>}, {transform_indices = @transform_1, window_bounds = array<i64: 8, 128>}, {transform_indices = @transform_2, window_bounds = array<i64: 8, 128>}, {transform_indices = @transform_3, window_bounds = array<i64: 8, 4096>}]} {
    %c0 = arith.constant 0 : index
    %c0_0 = arith.constant 0 : index
    %0 = vector.load %arg1[%c0, %c0_0] : memref<8x4096xf32, #tpu.memory_space<vmem>>, vector<8x4096xf32>
    %cst = arith.constant dense<0.000000e+00> : vector<8xf32>
    %1 = vector.multi_reduction <add>, %0, %cst [1] : vector<8x4096xf32> to vector<8xf32>
    %2 = vector.shape_cast %1 : vector<8xf32> to vector<8x1xf32>
    %3 = arith.mulf %0, %0 : vector<8x4096xf32>
    %cst_1 = arith.constant dense<0.000000e+00> : vector<8xf32>
    %4 = vector.multi_reduction <add>, %3, %cst_1 [1] : vector<8x4096xf32> to vector<8xf32>
    %5 = vector.shape_cast %4 : vector<8xf32> to vector<8x1xf32>
    %cst_2 = arith.constant 2.44140625E-4 : f32
    %6 = vector.broadcast %cst_2 : f32 to vector<8x1xf32>
    %7 = arith.mulf %2, %6 : vector<8x1xf32>
    %cst_3 = arith.constant 2.44140625E-4 : f32
    %8 = vector.broadcast %cst_3 : f32 to vector<8x1xf32>
    %9 = arith.mulf %5, %8 : vector<8x1xf32>
    %10 = arith.mulf %7, %7 : vector<8x1xf32>
    %11 = arith.subf %9, %10 : vector<8x1xf32>
    %cst_4 = arith.constant 0.000000e+00 : f32
    %12 = vector.broadcast %cst_4 : f32 to vector<8x1xf32>
    %13 = arith.maximumf %11, %12 : vector<8x1xf32>
    %c0_5 = arith.constant 0 : index
    %c0_6 = arith.constant 0 : index
    %14 = vector.load %arg2[%c0_5, %c0_6] : memref<8x128xf32, #tpu.memory_space<vmem>>, vector<8x1xf32>
    %c0_7 = arith.constant 0 : index
    %c0_8 = arith.constant 0 : index
    %15 = vector.load %arg3[%c0_7, %c0_8] : memref<8x128xf32, #tpu.memory_space<vmem>>, vector<8x1xf32>
    %cst_9 = arith.constant 9.99999974E-6 : f32
    %16 = vector.broadcast %cst_9 : f32 to vector<8x1xf32>
    %17 = arith.addf %13, %16 : vector<8x1xf32>
    %18 = math.rsqrt %17 : vector<8x1xf32>
    %19 = arith.mulf %14, %18 : vector<8x1xf32>
    %20 = arith.mulf %7, %19 : vector<8x1xf32>
    %21 = arith.subf %15, %20 : vector<8x1xf32>
    %22 = vector.broadcast %19 : vector<8x1xf32> to vector<8x4096xf32>
    %23 = arith.mulf %0, %22 : vector<8x4096xf32>
    %24 = vector.broadcast %21 : vector<8x1xf32> to vector<8x4096xf32>
    %25 = arith.addf %23, %24 : vector<8x4096xf32>
    %cst_10 = arith.constant 0.000000e+00 : f32
    %26 = vector.broadcast %cst_10 : f32 to vector<8x4096xf32>
    %27 = arith.cmpf oge, %25, %26 : vector<8x4096xf32>
    %cst_11 = arith.constant 0.00999999977 : f32
    %28 = vector.broadcast %cst_11 : f32 to vector<8x4096xf32>
    %29 = arith.mulf %28, %25 : vector<8x4096xf32>
    %30 = arith.select %27, %25, %29 : vector<8x4096xi1>, vector<8x4096xf32>
    %31 = arith.truncf %30 : vector<8x4096xf32> to vector<8x4096xbf16>
    %c0_12 = arith.constant 0 : index
    %c0_13 = arith.constant 0 : index
    %32 = vector.load %arg4[%c0_12, %c0_13] : memref<8x4096xbf16, #tpu.memory_space<vmem>>, vector<8x4096xbf16>
    tpu.vector_store %arg4[%c0_12, %c0_13], %31 {strides = array<i32>} : memref<8x4096xbf16, #tpu.memory_space<vmem>>, vector<8x4096xbf16>,
    return
  }
  func.func @transform_0(%arg0: i32) -> (i32, i32) {
    %c0_i32 = arith.constant 0 : i32
    %c0_i32_0 = arith.constant 0 : i32
    return %arg0, %c0_i32 : i32, i32
  }
  func.func @transform_1(%arg0: i32) -> (i32, i32) {
    %c0_i32 = arith.constant 0 : i32
    %c0_i32_0 = arith.constant 0 : i32
    return %arg0, %c0_i32 : i32, i32
  }
  func.func @transform_2(%arg0: i32) -> (i32, i32) {
    %c0_i32 = arith.constant 0 : i32
    %c0_i32_0 = arith.constant 0 : i32
    return %arg0, %c0_i32 : i32, i32
  }
  func.func @transform_3(%arg0: i32) -> (i32, i32) {
    %c0_i32 = arith.constant 0 : i32
    %c0_i32_0 = arith.constant 0 : i32
    return %arg0, %c0_i32 : i32, i32
  }
}

module attributes {stable_mosaic.version = 11 : i64} {
  func.func @_conv_kernel(%arg0: i32, %arg1: i32, %arg2: memref<1x1x4x9x9x4xbf16, #tpu.memory_space<vmem>>, %arg3: memref<1x1x4x9x9x4xbf16, #tpu.memory_space<vmem>>, %arg4: memref<1x1x4x9x9x4xbf16, #tpu.memory_space<vmem>>, %arg5: memref<128x128xbf16, #tpu.memory_space<vmem>>, %arg6: memref<1x1x64x128xf32, #tpu.memory_space<vmem>>) attributes {dimension_semantics = [#tpu.dimension_semantics<parallel>, #tpu.dimension_semantics<parallel>], iteration_bounds = array<i64: 2, 8>, scalar_prefetch = 0 : i64, scratch_operands = 0 : i64, tpu.core_type = #tpu.core_type<tc>, window_params = [{transform_indices = @transform_0, window_bounds = array<i64: 1, 1, 4, 9, 9, 4>}, {transform_indices = @transform_1, window_bounds = array<i64: 1, 1, 4, 9, 9, 4>}, {transform_indices = @transform_2, window_bounds = array<i64: 1, 1, 4, 9, 9, 4>}, {pipeline_mode = #tpu.pipeline_mode<synchronous>, transform_indices = @transform_3, window_bounds = array<i64: 128, 128>}, {transform_indices = @transform_4, window_bounds = array<i64: 1, 1, 64, 128>}]} {
    %c0 = arith.constant 0 : index
    %c0_0 = arith.constant 0 : index
    %c0_1 = arith.constant 0 : index
    %c0_2 = arith.constant 0 : index
    %c0_3 = arith.constant 0 : index
    %c0_4 = arith.constant 0 : index
    %0 = vector.load %arg2[%c0, %c0_0, %c0_1, %c0_2, %c0_3, %c0_4] : memref<1x1x4x9x9x4xbf16, #tpu.memory_space<vmem>>, vector<1x1x1x8x8x4xbf16>
    %1 = vector.shape_cast %0 : vector<1x1x1x8x8x4xbf16> to vector<8x8x4xbf16>
    %c0_5 = arith.constant 0 : index
    %c0_6 = arith.constant 0 : index
    %c1 = arith.constant 1 : index
    %c0_7 = arith.constant 0 : index
    %c0_8 = arith.constant 0 : index
    %c0_9 = arith.constant 0 : index
    %2 = vector.load %arg2[%c0_5, %c0_6, %c1, %c0_7, %c0_8, %c0_9] : memref<1x1x4x9x9x4xbf16, #tpu.memory_space<vmem>>, vector<1x1x1x8x8x4xbf16>
    %3 = vector.shape_cast %2 : vector<1x1x1x8x8x4xbf16> to vector<8x8x4xbf16>
    %c0_10 = arith.constant 0 : index
    %c0_11 = arith.constant 0 : index
    %c0_12 = arith.constant 0 : index
    %c0_13 = arith.constant 0 : index
    %c1_14 = arith.constant 1 : index
    %c0_15 = arith.constant 0 : index
    %4 = vector.load %arg2[%c0_10, %c0_11, %c0_12, %c0_13, %c1_14, %c0_15] : memref<1x1x4x9x9x4xbf16, #tpu.memory_space<vmem>>, vector<1x1x1x8x8x4xbf16>
    %5 = vector.shape_cast %4 : vector<1x1x1x8x8x4xbf16> to vector<8x8x4xbf16>
    %c0_16 = arith.constant 0 : index
    %c0_17 = arith.constant 0 : index
    %c2 = arith.constant 2 : index
    %c0_18 = arith.constant 0 : index
    %c0_19 = arith.constant 0 : index
    %c0_20 = arith.constant 0 : index
    %6 = vector.load %arg2[%c0_16, %c0_17, %c2, %c0_18, %c0_19, %c0_20] : memref<1x1x4x9x9x4xbf16, #tpu.memory_space<vmem>>, vector<1x1x1x8x8x4xbf16>
    %7 = vector.shape_cast %6 : vector<1x1x1x8x8x4xbf16> to vector<8x8x4xbf16>
    %c0_21 = arith.constant 0 : index
    %c0_22 = arith.constant 0 : index
    %c3 = arith.constant 3 : index
    %c0_23 = arith.constant 0 : index
    %c0_24 = arith.constant 0 : index
    %c0_25 = arith.constant 0 : index
    %8 = vector.load %arg2[%c0_21, %c0_22, %c3, %c0_23, %c0_24, %c0_25] : memref<1x1x4x9x9x4xbf16, #tpu.memory_space<vmem>>, vector<1x1x1x8x8x4xbf16>
    %9 = vector.shape_cast %8 : vector<1x1x1x8x8x4xbf16> to vector<8x8x4xbf16>
    %c0_26 = arith.constant 0 : index
    %c0_27 = arith.constant 0 : index
    %c2_28 = arith.constant 2 : index
    %c0_29 = arith.constant 0 : index
    %c1_30 = arith.constant 1 : index
    %c0_31 = arith.constant 0 : index
    %10 = vector.load %arg2[%c0_26, %c0_27, %c2_28, %c0_29, %c1_30, %c0_31] : memref<1x1x4x9x9x4xbf16, #tpu.memory_space<vmem>>, vector<1x1x1x8x8x4xbf16>
    %11 = vector.shape_cast %10 : vector<1x1x1x8x8x4xbf16> to vector<8x8x4xbf16>
    %c0_32 = arith.constant 0 : index
    %c0_33 = arith.constant 0 : index
    %c0_34 = arith.constant 0 : index
    %c1_35 = arith.constant 1 : index
    %c0_36 = arith.constant 0 : index
    %c0_37 = arith.constant 0 : index
    %12 = vector.load %arg2[%c0_32, %c0_33, %c0_34, %c1_35, %c0_36, %c0_37] : memref<1x1x4x9x9x4xbf16, #tpu.memory_space<vmem>>, vector<1x1x1x8x8x4xbf16>
    %13 = vector.shape_cast %12 : vector<1x1x1x8x8x4xbf16> to vector<8x8x4xbf16>
    %c0_38 = arith.constant 0 : index
    %c0_39 = arith.constant 0 : index
    %c1_40 = arith.constant 1 : index
    %c1_41 = arith.constant 1 : index
    %c0_42 = arith.constant 0 : index
    %c0_43 = arith.constant 0 : index
    %14 = vector.load %arg2[%c0_38, %c0_39, %c1_40, %c1_41, %c0_42, %c0_43] : memref<1x1x4x9x9x4xbf16, #tpu.memory_space<vmem>>, vector<1x1x1x8x8x4xbf16>
    %15 = vector.shape_cast %14 : vector<1x1x1x8x8x4xbf16> to vector<8x8x4xbf16>
    %c0_44 = arith.constant 0 : index
    %c0_45 = arith.constant 0 : index
    %c0_46 = arith.constant 0 : index
    %c1_47 = arith.constant 1 : index
    %c1_48 = arith.constant 1 : index
    %c0_49 = arith.constant 0 : index
    %16 = vector.load %arg2[%c0_44, %c0_45, %c0_46, %c1_47, %c1_48, %c0_49] : memref<1x1x4x9x9x4xbf16, #tpu.memory_space<vmem>>, vector<1x1x1x8x8x4xbf16>
    %17 = vector.shape_cast %16 : vector<1x1x1x8x8x4xbf16> to vector<8x8x4xbf16>
    %c0_50 = arith.constant 0 : index
    %c0_51 = arith.constant 0 : index
    %c0_52 = arith.constant 0 : index
    %c0_53 = arith.constant 0 : index
    %c0_54 = arith.constant 0 : index
    %c0_55 = arith.constant 0 : index
    %18 = vector.load %arg3[%c0_50, %c0_51, %c0_52, %c0_53, %c0_54, %c0_55] : memref<1x1x4x9x9x4xbf16, #tpu.memory_space<vmem>>, vector<1x1x1x8x8x4xbf16>
    %19 = vector.shape_cast %18 : vector<1x1x1x8x8x4xbf16> to vector<8x8x4xbf16>
    %c0_56 = arith.constant 0 : index
    %c0_57 = arith.constant 0 : index
    %c1_58 = arith.constant 1 : index
    %c0_59 = arith.constant 0 : index
    %c0_60 = arith.constant 0 : index
    %c0_61 = arith.constant 0 : index
    %20 = vector.load %arg3[%c0_56, %c0_57, %c1_58, %c0_59, %c0_60, %c0_61] : memref<1x1x4x9x9x4xbf16, #tpu.memory_space<vmem>>, vector<1x1x1x8x8x4xbf16>
    %21 = vector.shape_cast %20 : vector<1x1x1x8x8x4xbf16> to vector<8x8x4xbf16>
    %c0_62 = arith.constant 0 : index
    %c0_63 = arith.constant 0 : index
    %c0_64 = arith.constant 0 : index
    %c0_65 = arith.constant 0 : index
    %c1_66 = arith.constant 1 : index
    %c0_67 = arith.constant 0 : index
    %22 = vector.load %arg3[%c0_62, %c0_63, %c0_64, %c0_65, %c1_66, %c0_67] : memref<1x1x4x9x9x4xbf16, #tpu.memory_space<vmem>>, vector<1x1x1x8x8x4xbf16>
    %23 = vector.shape_cast %22 : vector<1x1x1x8x8x4xbf16> to vector<8x8x4xbf16>
    %c0_68 = arith.constant 0 : index
    %c0_69 = arith.constant 0 : index
    %c2_70 = arith.constant 2 : index
    %c0_71 = arith.constant 0 : index
    %c0_72 = arith.constant 0 : index
    %c0_73 = arith.constant 0 : index
    %24 = vector.load %arg3[%c0_68, %c0_69, %c2_70, %c0_71, %c0_72, %c0_73] : memref<1x1x4x9x9x4xbf16, #tpu.memory_space<vmem>>, vector<1x1x1x8x8x4xbf16>
    %25 = vector.shape_cast %24 : vector<1x1x1x8x8x4xbf16> to vector<8x8x4xbf16>
    %c0_74 = arith.constant 0 : index
    %c0_75 = arith.constant 0 : index
    %c3_76 = arith.constant 3 : index
    %c0_77 = arith.constant 0 : index
    %c0_78 = arith.constant 0 : index
    %c0_79 = arith.constant 0 : index
    %26 = vector.load %arg3[%c0_74, %c0_75, %c3_76, %c0_77, %c0_78, %c0_79] : memref<1x1x4x9x9x4xbf16, #tpu.memory_space<vmem>>, vector<1x1x1x8x8x4xbf16>
    %27 = vector.shape_cast %26 : vector<1x1x1x8x8x4xbf16> to vector<8x8x4xbf16>
    %c0_80 = arith.constant 0 : index
    %c0_81 = arith.constant 0 : index
    %c2_82 = arith.constant 2 : index
    %c0_83 = arith.constant 0 : index
    %c1_84 = arith.constant 1 : index
    %c0_85 = arith.constant 0 : index
    %28 = vector.load %arg3[%c0_80, %c0_81, %c2_82, %c0_83, %c1_84, %c0_85] : memref<1x1x4x9x9x4xbf16, #tpu.memory_space<vmem>>, vector<1x1x1x8x8x4xbf16>
    %29 = vector.shape_cast %28 : vector<1x1x1x8x8x4xbf16> to vector<8x8x4xbf16>
    %c0_86 = arith.constant 0 : index
    %c0_87 = arith.constant 0 : index
    %c0_88 = arith.constant 0 : index
    %c1_89 = arith.constant 1 : index
    %c0_90 = arith.constant 0 : index
    %c0_91 = arith.constant 0 : index
    %30 = vector.load %arg3[%c0_86, %c0_87, %c0_88, %c1_89, %c0_90, %c0_91] : memref<1x1x4x9x9x4xbf16, #tpu.memory_space<vmem>>, vector<1x1x1x8x8x4xbf16>
    %31 = vector.shape_cast %30 : vector<1x1x1x8x8x4xbf16> to vector<8x8x4xbf16>
    %c0_92 = arith.constant 0 : index
    %c0_93 = arith.constant 0 : index
    %c1_94 = arith.constant 1 : index
    %c1_95 = arith.constant 1 : index
    %c0_96 = arith.constant 0 : index
    %c0_97 = arith.constant 0 : index
    %32 = vector.load %arg3[%c0_92, %c0_93, %c1_94, %c1_95, %c0_96, %c0_97] : memref<1x1x4x9x9x4xbf16, #tpu.memory_space<vmem>>, vector<1x1x1x8x8x4xbf16>
    %33 = vector.shape_cast %32 : vector<1x1x1x8x8x4xbf16> to vector<8x8x4xbf16>
    %c0_98 = arith.constant 0 : index
    %c0_99 = arith.constant 0 : index
    %c0_100 = arith.constant 0 : index
    %c1_101 = arith.constant 1 : index
    %c1_102 = arith.constant 1 : index
    %c0_103 = arith.constant 0 : index
    %34 = vector.load %arg3[%c0_98, %c0_99, %c0_100, %c1_101, %c1_102, %c0_103] : memref<1x1x4x9x9x4xbf16, #tpu.memory_space<vmem>>, vector<1x1x1x8x8x4xbf16>
    %35 = vector.shape_cast %34 : vector<1x1x1x8x8x4xbf16> to vector<8x8x4xbf16>
    %c0_104 = arith.constant 0 : index
    %c0_105 = arith.constant 0 : index
    %c0_106 = arith.constant 0 : index
    %c0_107 = arith.constant 0 : index
    %c0_108 = arith.constant 0 : index
    %c0_109 = arith.constant 0 : index
    %36 = vector.load %arg4[%c0_104, %c0_105, %c0_106, %c0_107, %c0_108, %c0_109] : memref<1x1x4x9x9x4xbf16, #tpu.memory_space<vmem>>, vector<1x1x1x8x8x4xbf16>
    %37 = vector.shape_cast %36 : vector<1x1x1x8x8x4xbf16> to vector<8x8x4xbf16>
    %c0_110 = arith.constant 0 : index
    %c0_111 = arith.constant 0 : index
    %c1_112 = arith.constant 1 : index
    %c0_113 = arith.constant 0 : index
    %c0_114 = arith.constant 0 : index
    %c0_115 = arith.constant 0 : index
    %38 = vector.load %arg4[%c0_110, %c0_111, %c1_112, %c0_113, %c0_114, %c0_115] : memref<1x1x4x9x9x4xbf16, #tpu.memory_space<vmem>>, vector<1x1x1x8x8x4xbf16>
    %39 = vector.shape_cast %38 : vector<1x1x1x8x8x4xbf16> to vector<8x8x4xbf16>
    %c0_116 = arith.constant 0 : index
    %c0_117 = arith.constant 0 : index
    %c0_118 = arith.constant 0 : index
    %c0_119 = arith.constant 0 : index
    %c1_120 = arith.constant 1 : index
    %c0_121 = arith.constant 0 : index
    %40 = vector.load %arg4[%c0_116, %c0_117, %c0_118, %c0_119, %c1_120, %c0_121] : memref<1x1x4x9x9x4xbf16, #tpu.memory_space<vmem>>, vector<1x1x1x8x8x4xbf16>
    %41 = vector.shape_cast %40 : vector<1x1x1x8x8x4xbf16> to vector<8x8x4xbf16>
    %c0_122 = arith.constant 0 : index
    %c0_123 = arith.constant 0 : index
    %c2_124 = arith.constant 2 : index
    %c0_125 = arith.constant 0 : index
    %c0_126 = arith.constant 0 : index
    %c0_127 = arith.constant 0 : index
    %42 = vector.load %arg4[%c0_122, %c0_123, %c2_124, %c0_125, %c0_126, %c0_127] : memref<1x1x4x9x9x4xbf16, #tpu.memory_space<vmem>>, vector<1x1x1x8x8x4xbf16>
    %43 = vector.shape_cast %42 : vector<1x1x1x8x8x4xbf16> to vector<8x8x4xbf16>
    %c0_128 = arith.constant 0 : index
    %c0_129 = arith.constant 0 : index
    %c3_130 = arith.constant 3 : index
    %c0_131 = arith.constant 0 : index
    %c0_132 = arith.constant 0 : index
    %c0_133 = arith.constant 0 : index
    %44 = vector.load %arg4[%c0_128, %c0_129, %c3_130, %c0_131, %c0_132, %c0_133] : memref<1x1x4x9x9x4xbf16, #tpu.memory_space<vmem>>, vector<1x1x1x8x8x4xbf16>
    %45 = vector.shape_cast %44 : vector<1x1x1x8x8x4xbf16> to vector<8x8x4xbf16>
    %c0_134 = arith.constant 0 : index
    %c0_135 = arith.constant 0 : index
    %c2_136 = arith.constant 2 : index
    %c0_137 = arith.constant 0 : index
    %c1_138 = arith.constant 1 : index
    %c0_139 = arith.constant 0 : index
    %46 = vector.load %arg4[%c0_134, %c0_135, %c2_136, %c0_137, %c1_138, %c0_139] : memref<1x1x4x9x9x4xbf16, #tpu.memory_space<vmem>>, vector<1x1x1x8x8x4xbf16>
    %47 = vector.shape_cast %46 : vector<1x1x1x8x8x4xbf16> to vector<8x8x4xbf16>
    %c0_140 = arith.constant 0 : index
    %c0_141 = arith.constant 0 : index
    %c0_142 = arith.constant 0 : index
    %c1_143 = arith.constant 1 : index
    %c0_144 = arith.constant 0 : index
    %c0_145 = arith.constant 0 : index
    %48 = vector.load %arg4[%c0_140, %c0_141, %c0_142, %c1_143, %c0_144, %c0_145] : memref<1x1x4x9x9x4xbf16, #tpu.memory_space<vmem>>, vector<1x1x1x8x8x4xbf16>
    %49 = vector.shape_cast %48 : vector<1x1x1x8x8x4xbf16> to vector<8x8x4xbf16>
    %c0_146 = arith.constant 0 : index
    %c0_147 = arith.constant 0 : index
    %c1_148 = arith.constant 1 : index
    %c1_149 = arith.constant 1 : index
    %c0_150 = arith.constant 0 : index
    %c0_151 = arith.constant 0 : index
    %50 = vector.load %arg4[%c0_146, %c0_147, %c1_148, %c1_149, %c0_150, %c0_151] : memref<1x1x4x9x9x4xbf16, #tpu.memory_space<vmem>>, vector<1x1x1x8x8x4xbf16>
    %51 = vector.shape_cast %50 : vector<1x1x1x8x8x4xbf16> to vector<8x8x4xbf16>
    %c0_152 = arith.constant 0 : index
    %c0_153 = arith.constant 0 : index
    %c0_154 = arith.constant 0 : index
    %c1_155 = arith.constant 1 : index
    %c1_156 = arith.constant 1 : index
    %c0_157 = arith.constant 0 : index
    %52 = vector.load %arg4[%c0_152, %c0_153, %c0_154, %c1_155, %c1_156, %c0_157] : memref<1x1x4x9x9x4xbf16, #tpu.memory_space<vmem>>, vector<1x1x1x8x8x4xbf16>
    %53 = vector.shape_cast %52 : vector<1x1x1x8x8x4xbf16> to vector<8x8x4xbf16>
    %cst = arith.constant 1.000000e+00 : bf16
    %54 = vector.broadcast %cst : bf16 to vector<8x8x20xbf16>
    %55 = tpu.concatenate %1, %3, %5, %7, %9, %11, %13, %15, %17, %19, %21, %23, %25, %27, %29, %31 in 2 : vector<8x8x4xbf16>, vector<8x8x4xbf16>, vector<8x8x4xbf16>, vector<8x8x4xbf16>, vector<8x8x4xbf16>, vector<8x8x4xbf16>, vector<8x8x4xbf16>, vector<8x8x4xbf16>, vector<8x8x4xbf16>, vector<8x8x4xbf16>, vector<8x8x4xbf16>, vector<8x8x4xbf16>, vector<8x8x4xbf16>, vector<8x8x4xbf16>, vector<8x8x4xbf16>, vector<8x8x4xbf16> -> vector<8x8x64xbf16>
    %56 = tpu.concatenate %33, %35, %37, %39, %41, %43, %45, %47, %49, %51, %53, %54 in 2 : vector<8x8x4xbf16>, vector<8x8x4xbf16>, vector<8x8x4xbf16>, vector<8x8x4xbf16>, vector<8x8x4xbf16>, vector<8x8x4xbf16>, vector<8x8x4xbf16>, vector<8x8x4xbf16>, vector<8x8x4xbf16>, vector<8x8x4xbf16>, vector<8x8x4xbf16>, vector<8x8x20xbf16> -> vector<8x8x64xbf16>
    %57 = tpu.concatenate %55, %56 in 2 : vector<8x8x64xbf16>, vector<8x8x64xbf16> -> vector<8x8x128xbf16>
    %58 = vector.shape_cast %57 : vector<8x8x128xbf16> to vector<64x128xbf16>
    %c0_158 = arith.constant 0 : index
    %c0_159 = arith.constant 0 : index
    %59 = vector.load %arg5[%c0_158, %c0_159] : memref<128x128xbf16, #tpu.memory_space<vmem>>, vector<128x128xbf16>
    %cst_160 = arith.constant dense<0.000000e+00> : vector<64x128xf32>
    %60 = tpu.matmul %58, %59, %cst_160 {dimension_numbers = #tpu.dot_dimension_numbers<[1], [0], [0], [1], [0, 0, 1, 1], [], []>} : vector<64x128xbf16>, vector<128x128xbf16>, vector<64x128xf32> -> vector<64x128xf32>
    %61 = vector.shape_cast %60 : vector<64x128xf32> to vector<1x1x64x128xf32>
    %c0_161 = arith.constant 0 : index
    %c0_162 = arith.constant 0 : index
    %c0_163 = arith.constant 0 : index
    %c0_164 = arith.constant 0 : index
    %62 = vector.load %arg6[%c0_161, %c0_162, %c0_163, %c0_164] : memref<1x1x64x128xf32, #tpu.memory_space<vmem>>, vector<1x1x64x128xf32>
    tpu.vector_store %arg6[%c0_161, %c0_162, %c0_163, %c0_164], %61 {strides = array<i32>} : memref<1x1x64x128xf32, #tpu.memory_space<vmem>>, vector<1x1x64x128xf32>,
    return
  }
  func.func @transform_0(%arg0: i32, %arg1: i32) -> (i32, i32, i32, i32, i32, i32) {
    %c0_i32 = arith.constant 0 : i32
    %c0_i32_0 = arith.constant 0 : i32
    %c0_i32_1 = arith.constant 0 : i32
    %c0_i32_2 = arith.constant 0 : i32
    %c0_i32_3 = arith.constant 0 : i32
    return %arg0, %arg1, %c0_i32, %c0_i32_0, %c0_i32_1, %c0_i32_2 : i32, i32, i32, i32, i32, i32
  }
  func.func @transform_1(%arg0: i32, %arg1: i32) -> (i32, i32, i32, i32, i32, i32) {
    %c1_i32 = arith.constant 1 : i32
    %c0_i32 = arith.constant 0 : i32
    %c0_i32_0 = arith.constant 0 : i32
    %c0_i32_1 = arith.constant 0 : i32
    %c0_i32_2 = arith.constant 0 : i32
    return %arg0, %arg1, %c1_i32, %c0_i32, %c0_i32_0, %c0_i32_1 : i32, i32, i32, i32, i32, i32
  }
  func.func @transform_2(%arg0: i32, %arg1: i32) -> (i32, i32, i32, i32, i32, i32) {
    %c1_i32 = arith.constant 1 : i32
    %0 = arith.addi %arg1, %c1_i32 : i32
    %c0_i32 = arith.constant 0 : i32
    %c0_i32_0 = arith.constant 0 : i32
    %c0_i32_1 = arith.constant 0 : i32
    %c0_i32_2 = arith.constant 0 : i32
    %c0_i32_3 = arith.constant 0 : i32
    return %arg0, %0, %c0_i32, %c0_i32_0, %c0_i32_1, %c0_i32_2 : i32, i32, i32, i32, i32, i32
  }
  func.func @transform_3(%arg0: i32, %arg1: i32) -> (i32, i32) {
    %c0_i32 = arith.constant 0 : i32
    %c0_i32_0 = arith.constant 0 : i32
    %c0_i32_1 = arith.constant 0 : i32
    return %c0_i32, %c0_i32_0 : i32, i32
  }
  func.func @transform_4(%arg0: i32, %arg1: i32) -> (i32, i32, i32, i32) {
    %c0_i32 = arith.constant 0 : i32
    %c0_i32_0 = arith.constant 0 : i32
    %c0_i32_1 = arith.constant 0 : i32
    return %arg0, %arg1, %c0_i32, %c0_i32_0 : i32, i32, i32, i32
  }
}

</mosaic_0001>

<bundles_post_ra>
// kernel: tile.13
= control target key start
LH: loop header
LB: loop body
LE: loop exit
PB: predicated region body
PF: predicated region fallthrough
CT: control target
= control target key end

     0   :  { %2 = vsyncpa [#allocation1], 0  ;;  %s42_s6 = smov [#allocation0]   ;;  %s59_s0 = inlined_call_operand.hbm [shape: f32[4], index: 0, kind: input, shape index: {}]   ;;  %s60_s1 = inlined_call_operand.vmem [shape: f32[2,4], index: 1, kind: output, shape index: {}]  }
   0x1   :  { %s9_s7 = sshll.u32 %s42_s6, 4  ;;  %s10_s7 = int_to_ptr.vmem [resolvable:$true] %s9_s7 }
   0x2   :  { %s28_s8 = scalar_lea.vmem %s10_s7, 16  ;;  %s32_s9 = scalar_lea.vmem %s10_s7, 32 }
   0x3   :  { %p29_p0 = scmp.ne.s32.totalorder %s10_s7, %s28_s8  ;;  %p33_p1 = scmp.lt.s32.totalorder %s10_s7, %s10_s7 }
   0x4   :  { %p34_p2 = scmp.lt.s32.totalorder %s32_s9, %s28_s8 }
   0x6   :  { %p35_p3 = por %p34_p2, %p33_p1 }
   0x8   :  { %p36_p4 = pnand %p35_p3, %p29_p0 }
   0xa   :  { %39 = shalt.err (!%p36_p4)
}
   0xb   :  { %12 = dma.hbm_to_vmem [thread:$0]  %s59_s0, 16, %s10_s7, [#allocation1]  }
   0xc   :  { %40 = dma.done.wait [#allocation1], 16  }
   0xd   :  { %41 = vsyncadd [#allocation1], 4294967280  ;;  %v16_v0 = vld [vmem:[#allocation0] ss:$0 sm:$0xff] }
   0xe   :  { %17 = vst [vmem:[%s60_s1] sm:$0x3] %v16_v0 }
   0xf   :  { %18 = vsyncpa [#allocation1], 1 }

// kernel: downsample_forward.2
= control target key start
LH: loop header
LB: loop body
LE: loop exit
PB: predicated region body
PF: predicated region fallthrough
CT: control target
= control target key end

     0   :  { %s1104_s0 = inlined_call_operand.vmem [shape: f32[8,4096], index: 0, kind: input, shape index: {}]   ;;  %s1105_s1 = inlined_call_operand.vmem [shape: f32[8,128], index: 1, kind: input, shape index: {}]   ;;  %s1106_s2 = inlined_call_operand.vmem [shape: f32[8,128], index: 2, kind: input, shape index: {}]   ;;  %s1107_s3 = inlined_call_operand.vmem [shape: bf16[8,4096], index: 3, kind: output, shape index: {}]  }
   0x1   :  { %v535_v0 = vld [vmem:[%s1104_s0] sm:$0xff]  ;;  %v540_v1 = vld [vmem:[%s1104_s0 + $0x8] sm:$0xff]  ;;  %v545_v2 = vld [vmem:[%s1104_s0 + $0x10] sm:$0xff] }
   0x2   :  { %v46_v3 = vadd.f32 %v540_v1, %v535_v0  ;;  %v79_v4 = vmul.f32 %v535_v0, %v535_v0  ;;  %v80_v5 = vmul.f32 %v540_v1, %v540_v1  ;;  %v556_v6 = vld [vmem:[%s1104_s0 + $0x18] sm:$0xff]  ;;  %v81_v7 = vmul.f32 %v545_v2, %v545_v2  ;;  %v564_v9 = vld [vmem:[%s1104_s0 + $0x20] sm:$0xff]  ;;  %v572_v13 = vld [vmem:[%s1104_s0 + $0x28] sm:$0xff] }
   0x3   :  { %v82_v10 = vmul.f32 %v556_v6, %v556_v6  ;;  %v83_v14 = vmul.f32 %v564_v9, %v564_v9  ;;  %v580_v17 = vld [vmem:[%s1104_s0 + $0x30] sm:$0xff]  ;;  %v84_v18 = vmul.f32 %v572_v13, %v572_v13  ;;  %v588_v21 = vld [vmem:[%s1104_s0 + $0x38] sm:$0xff]  ;;  %v596_v25 = vld [vmem:[%s1104_s0 + $0x40] sm:$0xff] }
   0x4   :  { %v47_v8 = vadd.f32 %v46_v3, %v545_v2  ;;  %v111_v11 = vadd.f32 %v80_v5, %v79_v4  ;;  %v85_v22 = vmul.f32 %v580_v17, %v580_v17  ;;  %v86_v26 = vmul.f32 %v588_v21, %v588_v21  ;;  %v604_v29 = vld [vmem:[%s1104_s0 + $0x48] sm:$0xff]  ;;  %v612_v33 = vld [vmem:[%s1104_s0 + $0x50] sm:$0xff]  ;;  %v620_v37 = vld [vmem:[%s1104_s0 + $0x58] sm:$0xff] }
   0x5   :  { %v87_v30 = vmul.f32 %v596_v25, %v596_v25  ;;  %v88_v34 = vmul.f32 %v604_v29, %v604_v29  ;;  %v89_v38 = vmul.f32 %v612_v33, %v612_v33  ;;  %v628_v41 = vld [vmem:[%s1104_s0 + $0x60] sm:$0xff]  ;;  %v90_v42 = vmul.f32 %v620_v37, %v620_v37  ;;  %v636_v45 = vld [vmem:[%s1104_s0 + $0x68] sm:$0xff]  ;;  %v644_v49 = vld [vmem:[%s1104_s0 + $0x70] sm:$0xff] }
   0x6   :  { %v48_v12 = vadd.f32 %v47_v8, %v556_v6  ;;  %v112_v15 = vadd.f32 %v111_v11, %v81_v7  ;;  %v91_v46 = vmul.f32 %v628_v41, %v628_v41  ;;  %v92_v50 = vmul.f32 %v636_v45, %v636_v45  ;;  %v652_v53 = vld [vmem:[%s1104_s0 + $0x78] sm:$0xff]  ;;  %v660_v57 = vld [vmem:[%s1104_s0 + $0x80] sm:$0xff]  ;;  %v668_v61 = vld [vmem:[%s1104_s0 + $0x88] sm:$0xff] }
   0x7   :  { %v93_v54 = vmul.f32 %v644_v49, %v644_v49  ;;  %v94_v58 = vmul.f32 %v652_v53, %v652_v53  ;;  %v95_v62 = vmul.f32 %v660_v57, %v660_v57  ;;  %v676_v4 = vld [vmem:[%s1104_s0 + $0x90] sm:$0xff]  ;;  %v96_v5 = vmul.f32 %v668_v61, %v668_v61 }
   0x8   :  { %v49_v16 = vadd.f32 %v48_v12, %v564_v9  ;;  %v113_v19 = vadd.f32 %v112_v15, %v82_v10  ;;  %v684_v10 = vld [vmem:[%s1104_s0 + $0x98] sm:$0xff]  ;;  %v97_v11 = vmul.f32 %v676_v4, %v676_v4  ;;  %v692_v15 = vld [vmem:[%s1104_s0 + $0xa0] sm:$0xff] }
   0xa   :  { %v50_v20 = vadd.f32 %v49_v16, %v572_v13  ;;  %v114_v23 = vadd.f32 %v113_v19, %v83_v14  ;;  %v98_v16 = vmul.f32 %v684_v10, %v684_v10 }
   0xc   :  { %v51_v24 = vadd.f32 %v50_v20, %v580_v17  ;;  %v115_v27 = vadd.f32 %v114_v23, %v84_v18  ;;  %v700_v20 = vld [vmem:[%s1104_s0 + $0xa8] sm:$0xff] }
   0xe   :  { %v52_v28 = vadd.f32 %v51_v24, %v588_v21  ;;  %v116_v31 = vadd.f32 %v115_v27, %v85_v22  ;;  %v99_v22 = vmul.f32 %v692_v15, %v692_v15  ;;  %v100_v27 = vmul.f32 %v700_v20, %v700_v20 }
  0x10   :  { %v53_v32 = vadd.f32 %v52_v28, %v596_v25  ;;  %v117_v35 = vadd.f32 %v116_v31, %v86_v26  ;;  %v708_v26 = vld [vmem:[%s1104_s0 + $0xb0] sm:$0xff]  ;;  %v716_v31 = vld [vmem:[%s1104_s0 + $0xb8] sm:$0xff] }
  0x12   :  { %v54_v36 = vadd.f32 %v53_v32, %v604_v29  ;;  %v118_v39 = vadd.f32 %v117_v35, %v87_v30  ;;  %v101_v32 = vmul.f32 %v708_v26, %v708_v26 }
  0x14   :  { %v55_v40 = vadd.f32 %v54_v36, %v612_v33  ;;  %v119_v43 = vadd.f32 %v118_v39, %v88_v34  ;;  %v724_v36 = vld [vmem:[%s1104_s0 + $0xc0] sm:$0xff] }
  0x16   :  { %v56_v44 = vadd.f32 %v55_v40, %v620_v37  ;;  %v120_v47 = vadd.f32 %v119_v43, %v89_v38  ;;  %v102_v38 = vmul.f32 %v716_v31, %v716_v31  ;;  %v103_v43 = vmul.f32 %v724_v36, %v724_v36 }
  0x18   :  { %v57_v48 = vadd.f32 %v56_v44, %v628_v41  ;;  %v121_v51 = vadd.f32 %v120_v47, %v90_v42  ;;  %v732_v42 = vld [vmem:[%s1104_s0 + $0xc8] sm:$0xff]  ;;  %v740_v47 = vld [vmem:[%s1104_s0 + $0xd0] sm:$0xff] }
  0x1a   :  { %v58_v52 = vadd.f32 %v57_v48, %v636_v45  ;;  %v122_v55 = vadd.f32 %v121_v51, %v91_v46  ;;  %v104_v48 = vmul.f32 %v732_v42, %v732_v42 }
  0x1c   :  { %v59_v56 = vadd.f32 %v58_v52, %v644_v49  ;;  %v123_v59 = vadd.f32 %v122_v55, %v92_v50  ;;  %v748_v52 = vld [vmem:[%s1104_s0 + $0xd8] sm:$0xff] }
  0x1e   :  { %v60_v60 = vadd.f32 %v59_v56, %v652_v53  ;;  %v124_v63 = vadd.f32 %v123_v59, %v93_v54  ;;  %v105_v54 = vmul.f32 %v740_v47, %v740_v47  ;;  %v106_v59 = vmul.f32 %v748_v52, %v748_v52 }
  0x20   :  { %v61_v3 = vadd.f32 %v60_v60, %v660_v57  ;;  %v125_v7 = vadd.f32 %v124_v63, %v94_v58  ;;  %v756_v58 = vld [vmem:[%s1104_s0 + $0xe0] sm:$0xff]  ;;  %v764_v63 = vld [vmem:[%s1104_s0 + $0xe8] sm:$0xff] }
  0x22   :  { %v62_v8 = vadd.f32 %v61_v3, %v668_v61  ;;  %v126_v12 = vadd.f32 %v125_v7, %v95_v62  ;;  %v107_v3 = vmul.f32 %v756_v58, %v756_v58 }
  0x24   :  { %v63_v14 = vadd.f32 %v62_v8, %v676_v4  ;;  %v127_v18 = vadd.f32 %v126_v12, %v96_v5  ;;  %v772_v8 = vld [vmem:[%s1104_s0 + $0xf0] sm:$0xff] }
  0x26   :  { %v64_v19 = vadd.f32 %v63_v14, %v684_v10  ;;  %v128_v23 = vadd.f32 %v127_v18, %v97_v11  ;;  %v108_v11 = vmul.f32 %v764_v63, %v764_v63  ;;  %v109_v18 = vmul.f32 %v772_v8, %v772_v8 }
  0x28   :  { %v65_v24 = vadd.f32 %v64_v19, %v692_v15  ;;  %v129_v28 = vadd.f32 %v128_v23, %v98_v16  ;;  %v780_v16 = vld [vmem:[%s1104_s0 + $0xf8] sm:$0xff] }
  0x29   :  { %v110_v23 = vmul.f32 %v780_v16, %v780_v16 }
  0x2a   :  { %v66_v30 = vadd.f32 %v65_v24, %v700_v20  ;;  %v130_v34 = vadd.f32 %v129_v28, %v99_v22 }
  0x2c   :  { %v67_v35 = vadd.f32 %v66_v30, %v708_v26  ;;  %v131_v39 = vadd.f32 %v130_v34, %v100_v27 }
  0x2e   :  { %v68_v40 = vadd.f32 %v67_v35, %v716_v31  ;;  %v132_v44 = vadd.f32 %v131_v39, %v101_v32  ;;  %v511_v32 = vmov 0  }
  0x2f   :  { %507 = vset.pattern.permute.xlu1 %v511_v32  ;;  %508 = vset.pattern.permute.xlu0 %v511_v32 }
  0x30   :  { %v69_v46 = vadd.f32 %v68_v40, %v724_v36  ;;  %v133_v50 = vadd.f32 %v132_v44, %v102_v38 }
  0x32   :  { %v70_v51 = vadd.f32 %v69_v46, %v732_v42  ;;  %v134_v55 = vadd.f32 %v133_v50, %v103_v43 }
  0x34   :  { %v71_v56 = vadd.f32 %v70_v51, %v740_v47  ;;  %v135_v60 = vadd.f32 %v134_v55, %v104_v48  ;;  %v149_v48 = vld [vmem:[%s1105_s1] sm:$0xff] }
  0x36   :  { %v72_v62 = vadd.f32 %v71_v56, %v748_v52  ;;  %v136_v5 = vadd.f32 %v135_v60, %v105_v54  ;;  %v150_v54 = vld [vmem:[%s1106_s2] sm:$0xff] }
  0x38   :  { %v73_v7 = vadd.f32 %v72_v62, %v756_v58  ;;  %v137_v12 = vadd.f32 %v136_v5, %v106_v59 }
  0x3a   :  { %v74_v14 = vadd.f32 %v73_v7, %v764_v63  ;;  %v138_v19 = vadd.f32 %v137_v12, %v107_v3 }
  0x3c   :  { %v75_v22 = vadd.f32 %v74_v14, %v772_v8  ;;  %v139_v24 = vadd.f32 %v138_v19, %v108_v11 }
  0x3e   :  { %v76_v27 = vadd.f32 %v75_v22, %v780_v16  ;;  %v140_v28 = vadd.f32 %v139_v24, %v109_v18 }
  0x40   :  { %77 = vadd.xlane.f32.xlu0 %v76_v27  ;;  %v141_v30 = vadd.f32 %v140_v28, %v110_v23 }
  0x44   :  { %142 = vadd.xlane.f32.xlu0 %v141_v30 }
  0xc9   :  { %v78_v34 = vpop.xlane.xlu0 %77 }
  0xca   :  { %v144_v35 = vmul.f32 0.00024414063, %v78_v34 }
  0xcc   :  { %v146_v39 = vmul.f32 %v144_v35, %v144_v35 }
  0xcd   :  { %v143_v38 = vpop.xlane.xlu0 %142 }
  0xce   :  { %v145_v40 = vmul.f32 0.00024414063, %v143_v38 }
  0xd0   :  { %v147_v43 = vsub.f32 %v145_v40, %v146_v39 }
  0xd2   :  { %v148_v44 = vmax.f32 %v147_v43, 0.0 }
  0xd4   :  { %v151_v46 = vadd.f32 1e-05, %v148_v44 }
  0xd6   :  { %509 = vrsqrt.f32 %v151_v46 }
  0xe3   :  { %v510_v50 = vpop.eup %509 }
  0xe4   :  { %v153_v51 = vmul.f32 %v510_v50, %v149_v48 }
  0xe6   :  { %158 = vperm.xlu1 %507, %v153_v51   ;;  %v154_v55 = vmul.f32 %v153_v51, %v144_v35 }
  0xe8   :  { %v155_v56 = vsub.f32 %v150_v54, %v154_v55 }
  0xea   :  { %195 = vperm.xlu1 %507, %v155_v56  }
 0x161   :  { %v159_v59 = vpop.permute.xlu1 %158 }
 0x162   :  { %v161_v60 = vmul.f32 %v159_v59, %v535_v0  ;;  %v162_v62 = vmul.f32 %v159_v59, %v540_v1  ;;  %v163_v3 = vmul.f32 %v159_v59, %v545_v2  ;;  %v164_v5 = vmul.f32 %v159_v59, %v556_v6 }
 0x163   :  { %v165_v7 = vmul.f32 %v159_v59, %v564_v9  ;;  %v166_v11 = vmul.f32 %v159_v59, %v572_v13  ;;  %v167_v12 = vmul.f32 %v159_v59, %v580_v17  ;;  %v168_v14 = vmul.f32 %v159_v59, %v588_v21 }
 0x164   :  { %v169_v18 = vmul.f32 %v159_v59, %v596_v25  ;;  %v170_v19 = vmul.f32 %v159_v59, %v604_v29  ;;  %v171_v0 = vmul.f32 %v159_v59, %v612_v33  ;;  %v172_v1 = vmul.f32 %v159_v59, %v620_v37 }
 0x165   :  { %v173_v2 = vmul.f32 %v159_v59, %v628_v41  ;;  %v174_v6 = vmul.f32 %v159_v59, %v636_v45  ;;  %v175_v9 = vmul.f32 %v159_v59, %v644_v49  ;;  %v176_v13 = vmul.f32 %v159_v59, %v652_v53  ;;  %v196_v22 = vpop.permute.xlu1 %195 }
 0x166   :  { %v177_v17 = vmul.f32 %v159_v59, %v660_v57  ;;  %v178_v21 = vmul.f32 %v159_v59, %v668_v61  ;;  %v179_v25 = vmul.f32 %v159_v59, %v676_v4  ;;  %v180_v29 = vmul.f32 %v159_v59, %v684_v10 }
 0x167   :  { %v181_v33 = vmul.f32 %v159_v59, %v692_v15  ;;  %v182_v37 = vmul.f32 %v159_v59, %v700_v20  ;;  %v183_v41 = vmul.f32 %v159_v59, %v708_v26  ;;  %v184_v45 = vmul.f32 %v159_v59, %v716_v31 }
 0x168   :  { %v185_v49 = vmul.f32 %v159_v59, %v724_v36  ;;  %v186_v53 = vmul.f32 %v159_v59, %v732_v42  ;;  %v187_v57 = vmul.f32 %v159_v59, %v740_v47  ;;  %v188_v61 = vmul.f32 %v159_v59, %v748_v52 }
 0x169   :  { %v189_v4 = vmul.f32 %v159_v59, %v756_v58  ;;  %v190_v10 = vmul.f32 %v159_v59, %v764_v63  ;;  %v191_v15 = vmul.f32 %v159_v59, %v772_v8  ;;  %v192_v20 = vmul.f32 %v159_v59, %v780_v16 }
 0x16a   :  { %v826_v26 = vadd.f32 %v196_v22, %v161_v60  ;;  %v828_v31 = vadd.f32 %v196_v22, %v162_v62  ;;  %v830_v23 = vadd.f32 %v196_v22, %v163_v3  ;;  %v832_v36 = vadd.f32 %v196_v22, %v164_v5 }
 0x16b   :  { %v834_v42 = vadd.f32 %v196_v22, %v165_v7  ;;  %v836_v47 = vadd.f32 %v196_v22, %v166_v11  ;;  %v838_v52 = vadd.f32 %v196_v22, %v167_v12  ;;  %v840_v58 = vadd.f32 %v196_v22, %v168_v14 }
 0x16c   :  { %v842_v63 = vadd.f32 %v196_v22, %v169_v18  ;;  %v844_v8 = vadd.f32 %v196_v22, %v170_v19  ;;  %v846_v16 = vadd.f32 %v196_v22, %v171_v0  ;;  %v848_v24 = vadd.f32 %v196_v22, %v172_v1 }
 0x16d   :  { %v850_v27 = vadd.f32 %v196_v22, %v173_v2  ;;  %v852_v28 = vadd.f32 %v196_v22, %v174_v6  ;;  %v854_v30 = vadd.f32 %v196_v22, %v175_v9  ;;  %v856_v32 = vadd.f32 %v196_v22, %v176_v13 }
 0x16e   :  { %v858_v34 = vadd.f32 %v196_v22, %v177_v17  ;;  %v860_v35 = vadd.f32 %v196_v22, %v178_v21  ;;  %v862_v38 = vadd.f32 %v196_v22, %v179_v25  ;;  %v864_v39 = vadd.f32 %v196_v22, %v180_v29 }
 0x16f   :  { %v866_v40 = vadd.f32 %v196_v22, %v181_v33  ;;  %v868_v43 = vadd.f32 %v196_v22, %v182_v37  ;;  %v870_v44 = vadd.f32 %v196_v22, %v183_v41  ;;  %v872_v46 = vadd.f32 %v196_v22, %v184_v45 }
 0x170   :  { %v874_v48 = vadd.f32 %v196_v22, %v185_v49  ;;  %v876_v50 = vadd.f32 %v196_v22, %v186_v53  ;;  %v878_v51 = vadd.f32 %v196_v22, %v187_v57  ;;  %v880_v54 = vadd.f32 %v196_v22, %v188_v61 }
 0x171   :  { %v882_v55 = vadd.f32 %v196_v22, %v189_v4  ;;  %v884_v56 = vadd.f32 %v196_v22, %v190_v10  ;;  %vm230_vm0 = vcmp.ge.f32.partialorder %v826_v26, 0.0  ;;  %vm231_vm1 = vcmp.ge.f32.partialorder %v828_v31, 0.0 }
 0x172   :  { %vm232_vm2 = vcmp.ge.f32.partialorder %v830_v23, 0.0  ;;  %vm233_vm3 = vcmp.ge.f32.partialorder %v832_v36, 0.0  ;;  %vm234_vm4 = vcmp.ge.f32.partialorder %v834_v42, 0.0  ;;  %vm235_vm5 = vcmp.ge.f32.partialorder %v836_v47, 0.0 }
 0x173   :  { %vm236_vm6 = vcmp.ge.f32.partialorder %v838_v52, 0.0  ;;  %vm237_vm7 = vcmp.ge.f32.partialorder %v840_v58, 0.0  ;;  %vm238_vm8 = vcmp.ge.f32.partialorder %v842_v63, 0.0  ;;  %v896_v59 = vadd.f32 %v196_v22, %v191_v15 }
 0x174   :  { %v262_v60 = vmul.f32 0.01, %v826_v26  ;;  %v263_v62 = vmul.f32 0.01, %v828_v31  ;;  %v264_v3 = vmul.f32 0.01, %v830_v23  ;;  %v905_v5 = vadd.f32 %v196_v22, %v192_v20 }
 0x175   :  { %vm245_vm15 = vcmp.ge.f32.partialorder %v856_v32, 0.0  ;;  %vm246_vm10 = vcmp.ge.f32.partialorder %v858_v34, 0.0  ;;  %v265_v7 = vmul.f32 0.01, %v832_v36  ;;  %v266_v11 = vmul.f32 0.01, %v834_v42 }
 0x176   :  { %v267_v12 = vmul.f32 0.01, %v836_v47  ;;  %vm251_vm14 = vcmp.ge.f32.partialorder %v868_v43, 0.0  ;;  %v268_v14 = vmul.f32 0.01, %v838_v52  ;;  %v924_v0 = vsel %vm230_vm0, %v826_v26, %v262_v60 }
 0x177   :  { %v269_v18 = vmul.f32 0.01, %v840_v58  ;;  %v270_v19 = vmul.f32 0.01, %v842_v63  ;;  %vm255_vm9 = vcmp.ge.f32.partialorder %v876_v50, 0.0  ;;  %v936_v9 = vsel %vm231_vm1, %v828_v31, %v263_v62 }
 0x178   :  { %v271_v1 = vmul.f32 0.01, %v844_v8  ;;  %v272_v2 = vmul.f32 0.01, %v846_v16  ;;  %v273_v6 = vmul.f32 0.01, %v848_v24  ;;  %v296_v25 = vsel %vm232_vm2, %v830_v23, %v264_v3 }
 0x179   :  { %vm257_vm11 = vcmp.ge.f32.partialorder %v880_v54, 0.0  ;;  %vm258_vm13 = vcmp.ge.f32.partialorder %v882_v55, 0.0  ;;  %vm259_vm12 = vcmp.ge.f32.partialorder %v884_v56, 0.0  ;;  %v274_v13 = vmul.f32 0.01, %v850_v27 }
 0x17a   :  { %v275_v17 = vmul.f32 0.01, %v852_v28  ;;  %v276_v21 = vmul.f32 0.01, %v854_v30  ;;  %vm260_vm1 = vcmp.ge.f32.partialorder %v896_v59, 0.0  ;;  %vm261_vm0 = vcmp.ge.f32.partialorder %v905_v5, 0.0 }
 0x17b   :  { %v277_v29 = vmul.f32 0.01, %v856_v32  ;;  %v278_v33 = vmul.f32 0.01, %v858_v34  ;;  %v279_v37 = vmul.f32 0.01, %v860_v35  ;;  %v297_v41 = vsel %vm233_vm3, %v832_v36, %v265_v7 }
 0x17c   :  { %v280_v45 = vmul.f32 0.01, %v862_v38  ;;  %v281_v22 = vmul.f32 0.01, %v864_v39  ;;  %v282_v49 = vmul.f32 0.01, %v866_v40  ;;  %v298_v53 = vsel %vm234_vm4, %v834_v42, %v266_v11 }
 0x17d   :  { %v283_v57 = vmul.f32 0.01, %v868_v43  ;;  %v284_v61 = vmul.f32 0.01, %v870_v44  ;;  %v285_v4 = vmul.f32 0.01, %v872_v46  ;;  %v299_v10 = vsel %vm235_vm5, %v836_v47, %v267_v12 }
 0x17e   :  { %v286_v15 = vmul.f32 0.01, %v874_v48  ;;  %v287_v20 = vmul.f32 0.01, %v876_v50  ;;  %v288_v26 = vmul.f32 0.01, %v878_v51  ;;  %v300_v31 = vsel %vm236_vm6, %v838_v52, %v268_v14 }
 0x17f   :  { %v289_v23 = vmul.f32 0.01, %v880_v54  ;;  %v290_v36 = vmul.f32 0.01, %v882_v55  ;;  %v291_v42 = vmul.f32 0.01, %v884_v56  ;;  %v301_v47 = vsel %vm237_vm7, %v840_v58, %v269_v18 }
 0x180   :  { %v292_v60 = vmul.f32 0.01, %v896_v59  ;;  %v293_v62 = vmul.f32 0.01, %v905_v5  ;;  %v302_v3 = vsel %vm238_vm8, %v842_v63, %v270_v19  ;;  %vm1108_vm2 = vcmp.ge.f32.partialorder %v844_v8, 0.0 }
 0x181   :  { %v303_v52 = vsel %vm1108_vm2, %v844_v8, %v271_v1  ;;  %vm1109_vm3 = vcmp.ge.f32.partialorder %v846_v16, 0.0  ;;  %vm1110_vm4 = vcmp.ge.f32.partialorder %v848_v24, 0.0  ;;  %vm1111_vm5 = vcmp.ge.f32.partialorder %v850_v27, 0.0 }
 0x182   :  { %v304_v7 = vsel %vm1109_vm3, %v846_v16, %v272_v2  ;;  %v305_v58 = vsel %vm1110_vm4, %v848_v24, %v273_v6  ;;  %v306_v11 = vsel %vm1111_vm5, %v850_v27, %v274_v13  ;;  %vm1112_vm6 = vcmp.ge.f32.partialorder %v852_v28, 0.0 }
 0x183   :  { %v307_v63 = vsel %vm1112_vm6, %v852_v28, %v275_v17  ;;  %vm1113_vm7 = vcmp.ge.f32.partialorder %v854_v30, 0.0  ;;  %v309_v16 = vsel %vm245_vm15, %v856_v32, %v277_v29  ;;  %v310_v24 = vsel %vm246_vm10, %v858_v34, %v278_v33 }
 0x184   :  { %v308_v8 = vsel %vm1113_vm7, %v854_v30, %v276_v21  ;;  %vm1114_vm8 = vcmp.ge.f32.partialorder %v860_v35, 0.0  ;;  %vm1115_vm2 = vcmp.ge.f32.partialorder %v862_v38, 0.0  ;;  %vm1116_vm3 = vcmp.ge.f32.partialorder %v864_v39, 0.0 }
 0x185   :  { %v311_v27 = vsel %vm1114_vm8, %v860_v35, %v279_v37  ;;  %v312_v28 = vsel %vm1115_vm2, %v862_v38, %v280_v45  ;;  %v313_v30 = vsel %vm1116_vm3, %v864_v39, %v281_v22  ;;  %vm1117_vm4 = vcmp.ge.f32.partialorder %v866_v40, 0.0 }
 0x186   :  { %v314_v32 = vsel %vm1117_vm4, %v866_v40, %v282_v49  ;;  %v315_v34 = vsel %vm251_vm14, %v868_v43, %v283_v57  ;;  %vm1118_vm10 = vcmp.ge.f32.partialorder %v870_v44, 0.0  ;;  %vm1119_vm15 = vcmp.ge.f32.partialorder %v872_v46, 0.0 }
 0x187   :  { %v316_v35 = vsel %vm1118_vm10, %v870_v44, %v284_v61  ;;  %v317_v38 = vsel %vm1119_vm15, %v872_v46, %v285_v4  ;;  %vm1120_vm5 = vcmp.ge.f32.partialorder %v874_v48, 0.0  ;;  %v319_v40 = vsel %vm255_vm9, %v876_v50, %v287_v20 }
 0x188   :  { %v318_v39 = vsel %vm1120_vm5, %v874_v48, %v286_v15  ;;  %vm1121_vm6 = vcmp.ge.f32.partialorder %v878_v51, 0.0  ;;  %v321_v44 = vsel %vm257_vm11, %v880_v54, %v289_v23  ;;  %v322_v46 = vsel %vm258_vm13, %v882_v55, %v290_v36 }
 0x189   :  { %v320_v43 = vsel %vm1121_vm6, %v878_v51, %v288_v26  ;;  %v323_v48 = vsel %vm259_vm12, %v884_v56, %v291_v42  ;;  %v324_v50 = vsel %vm260_vm1, %v896_v59, %v292_v60  ;;  %v325_v51 = vsel %vm261_vm0, %v905_v5, %v293_v62 }
 0x18a   :  { %v490_v12 = vpack.c.bf16 %v936_v9, %v924_v0  ;;  %v491_v54 = vpack.c.bf16 %v297_v41, %v296_v25  ;;  %v492_v14 = vpack.c.bf16 %v299_v10, %v298_v53  ;;  %v493_v18 = vpack.c.bf16 %v301_v47, %v300_v31 }
 0x18b   :  { %v494_v19 = vpack.c.bf16 %v303_v52, %v302_v3  ;;  %v495_v55 = vpack.c.bf16 %v305_v58, %v304_v7  ;;  %v496_v1 = vpack.c.bf16 %v307_v63, %v306_v11  ;;  %v497_v2 = vpack.c.bf16 %v309_v16, %v308_v8 }
 0x18c   :  { %v498_v6 = vpack.c.bf16 %v311_v27, %v310_v24  ;;  %v499_v56 = vpack.c.bf16 %v313_v30, %v312_v28  ;;  %454 = vst [vmem:[%s1107_s3] sm:$0xff] %v490_v12  ;;  %455 = vst [vmem:[%s1107_s3 + $0x8] sm:$0xff] %v491_v54  ;;  %v500_v59 = vpack.c.bf16 %v315_v34, %v314_v32 }
 0x18d   :  { %v501_v5 = vpack.c.bf16 %v317_v38, %v316_v35  ;;  %v502_v0 = vpack.c.bf16 %v319_v40, %v318_v39  ;;  %v503_v9 = vpack.c.bf16 %v321_v44, %v320_v43  ;;  %456 = vst [vmem:[%s1107_s3 + $0x10] sm:$0xff] %v492_v14  ;;  %457 = vst [vmem:[%s1107_s3 + $0x18] sm:$0xff] %v493_v18 }
 0x18e   :  { %458 = vst [vmem:[%s1107_s3 + $0x20] sm:$0xff] %v494_v19  ;;  %459 = vst [vmem:[%s1107_s3 + $0x28] sm:$0xff] %v495_v55  ;;  %v504_v13 = vpack.c.bf16 %v323_v48, %v322_v46  ;;  %v505_v17 = vpack.c.bf16 %v325_v51, %v324_v50 }
 0x18f   :  { %460 = vst [vmem:[%s1107_s3 + $0x30] sm:$0xff] %v496_v1  ;;  %461 = vst [vmem:[%s1107_s3 + $0x38] sm:$0xff] %v497_v2 }
 0x190   :  { %462 = vst [vmem:[%s1107_s3 + $0x40] sm:$0xff] %v498_v6  ;;  %463 = vst [vmem:[%s1107_s3 + $0x48] sm:$0xff] %v499_v56 }
 0x191   :  { %464 = vst [vmem:[%s1107_s3 + $0x50] sm:$0xff] %v500_v59  ;;  %465 = vst [vmem:[%s1107_s3 + $0x58] sm:$0xff] %v501_v5 }
 0x192   :  { %466 = vst [vmem:[%s1107_s3 + $0x60] sm:$0xff] %v502_v0  ;;  %467 = vst [vmem:[%s1107_s3 + $0x68] sm:$0xff] %v503_v9 }
 0x193   :  { %468 = vst [vmem:[%s1107_s3 + $0x70] sm:$0xff] %v504_v13  ;;  %469 = vst [vmem:[%s1107_s3 + $0x78] sm:$0xff] %v505_v17 }

// kernel: downsample_forward.3
= control target key start
LH: loop header
LB: loop body
LE: loop exit
PB: predicated region body
PF: predicated region fallthrough
CT: control target
= control target key end

     0   :  { %s3677_s15 = smov 0   ;;  %s3679_s16 = smov 0   ;;  %s4976_s0 = inlined_call_operand.vmem [shape: bf16[2,9,8,9,9,4], index: 0, kind: input, shape index: {}, may-alias: {0,1,2}]   ;;  %s4977_s1 = inlined_call_operand.vmem [shape: bf16[2,9,8,9,9,4], index: 1, kind: input, shape index: {}, may-alias: {0,1,2}]   ;;  %s4978_s2 = inlined_call_operand.vmem [shape: bf16[2,9,8,9,9,4], index: 2, kind: input, shape index: {}, may-alias: {0,1,2}]   ;;  %s4979_s3 = inlined_call_operand.vmem [shape: bf16[128,128], index: 3, kind: input, shape index: {}]   ;;  %s4980_s4 = inlined_call_operand.vmem [shape: f32[2,8,64,128], index: 4, kind: output, shape index: {}]  }
   0x1   :  { %s3681_s17 = smov 0   ;;  %s3683_s18 = smov 0  }
   0x2   :  { %s3685_s19 = smov 0  }
   0x3 LB: > { %s23_s20 = sadd.s32 1, %s3626_s17  ;;  %s26_s21 = sadd.s32 1, %s3630_s18  ;;  %s3634_s19 = sphi %s3685_s19, %s14_s19   ;;  %s3630_s18 = sphi %s3683_s18, %s5142_s18   ;;  %s3626_s17 = sphi %s3681_s17, %s5141_s17   ;;  %s3622_s16 = sphi %s3679_s16, %s5140_s16   ;;  %s3618_s15 = sphi %s3677_s15, %s5139_s15  }
   0x4   : > { %p24_p0 = scmp.ge.s32.totalorder %s23_s20, 8  ;;  %p2856_p1 = scmp.ge.s32.totalorder %s3634_s19, 1 }
   0x5   : > { %p219_p2 = scmp.lt.s32.totalorder %s3634_s19, 17 }
   0x6   : > { %s5144_s20 = smov (%p24_p0, %s23_s20), 0  ;;  %s5146_s21 = smov (!%p24_p0, %s26_s21), %s3630_s18 }
   0x7   : > { %p220_p3 = pnand %p2856_p1, %p219_p2  ;;  %p28_p4 = scmp.ge.s32.totalorder %s5146_s21, 2 }
   0x9   : > { %s5148_s21 = smov (%p28_p4, %s5146_s21), 0  ;;  %223 = sbr.rel (%p220_p3) target bundleno = 756 (0x2f4), region = 36 }
   0xe   : > { %p273_p5 = scmp.lt.s32.totalorder %s3622_s16, 1  ;;  %p275_p6 = scmp.lt.s32.totalorder %s3618_s15, 8  ;;  %vm1441_vm0 = vcmask 31744   ;;  %vm1466_vm1 = vcmask 64512   ;;  %vm1483_vm2 = vcmask 97280   ;;  %vm1500_vm3 = vcmask 130048  }
   0xf   : > { %s3636_s30 = smov 4   ;;  %s3637_s5 = smov 8   ;;  %vm1517_vm4 = vcmask 162816   ;;  %vm1534_vm5 = vcmask 195584   ;;  %vm1551_vm6 = vcmask 228352   ;;  %vm1568_vm7 = vcmask 261120  }
  0x10   : > { %s5150_s16 = smov (!%p273_p5, %s3622_s16), 1  ;;  %s292_s6 = sadd.s32 1, %s3618_s15  ;;  %vm1585_vm8 = vcmask 293888   ;;  %vm1602_vm9 = vcmask 326656   ;;  %vm1619_vm10 = vcmask 359424   ;;  %vm1636_vm11 = vcmask 392192  }
  0x11   : > { %s276_s22 = scalar_select %p275_p6, %s3618_s15, 8  ;;  %vm1653_vm12 = vcmask 424960   ;;  %vm1670_vm13 = vcmask 457728   ;;  %vm1687_vm14 = vcmask 490496   ;;  %vm2529_vm15 = vcmask 523264  }
  0x12   : > { %s3314_s23 = smul.u32 1296, %s5150_s16  ;;  %p295_p7 = scmp.lt.s32.totalorder %s292_s6, 8 }
  0x13   : > { %s3313_s24 = smul.u32 144, %s276_s22  ;;  %s3638_s7 = smov 12  }
  0x14   : > { %s5152_s6 = smov (!%p295_p7, %s292_s6), 8  ;;  %s3639_s14 = smov 16  }
  0x15   : > { %s3716_s25 = sadd.s32 %s3314_s23, %s3313_s24  ;;  %s3315_s8 = smul.u32 144, %s5152_s6 }
  0x16   : > { %s2857_s26 = sshll.u32 %s3716_s25, 2  ;;  %s3640_s25 = smov 20  }
  0x17   : > { %s3724_s29 = scalar_lea.vmem %s4976_s0, %s2857_s26  ;;  %s299_s9 = sadd.s32 %s3315_s8, %s3314_s23 }
  0x18   : > { %v3372_v0 = vld [vmem:[%s3724_s29 + $0x58] ss:$0 sps:$4 sm:$0xff]   ;;  %v3373_v1 = vld [vmem:[%s3724_s29 + $0x48] ss:$0 sps:$4 sm:$0xff]   ;;  %v3374_v2 = vld [vmem:[%s3724_s29 + $0x60] ss:$0 sps:$4 sm:$0xff]   ;;  %s3817_s24 = scalar_lea.vmem %s4977_s1, %s2857_s26 }
  0x19   : > { %573 = vrot.lane.b32.xlu1 %v3372_v0, %s3636_s30  ;;  %569 = vrot.lane.b32.xlu0 %v3373_v1, %s3636_s30  ;;  %v3375_v3 = vld [vmem:[%s3724_s29 + $0x50] ss:$0 sps:$4 sm:$0xff]   ;;  %v3377_v5 = vld [vmem:[%s3724_s29 + $0x68] ss:$0 sps:$4 sm:$0xff]   ;;  %s2859_s10 = sshll.u32 %s299_s9, 2  ;;  %s3641_s26 = smov 24  }
  0x1a   : > { %v3376_v4 = vld [vmem:[%s3724_s29 + $0x70] ss:$0 sps:$4 sm:$0xff]   ;;  %v315_v6 = vld [vmem:[%s3724_s29 + $0x8] sm:$0xf]  ;;  %v332_v7 = vld [vmem:[%s3724_s29 + $0xc] sm:$0x1]  ;;  %s3791_s13 = scalar_lea.vmem %s4978_s2, %s2859_s10 }
  0x1b   : > { %v3056_v8 = vcombine.low %v315_v6, %v332_v7  ;;  %v314_v9 = vld [vmem:[%s3724_s29] sm:$0xf]  ;;  %v331_v10 = vld [vmem:[%s3724_s29 + $0x4] sm:$0x1]  ;;  %v317_v11 = vld [vmem:[%s3724_s29 + $0x18] sm:$0xf] }
  0x1c   : > { %v3055_v12 = vcombine.low %v314_v9, %v331_v10  ;;  %v334_v13 = vld [vmem:[%s3724_s29 + $0x1c] sm:$0x1]  ;;  %v316_v14 = vld [vmem:[%s3724_s29 + $0x10] sm:$0xf]  ;;  %v333_v15 = vld [vmem:[%s3724_s29 + $0x14] sm:$0x1] }
  0x1d   : > { %575 = vrot.lane.b32.xlu1 %v3374_v2, %s3636_s30  ;;  %571 = vrot.lane.b32.xlu0 %v3375_v3, %s3636_s30  ;;  %v3378_v16 = vld [vmem:[%s3724_s29 + $0x80] ss:$0 sps:$4 sm:$0xff]   ;;  %v635_v17 = vshll.u32 %v3056_v8, 16  ;;  %v3058_v18 = vcombine.low %v317_v11, %v334_v13  ;;  %v3057_v19 = vcombine.low %v316_v14, %v333_v15  ;;  %v319_v20 = vld [vmem:[%s3724_s29 + $0x28] sm:$0xf]  ;;  %v633_v22 = vshrl.u32 %v3056_v8, 16 }
  0x1e   : > { %v336_v21 = vld [vmem:[%s3724_s29 + $0x2c] sm:$0x1]  ;;  %v628_v23 = vshll.u32 %v3055_v12, 16  ;;  %v318_v24 = vld [vmem:[%s3724_s29 + $0x20] sm:$0xf]  ;;  %v626_v28 = vshrl.u32 %v3055_v12, 16 }
  0x1f   : > { %v335_v25 = vld [vmem:[%s3724_s29 + $0x24] sm:$0x1]  ;;  %v3379_v26 = vld [vmem:[%s3724_s29 + $0x78] ss:$0 sps:$4 sm:$0xff]   ;;  %v637_v27 = vrot.slane %v635_v17, 1  ;;  %v649_v29 = vshll.u32 %v3058_v18, 16  ;;  %v3060_v30 = vcombine.low %v319_v20, %v336_v21 }
  0x20   : > { %v630_v31 = vrot.slane %v628_v23, 1  ;;  %v642_v32 = vshll.u32 %v3057_v19, 16  ;;  %v321_v33 = vld [vmem:[%s3724_s29 + $0x38] sm:$0xf]  ;;  %v338_v34 = vld [vmem:[%s3724_s29 + $0x3c] sm:$0x1]  ;;  %v3059_v35 = vcombine.low %v318_v24, %v335_v25 }
  0x21   : > { %579 = vrot.lane.b32.xlu1 %v3376_v4, %s3636_s30  ;;  %577 = vrot.lane.b32.xlu0 %v3377_v5, %s3636_s30  ;;  %v320_v36 = vld [vmem:[%s3724_s29 + $0x30] sm:$0xf]  ;;  %v337_v37 = vld [vmem:[%s3724_s29 + $0x34] sm:$0x1]  ;;  %v647_v38 = vshrl.u32 %v3058_v18, 16  ;;  %v640_v39 = vshrl.u32 %v3057_v19, 16  ;;  %v638_v40 = vor.u32 %v637_v27, %v633_v22  ;;  %v3062_v43 = vcombine.low %v321_v33, %v338_v34 }
  0x22   : > { %v651_v41 = vrot.slane %v649_v29, 1  ;;  %v663_v42 = vshll.u32 %v3060_v30, 16  ;;  %v631_v44 = vor.u32 %v630_v31, %v626_v28  ;;  %v644_v45 = vrot.slane %v642_v32, 1  ;;  %v2872_v0 = vld [vmem:[%s3724_s29 + $0x98] sm:$0xf]  ;;  %s3642_s27 = smov 28  }
  0x23   : > { %v656_v46 = vshll.u32 %v3059_v35, 16  ;;  %v3061_v47 = vcombine.low %v320_v36, %v337_v37  ;;  %v661_v49 = vshrl.u32 %v3060_v30, 16  ;;  %v677_v51 = vshll.u32 %v3062_v43, 16  ;;  %v2871_v1 = vld [vmem:[%s3724_s29 + $0x90] sm:$0xf]  ;;  %s3643_s28 = smov 32  }
  0x24   : > { %v652_v48 = vor.u32 %v651_v41, %v647_v38  ;;  %v665_v50 = vrot.slane %v663_v42, 1  ;;  %v645_v52 = vor.u32 %v644_v45, %v640_v39  ;;  %v654_v53 = vshrl.u32 %v3059_v35, 16  ;;  %v2874_v4 = vld [vmem:[%s3724_s29 + $0xa8] sm:$0xf]  ;;  %v2873_v5 = vld [vmem:[%s3724_s29 + $0xa0] sm:$0xf] }
  0x25   : > { %583 = vrot.lane.b32.xlu1 %v3378_v16, %s3636_s30  ;;  %581 = vrot.lane.b32.xlu0 %v3379_v26, %s3636_s30  ;;  %v658_v54 = vrot.slane %v656_v46, 1  ;;  %v670_v55 = vshll.u32 %v3061_v47, 16  ;;  %v675_v57 = vshrl.u32 %v3062_v43, 16  ;;  %v679_v58 = vrot.slane %v677_v51, 1  ;;  %v2876_v8 = vld [vmem:[%s3724_s29 + $0xb8] sm:$0xf] }
  0x26   : > { %v666_v56 = vor.u32 %v665_v50, %v661_v49  ;;  %v668_v60 = vshrl.u32 %v3061_v47, 16  ;;  %v3064_v2 = vcombine.low %v2872_v0, %v2872_v0  ;;  %v3063_v3 = vcombine.low %v2871_v1, %v2871_v1  ;;  %v2875_v9 = vld [vmem:[%s3724_s29 + $0xb0] sm:$0xf]  ;;  %v2878_v12 = vld [vmem:[%s3724_s29 + $0xc8] sm:$0xf]  ;;  %s3646_s6 = smov 44  }
  0x27   : > { %v659_v59 = vor.u32 %v658_v54, %v654_v53  ;;  %v672_v61 = vrot.slane %v670_v55, 1  ;;  %v680_v62 = vor.u32 %v679_v58, %v675_v57  ;;  %v3066_v6 = vcombine.low %v2874_v4, %v2874_v4  ;;  %v2877_v13 = vld [vmem:[%s3724_s29 + $0xc0] sm:$0xf]  ;;  %v2888_v17 = vld [vmem:[%s3724_s29 + $0x9c] sm:$0x1]  ;;  %s3648_s8 = smov 52  }
  0x28   : > { %v3065_v7 = vcombine.low %v2873_v5, %v2873_v5  ;;  %v3068_v10 = vcombine.low %v2876_v8, %v2876_v8  ;;  %v3067_v11 = vcombine.low %v2875_v9, %v2875_v9  ;;  %v3070_v14 = vcombine.low %v2878_v12, %v2878_v12  ;;  %v3404_v16 = vld [vmem:[%s3724_s29 + $0xe0] ss:$0 sps:$4 sm:$0xff]   ;;  %v3405_v18 = vld [vmem:[%s3724_s29 + $0xd8] ss:$0 sps:$4 sm:$0xff]   ;;  %v2887_v19 = vld [vmem:[%s3724_s29 + $0x94] sm:$0x1] }
  0x29   : > { %683 = vrot.lane.b32.xlu1 %v638_v40, %s3637_s5  ;;  %681 = vrot.lane.b32.xlu0 %v631_v44, %s3637_s5  ;;  %v673_v63 = vor.u32 %v672_v61, %v668_v60  ;;  %v3069_v15 = vcombine.low %v2877_v13, %v2877_v13  ;;  %v3080_v20 = vcombine.low %v2872_v0, %v2888_v17  ;;  %v2890_v21 = vld [vmem:[%s3724_s29 + $0xac] sm:$0x1]  ;;  %v3406_v22 = vld [vmem:[%s3724_s29 + $0xf0] ss:$0 sps:$4 sm:$0xff]   ;;  %s3649_s10 = smov 56   ;;  %p305_p8 = scmp.lt.s32.totalorder %s3618_s15, 7 }
  0x2a   : > { %v3079_v23 = vcombine.low %v2871_v1, %v2887_v19  ;;  %v3407_v24 = vld [vmem:[%s3724_s29 + $0xe8] ss:$0 sps:$4 sm:$0xff]   ;;  %v2889_v25 = vld [vmem:[%s3724_s29 + $0xa4] sm:$0x1]  ;;  %v3082_v26 = vcombine.low %v2874_v4, %v2890_v21  ;;  %v2892_v27 = vld [vmem:[%s3724_s29 + $0xbc] sm:$0x1] }
  0x2b   : > { %v3408_v28 = vld [vmem:[%s3724_s29 + $0x100] ss:$0 sps:$4 sm:$0xff]   ;;  %v811_v29 = vshll.u32 %v3080_v20, 16  ;;  %v3081_v30 = vcombine.low %v2873_v5, %v2889_v25  ;;  %v3409_v31 = vld [vmem:[%s3724_s29 + $0xf8] ss:$0 sps:$4 sm:$0xff]   ;;  %v3084_v36 = vcombine.low %v2876_v8, %v2892_v27  ;;  %v809_v38 = vshrl.u32 %v3080_v20, 16 }
  0x2c   : > { %v804_v32 = vshll.u32 %v3079_v23, 16  ;;  %v2891_v33 = vld [vmem:[%s3724_s29 + $0xb4] sm:$0x1]  ;;  %v2894_v34 = vld [vmem:[%s3724_s29 + $0xcc] sm:$0x1]  ;;  %v825_v40 = vshll.u32 %v3082_v26, 16 }
  0x2d   : > { %687 = vrot.lane.b32.xlu1 %v652_v48, %s3637_s5  ;;  %685 = vrot.lane.b32.xlu0 %v645_v52, %s3637_s5  ;;  %v2893_v35 = vld [vmem:[%s3724_s29 + $0xc4] sm:$0x1]  ;;  %v3410_v37 = vld [vmem:[%s3724_s29 + $0x110] ss:$0 sps:$4 sm:$0xff]   ;;  %v813_v39 = vrot.slane %v811_v29, 1  ;;  %v3083_v41 = vcombine.low %v2875_v9, %v2891_v33  ;;  %v802_v43 = vshrl.u32 %v3079_v23, 16  ;;  %v3086_v46 = vcombine.low %v2878_v12, %v2894_v34 }
  0x2e   : > { %v3411_v42 = vld [vmem:[%s3724_s29 + $0x108] ss:$0 sps:$4 sm:$0xff]   ;;  %v806_v44 = vrot.slane %v804_v32, 1  ;;  %v818_v45 = vshll.u32 %v3081_v30, 16  ;;  %v3085_v47 = vcombine.low %v2877_v13, %v2893_v35  ;;  %v823_v49 = vshrl.u32 %v3082_v26, 16  ;;  %s5154_s15 = smov (!%p305_p8, %s3618_s15), 7 }
  0x2f   : > { %v814_v48 = vor.u32 %v813_v39, %v809_v38  ;;  %v827_v50 = vrot.slane %v825_v40, 1  ;;  %v839_v51 = vshll.u32 %v3084_v36, 16  ;;  %v816_v53 = vshrl.u32 %v3081_v30, 16  ;;  %v2967_v58 = vld [vmem:[%s3817_s24 + $0x128] sm:$0xf]  ;;  %s2861_s9 = sshll.u32 %s5150_s16, 6 }
  0x30   : > { %v807_v52 = vor.u32 %v806_v44, %v802_v43  ;;  %v820_v54 = vrot.slane %v818_v45, 1  ;;  %v832_v55 = vshll.u32 %v3083_v41, 16  ;;  %v830_v57 = vshrl.u32 %v3083_v41, 16  ;;  %v2984_v12 = vld [vmem:[%s3817_s24 + $0x134] sm:$0x1] }
  0x31   : > { %691 = vrot.lane.b32.xlu1 %v666_v56, %s3637_s5  ;;  %689 = vrot.lane.b32.xlu0 %v659_v59, %s3637_s5  ;;  %v837_v56 = vshrl.u32 %v3084_v36, 16  ;;  %v828_v59 = vor.u32 %v827_v50, %v823_v49  ;;  %v841_v60 = vrot.slane %v839_v51, 1  ;;  %v853_v61 = vshll.u32 %v3086_v46, 16  ;;  %v2985_v17 = vld [vmem:[%s3817_s24 + $0x13c] sm:$0x1] }
  0x32   : > { %v834_v0 = vrot.slane %v832_v55, 1  ;;  %v846_v1 = vshll.u32 %v3085_v47, 16  ;;  %v844_v8 = vshrl.u32 %v3085_v47, 16  ;;  %v3836_v19 = vld [vmem:[%s3724_s29 + $0x10] sm:$0xf] }
  0x33   : > { %v855_v4 = vrot.slane %v853_v61, 1  ;;  %v2972_v21 = vld [vmem:[%s3817_s24 + $0x150] sm:$0xf]  ;;  %v3841_v23 = vld [vmem:[%s3724_s29 + $0x8] sm:$0xf] }
  0x34   : > { %v848_v9 = vrot.slane %v846_v1, 1  ;;  %v2973_v26 = vld [vmem:[%s3817_s24 + $0x158] sm:$0xf]  ;;  %v2989_v27 = vld [vmem:[%s3817_s24 + $0x15c] sm:$0x1]  ;;  %v3087_v34 = vcombine.low %v3841_v23, %v3841_v23 }
  0x35   : > { %695 = vrot.lane.b32.xlu1 %v680_v62, %s3637_s5  ;;  %693 = vrot.lane.b32.xlu0 %v673_v63, %s3637_s5  ;;  %v2983_v62 = vld [vmem:[%s3817_s24 + $0x12c] sm:$0x1]  ;;  %v821_v63 = vor.u32 %v820_v54, %v816_v53  ;;  %v2970_v32 = vld [vmem:[%s3817_s24 + $0x140] sm:$0xf]  ;;  %v3173_v39 = vcombine.low %v2973_v26, %v2989_v27 }
  0x36   : > { %v3167_v5 = vcombine.low %v2967_v58, %v2983_v62  ;;  %v2986_v33 = vld [vmem:[%s3817_s24 + $0x144] sm:$0x1]  ;;  %v3854_v36 = vld [vmem:[%s3724_s29 + $0x18] sm:$0xf]  ;;  %v2974_v41 = vld [vmem:[%s3817_s24 + $0x160] sm:$0xf] }
  0x37   : > { %v3170_v40 = vcombine.low %v2970_v32, %v2986_v33  ;;  %v2990_v45 = vld [vmem:[%s3817_s24 + $0x164] sm:$0x1]  ;;  %v1773_v51 = vshll.u32 %v3173_v39, 16  ;;  %v468_v1 = vld [vmem:[%s3791_s13] sm:$0xf] }
  0x38   : > { %v3174_v53 = vcombine.low %v2974_v41, %v2990_v45  ;;  %v486_v32 = vld [vmem:[%s3791_s13 + $0xc] sm:$0x1]  ;;  %v3446_v41 = vld [vmem:[%s3791_s13 + $0x70] ss:$0 sps:$4 sm:$0xff]  }
  0x39   : > { %723 = vrot.lane.b32.xlu1 %v3064_v2, %s3638_s7  ;;  %721 = vrot.lane.b32.xlu0 %v3063_v3, %s3638_s7  ;;  %v842_v2 = vor.u32 %v841_v60, %v837_v56  ;;  %v851_v3 = vshrl.u32 %v3086_v46, 16  ;;  %v3089_v46 = vcombine.low %v3854_v36, %v3854_v36  ;;  %v1750_v60 = vshrl.u32 %v3170_v40, 16 }
  0x3a   : > { %v1780_v62 = vshll.u32 %v3174_v53, 16 }
  0x3b   : > { %v856_v13 = vor.u32 %v855_v4, %v851_v3 }
  0x3c   : > { %v1782_v3 = vrot.slane %v1780_v62, 1 }
  0x3d   : > { %727 = vrot.lane.b32.xlu1 %v3066_v6, %s3638_s7  ;;  %725 = vrot.lane.b32.xlu0 %v3065_v7, %s3638_s7  ;;  %v2971_v6 = vld [vmem:[%s3817_s24 + $0x148] sm:$0xf]  ;;  %v835_v7 = vor.u32 %v834_v0, %v830_v57  ;;  %v1771_v57 = vshrl.u32 %v3173_v39, 16 }
  0x41   : > { %731 = vrot.lane.b32.xlu1 %v3068_v10, %s3638_s7  ;;  %729 = vrot.lane.b32.xlu0 %v3067_v11, %s3638_s7  ;;  %v2987_v10 = vld [vmem:[%s3817_s24 + $0x14c] sm:$0x1]  ;;  %v2968_v11 = vld [vmem:[%s3817_s24 + $0x130] sm:$0xf] }
  0x42   : > { %v3168_v20 = vcombine.low %v2968_v11, %v2984_v12  ;;  %v470_v12 = vld [vmem:[%s3791_s13 + $0x10] sm:$0xf] }
  0x44   : > { %v1738_v35 = vshll.u32 %v3168_v20, 16  ;;  %v1736_v47 = vshrl.u32 %v3168_v20, 16 }
  0x45   : > { %735 = vrot.lane.b32.xlu1 %v3070_v14, %s3638_s7  ;;  %733 = vrot.lane.b32.xlu0 %v3069_v15, %s3638_s7  ;;  %v1731_v14 = vshll.u32 %v3167_v5, 16  ;;  %v3171_v15 = vcombine.low %v2971_v6, %v2987_v10  ;;  %v3175_v6 = vcombine.low %v468_v1, %v468_v1 }
  0x47   : > { %v1733_v29 = vrot.slane %v1731_v14, 1  ;;  %v1759_v30 = vshll.u32 %v3171_v15, 16  ;;  %v3177_v14 = vcombine.low %v470_v12, %v470_v12 }
  0x49   : > { %763 = vrot.lane.b32.xlu1 %v3404_v16, %s3639_s14  ;;  %761 = vrot.lane.b32.xlu0 %v3405_v18, %s3639_s14  ;;  %v2969_v16 = vld [vmem:[%s3817_s24 + $0x138] sm:$0xf]  ;;  %v849_v18 = vor.u32 %v848_v9, %v844_v8  ;;  %v1761_v43 = vrot.slane %v1759_v30, 1  ;;  %v472_v8 = vld [vmem:[%s3791_s13 + $0x20] sm:$0xf] }
  0x4a   : > { %v3169_v25 = vcombine.low %v2969_v16, %v2985_v17  ;;  %v469_v9 = vld [vmem:[%s3791_s13 + $0x8] sm:$0xf]  ;;  %v3179_v10 = vcombine.low %v472_v8, %v472_v8  ;;  %v474_v16 = vld [vmem:[%s3791_s13 + $0x30] sm:$0xf]  ;;  %v471_v17 = vld [vmem:[%s3791_s13 + $0x18] sm:$0xf] }
  0x4b   : > { %v3176_v11 = vcombine.low %v469_v9, %v469_v9  ;;  %v3178_v20 = vcombine.low %v471_v17, %v471_v17  ;;  %v489_v30 = vld [vmem:[%s3791_s13 + $0x24] sm:$0x1]  ;;  %v3192_v39 = vcombine.low %v469_v9, %v486_v32  ;;  %v2999_v32 = vld [vmem:[%s3791_s13 + $0x90] sm:$0xf] }
  0x4c   : > { %v1745_v38 = vshll.u32 %v3169_v25, 16  ;;  %v1743_v49 = vshrl.u32 %v3169_v25, 16 }
  0x4d   : > { %767 = vrot.lane.b32.xlu1 %v3406_v22, %s3639_s14  ;;  %765 = vrot.lane.b32.xlu0 %v3407_v24, %s3639_s14  ;;  %v2988_v22 = vld [vmem:[%s3817_s24 + $0x154] sm:$0x1]  ;;  %v1729_v24 = vshrl.u32 %v3167_v5, 16 }
  0x4e   : > { %v1747_v55 = vrot.slane %v1745_v38, 1 }
  0x51   : > { %771 = vrot.lane.b32.xlu1 %v3408_v28, %s3639_s14  ;;  %769 = vrot.lane.b32.xlu0 %v3409_v31, %s3639_s14  ;;  %v3088_v28 = vcombine.low %v3836_v19, %v3836_v19  ;;  %v3172_v31 = vcombine.low %v2972_v21, %v2988_v22  ;;  %v475_v21 = vld [vmem:[%s3791_s13 + $0x38] sm:$0xf]  ;;  %v3440_v22 = vld [vmem:[%s3791_s13 + $0x48] ss:$0 sps:$4 sm:$0xff]  }
  0x52   : > { %v3182_v25 = vcombine.low %v475_v21, %v475_v21 }
  0x53   : > { %v1766_v44 = vshll.u32 %v3172_v31, 16  ;;  %v1764_v50 = vshrl.u32 %v3172_v31, 16  ;;  %v3444_v31 = vld [vmem:[%s3791_s13 + $0x50] ss:$0 sps:$4 sm:$0xff]  }
  0x55   : > { %775 = vrot.lane.b32.xlu1 %v3410_v37, %s3639_s14  ;;  %773 = vrot.lane.b32.xlu0 %v3411_v42, %s3639_s14  ;;  %v1757_v37 = vshrl.u32 %v3171_v15, 16  ;;  %v1734_v42 = vor.u32 %v1733_v29, %v1729_v24  ;;  %v1768_v56 = vrot.slane %v1766_v44, 1  ;;  %v485_v24 = vld [vmem:[%s3791_s13 + $0x4] sm:$0x1]  ;;  %v3443_v29 = vld [vmem:[%s3791_s13 + $0x68] ss:$0 sps:$4 sm:$0xff]  }
  0x56   : > { %v491_v44 = vld [vmem:[%s3791_s13 + $0x34] sm:$0x1] }
  0x57   : > { %v1762_v54 = vor.u32 %v1761_v43, %v1757_v37  ;;  %v1769_v0 = vor.u32 %v1768_v56, %v1764_v50  ;;  %v3445_v37 = vld [vmem:[%s3791_s13 + $0x58] ss:$0 sps:$4 sm:$0xff]   ;;  %v3197_v56 = vcombine.low %v474_v16, %v491_v44 }
  0x59   : > { %859 = vrot.lane.b32.xlu1 %v814_v48, %s3640_s25  ;;  %857 = vrot.lane.b32.xlu0 %v807_v52, %s3640_s25  ;;  %v1740_v48 = vrot.slane %v1738_v35, 1  ;;  %v1752_v52 = vshll.u32 %v3170_v40, 16  ;;  %v3195_v35 = vcombine.low %v472_v8, %v489_v30  ;;  %v487_v40 = vld [vmem:[%s3791_s13 + $0x14] sm:$0x1] }
  0x5b   : > { %v1741_v58 = vor.u32 %v1740_v48, %v1736_v47  ;;  %v1754_v61 = vrot.slane %v1752_v52, 1  ;;  %v3447_v47 = vld [vmem:[%s3791_s13 + $0x78] ss:$0 sps:$4 sm:$0xff]   ;;  %v1935_v50 = vshll.u32 %v3195_v35, 16  ;;  %v3448_v52 = vld [vmem:[%s3791_s13 + $0x60] ss:$0 sps:$4 sm:$0xff]  }
  0x5d   : > { %863 = vrot.lane.b32.xlu1 %v828_v59, %s3640_s25  ;;  %861 = vrot.lane.b32.xlu0 %v821_v63, %s3640_s25  ;;  %v1775_v59 = vrot.slane %v1773_v51, 1  ;;  %v1748_v63 = vor.u32 %v1747_v55, %v1743_v49  ;;  %v1755_v5 = vor.u32 %v1754_v61, %v1750_v60  ;;  %v1933_v60 = vshrl.u32 %v3195_v35, 16 }
  0x5e   : > { %v1937_v61 = vrot.slane %v1935_v50, 1  ;;  %v3001_v50 = vld [vmem:[%s3791_s13 + $0xa0] sm:$0xf] }
  0x5f   : > { %v1776_v4 = vor.u32 %v1775_v59, %v1771_v57 }
  0x61   : > { %867 = vrot.lane.b32.xlu1 %v842_v2, %s3640_s25  ;;  %865 = vrot.lane.b32.xlu0 %v835_v7, %s3640_s25  ;;  %v1778_v2 = vshrl.u32 %v3174_v53, 16  ;;  %v1914_v53 = vshll.u32 %v3192_v39, 16 }
  0x63   : > { %v1783_v7 = vor.u32 %v1782_v3, %v1778_v2  ;;  %v1916_v2 = vrot.slane %v1914_v53, 1 }
  0x65   : > { %871 = vrot.lane.b32.xlu1 %v856_v13, %s3640_s25  ;;  %869 = vrot.lane.b32.xlu0 %v849_v18, %s3640_s25  ;;  %v473_v13 = vld [vmem:[%s3791_s13 + $0x28] sm:$0xf]  ;;  %v3181_v18 = vcombine.low %v474_v16, %v474_v16 }
  0x66   : > { %v3180_v15 = vcombine.low %v473_v13, %v473_v13 }
  0x69   : > { %899 = vrot.lane.b32.xlu1 %v3088_v28, %s3641_s26  ;;  %897 = vrot.lane.b32.xlu0 %v3087_v34, %s3641_s26  ;;  %v3191_v28 = vcombine.low %v468_v1, %v485_v24  ;;  %v1912_v1 = vshrl.u32 %v3192_v39, 16 }
  0x6b   : > { %v1907_v38 = vshll.u32 %v3191_v28, 16  ;;  %v1905_v48 = vshrl.u32 %v3191_v28, 16 }
  0x6d   : > { %1784 = vrot.lane.b32.xlu1 %v1734_v42, %s3636_s30  ;;  %901 = vrot.lane.b32.xlu0 %v3089_v46, %s3641_s26  ;;  %v490_v42 = vld [vmem:[%s3791_s13 + $0x2c] sm:$0x1]  ;;  %v3193_v46 = vcombine.low %v470_v12, %v487_v40  ;;  %v1909_v49 = vrot.slane %v1907_v38, 1  ;;  %v3199_v40 = vcombine.low %v2999_v32, %v2999_v32 }
  0x6e   : > { %v3196_v51 = vcombine.low %v473_v13, %v490_v42  ;;  %v3003_v42 = vld [vmem:[%s3791_s13 + $0xb0] sm:$0xf] }
  0x6f   : > { %v1910_v59 = vor.u32 %v1909_v49, %v1905_v48  ;;  %v1921_v62 = vshll.u32 %v3193_v46, 16  ;;  %v1919_v8 = vshrl.u32 %v3193_v46, 16  ;;  %v3000_v46 = vld [vmem:[%s3791_s13 + $0x98] sm:$0xf]  ;;  %v3203_v48 = vcombine.low %v3003_v42, %v3003_v42 }
  0x70   : > { %v1942_v3 = vshll.u32 %v3196_v51, 16  ;;  %v1940_v12 = vshrl.u32 %v3196_v51, 16  ;;  %v3200_v49 = vcombine.low %v3000_v46, %v3000_v46 }
  0x71   : > { %1792 = vrot.lane.b32.xlu1 %v1762_v54, %s3636_s30  ;;  %1786 = vrot.lane.b32.xlu0 %v1741_v58, %s3636_s30  ;;  %v488_v54 = vld [vmem:[%s3791_s13 + $0x1c] sm:$0x1]  ;;  %v1923_v9 = vrot.slane %v1921_v62, 1 }
  0x72   : > { %v492_v58 = vld [vmem:[%s3791_s13 + $0x3c] sm:$0x1]  ;;  %v1944_v13 = vrot.slane %v1942_v3, 1  ;;  %v3464_v3 = vld [vmem:[%s3791_s13 + $0xd8] ss:$0 sps:$4 sm:$0xff]  }
  0x75   : > { %1788 = vrot.lane.b32.xlu1 %v1748_v63, %s3636_s30  ;;  %1794 = vrot.lane.b32.xlu0 %v1769_v0, %s3636_s30  ;;  %v3194_v63 = vcombine.low %v471_v17, %v488_v54  ;;  %v3449_v0 = vld [vmem:[%s3791_s13 + $0x80] ss:$0 sps:$4 sm:$0xff]   ;;  %v1924_v17 = vor.u32 %v1923_v9, %v1919_v8  ;;  %v3201_v54 = vcombine.low %v3001_v50, %v3001_v50 }
  0x79   : > { %1796 = vrot.lane.b32.xlu1 %v1776_v4, %s3636_s30  ;;  %1790 = vrot.lane.b32.xlu0 %v1755_v5, %s3636_s30  ;;  %v3198_v5 = vcombine.low %v475_v21, %v492_v58  ;;  %v1945_v21 = vor.u32 %v1944_v13, %v1940_v12  ;;  %v3005_v58 = vld [vmem:[%s3791_s13 + $0xc0] sm:$0xf]  ;;  %v3019_v12 = vld [vmem:[%s3791_s13 + $0xb4] sm:$0x1] }
  0x7a   : > { %v3205_v62 = vcombine.low %v3005_v58, %v3005_v58  ;;  %v3468_v13 = vld [vmem:[%s3791_s13 + $0xe0] ss:$0 sps:$4 sm:$0xff]  }
  0x7b   : > { %v1954_v35 = vshrl.u32 %v3198_v5, 16 }
  0x7d   : > { %1824 = vrot.lane.b32.xlu1 %v3175_v6, %s3637_s5  ;;  %1798 = vrot.lane.b32.xlu0 %v1783_v7, %s3636_s30  ;;  %v1938_v7 = vor.u32 %v1937_v61, %v1933_v60  ;;  %v3002_v60 = vld [vmem:[%s3791_s13 + $0xa8] sm:$0xf]  ;;  %s3644_s30 = smov 36  }
  0x81   : > { %1832 = vrot.lane.b32.xlu1 %v3179_v10, %s3637_s5  ;;  %1826 = vrot.lane.b32.xlu0 %v3176_v11, %s3637_s5  ;;  %v1949_v10 = vshll.u32 %v3197_v56, 16  ;;  %v1917_v11 = vor.u32 %v1916_v2, %v1912_v1  ;;  %v3006_v1 = vld [vmem:[%s3791_s13 + $0xc8] sm:$0xf] }
  0x85   : > { %1828 = vrot.lane.b32.xlu1 %v3177_v14, %s3637_s5  ;;  %1834 = vrot.lane.b32.xlu0 %v3180_v15, %s3637_s5  ;;  %v1928_v14 = vshll.u32 %v3194_v63, 16 }
  0x87   : > { %v1930_v24 = vrot.slane %v1928_v14, 1  ;;  %v3016_v14 = vld [vmem:[%s3791_s13 + $0x9c] sm:$0x1] }
  0x89   : > { %1836 = vrot.lane.b32.xlu1 %v3181_v18, %s3637_s5  ;;  %1830 = vrot.lane.b32.xlu0 %v3178_v20, %s3637_s5  ;;  %v1947_v18 = vshrl.u32 %v3197_v56, 16  ;;  %v1951_v20 = vrot.slane %v1949_v10, 1 }
  0x8b   : > { %v3888_v26 = vpop.permute.xlu1 %573  ;;  %v3890_v27 = vpop.permute.xlu0 %569  ;;  %v1952_v30 = vor.u32 %v1951_v20, %v1947_v18  ;;  %v3219_v20 = vcombine.low %v3003_v42, %v3019_v12 }
  0x8d   : > { %1864 = vrot.lane.b32.xlu1 %v3440_v22, %s3638_s7  ;;  %1838 = vrot.lane.b32.xlu0 %v3182_v25, %s3637_s5  ;;  %v1926_v22 = vshrl.u32 %v3194_v63, 16  ;;  %v1956_v25 = vshll.u32 %v3198_v5, 16  ;;  %v3202_v63 = vcombine.low %v3002_v60, %v3002_v60  ;;  %v3015_v5 = vld [vmem:[%s3791_s13 + $0x94] sm:$0x1]  ;;  %s3645_s5 = smov 40  }
  0x8e   : > { %v3215_v10 = vcombine.low %v2999_v32, %v3015_v5 }
  0x8f   : > { %v3898_v33 = vpop.permute.xlu1 %575  ;;  %v3900_v34 = vpop.permute.xlu0 %571 }
  0x90   : > { %v2081_v42 = vshrl.u32 %v3215_v10, 16 }
  0x91   : > { %1872 = vrot.lane.b32.xlu1 %v3443_v29, %s3638_s7  ;;  %1866 = vrot.lane.b32.xlu0 %v3444_v31, %s3638_s7  ;;  %v1931_v31 = vor.u32 %v1930_v24, %v1926_v22  ;;  %v2083_v22 = vshll.u32 %v3215_v10, 16  ;;  %v3216_v24 = vcombine.low %v3000_v46, %v3016_v14  ;;  %v2111_v46 = vshll.u32 %v3219_v20, 16 }
  0x93   : > { %v3908_v43 = vpop.permute.xlu1 %579  ;;  %v3911_v45 = vpop.permute.xlu0 %577  ;;  %v2113_v10 = vrot.slane %v2111_v46, 1  ;;  %v2088_v14 = vshrl.u32 %v3216_v24, 16 }
  0x95   : > { %1868 = vrot.lane.b32.xlu1 %v3445_v37, %s3638_s7  ;;  %1874 = vrot.lane.b32.xlu0 %v3446_v41, %s3638_s7  ;;  %v1958_v37 = vrot.slane %v1956_v25, 1  ;;  %v3017_v25 = vld [vmem:[%s3791_s13 + $0xa4] sm:$0x1] }
  0x97   : > { %v3918_v55 = vpop.permute.xlu1 %583  ;;  %v3920_v57 = vpop.permute.xlu0 %581  ;;  %v1959_v41 = vor.u32 %v1958_v37, %v1954_v35  ;;  %v3021_v35 = vld [vmem:[%s3791_s13 + $0xc4] sm:$0x1] }
  0x99   : > { %1876 = vrot.lane.b32.xlu1 %v3447_v47, %s3638_s7  ;;  %1870 = vrot.lane.b32.xlu0 %v3448_v52, %s3638_s7  ;;  %v3004_v52 = vld [vmem:[%s3791_s13 + $0xb8] sm:$0xf] }
  0x9a   : > { %v3204_v56 = vcombine.low %v3004_v52, %v3004_v52 }
  0x9b   : > { %v3926_v4 = vpop.permute.xlu1 %683  ;;  %v3928_v6 = vpop.permute.xlu0 %681 }
  0x9d   : > { %1960 = vrot.lane.b32.xlu1 %v1910_v59, %s3639_s14  ;;  %1878 = vrot.lane.b32.xlu0 %v3449_v0, %s3638_s7  ;;  %s3647_s7 = smov 48  }
  0x9f   : > { %v3932_v15 = vpop.permute.xlu1 %687  ;;  %v3934_v16 = vpop.permute.xlu0 %685 }
  0xa1   : > { %1968 = vrot.lane.b32.xlu1 %v1938_v7, %s3639_s14  ;;  %1962 = vrot.lane.b32.xlu0 %v1917_v11, %s3639_s14  ;;  %v3206_v7 = vcombine.low %v3006_v1, %v3006_v1  ;;  %v3467_v11 = vld [vmem:[%s3791_s13 + $0xf8] ss:$0 sps:$4 sm:$0xff]  }
  0xa3   : > { %v3938_v28 = vpop.permute.xlu1 %691  ;;  %v3940_v29 = vpop.permute.xlu0 %689 }
  0xa5   : > { %1964 = vrot.lane.b32.xlu1 %v1924_v17, %s3639_s14  ;;  %1970 = vrot.lane.b32.xlu0 %v1945_v21, %s3639_s14  ;;  %v3469_v21 = vld [vmem:[%s3791_s13 + $0xe8] ss:$0 sps:$4 sm:$0xff]  }
  0xa7   : > { %v3945_v38 = vpop.permute.xlu1 %695  ;;  %v3947_v39 = vpop.permute.xlu0 %693 }
  0xa9   : > { %1972 = vrot.lane.b32.xlu1 %v1952_v30, %s3639_s14  ;;  %1966 = vrot.lane.b32.xlu0 %v1931_v31, %s3639_s14  ;;  %v3470_v30 = vld [vmem:[%s3791_s13 + $0x100] ss:$0 sps:$4 sm:$0xff]   ;;  %v3020_v31 = vld [vmem:[%s3791_s13 + $0xbc] sm:$0x1] }
  0xab   : > { %v3952_v44 = vpop.permute.xlu1 %723  ;;  %v3955_v47 = vpop.permute.xlu0 %721 }
  0xad   : > { %2000 = vrot.lane.b32.xlu1 %v3199_v40, %s3640_s25  ;;  %1974 = vrot.lane.b32.xlu0 %v1959_v41, %s3639_s14  ;;  %v3217_v40 = vcombine.low %v3001_v50, %v3017_v25  ;;  %v3471_v41 = vld [vmem:[%s3791_s13 + $0x108] ss:$0 sps:$4 sm:$0xff]  }
  0xaf   : > { %v3960_v51 = vpop.permute.xlu1 %727  ;;  %v3963_v53 = vpop.permute.xlu0 %725  ;;  %v2097_v12 = vshll.u32 %v3217_v40, 16 }
  0xb1   : > { %2008 = vrot.lane.b32.xlu1 %v3203_v48, %s3640_s25  ;;  %2002 = vrot.lane.b32.xlu0 %v3200_v49, %s3640_s25  ;;  %v2085_v48 = vrot.slane %v2083_v22, 1  ;;  %v3220_v49 = vcombine.low %v3004_v52, %v3020_v31  ;;  %v3473_v52 = vld [vmem:[%s3791_s13 + $0x110] ss:$0 sps:$4 sm:$0xff]  }
  0xb3   : > { %v3968_v59 = vpop.permute.xlu1 %731  ;;  %v3971_v61 = vpop.permute.xlu0 %729  ;;  %v2086_v50 = vor.u32 %v2085_v48, %v2081_v42  ;;  %v2118_v22 = vshll.u32 %v3220_v49, 16  ;;  %v2116_v42 = vshrl.u32 %v3220_v49, 16 }
  0xb5   : > { %2004 = vrot.lane.b32.xlu1 %v3201_v54, %s3640_s25  ;;  %2010 = vrot.lane.b32.xlu0 %v3204_v56, %s3640_s25  ;;  %v3472_v54 = vld [vmem:[%s3791_s13 + $0xf0] ss:$0 sps:$4 sm:$0xff]   ;;  %v2090_v56 = vshll.u32 %v3216_v24, 16  ;;  %v2120_v48 = vrot.slane %v2118_v22, 1 }
  0xb7   : > { %v3975_v0 = vpop.permute.xlu1 %735  ;;  %v3978_v2 = vpop.permute.xlu0 %733 }
  0xb9   : > { %2012 = vrot.lane.b32.xlu1 %v3205_v62, %s3640_s25  ;;  %2006 = vrot.lane.b32.xlu0 %v3202_v63, %s3640_s25  ;;  %v3018_v62 = vld [vmem:[%s3791_s13 + $0xac] sm:$0x1] }
  0xbb   : > { %v3984_v8 = vpop.permute.xlu1 %763  ;;  %v3986_v9 = vpop.permute.xlu0 %761 }
  0xbd   : > { %2040 = vrot.lane.b32.xlu1 %v3464_v3, %s3641_s26  ;;  %2014 = vrot.lane.b32.xlu0 %v3206_v7, %s3640_s25  ;;  %v3221_v3 = vcombine.low %v3005_v58, %v3021_v35  ;;  %v3022_v7 = vld [vmem:[%s3791_s13 + $0xcc] sm:$0x1]  ;;  %v2095_v35 = vshrl.u32 %v3217_v40, 16  ;;  %v2121_v40 = vor.u32 %v2120_v48, %v2116_v42 }
  0xbf   : > { %v3994_v17 = vpop.permute.xlu1 %767  ;;  %v3996_v18 = vpop.permute.xlu0 %765 }
  0xc1   : > { %2048 = vrot.lane.b32.xlu1 %v3467_v11, %s3641_s26  ;;  %2042 = vrot.lane.b32.xlu0 %v3468_v13, %s3641_s26  ;;  %v2109_v11 = vshrl.u32 %v3219_v20, 16  ;;  %v3218_v13 = vcombine.low %v3002_v60, %v3018_v62  ;;  %v2099_v20 = vrot.slane %v2097_v12, 1 }
  0xc3   : > { %v4004_v32 = vpop.permute.xlu1 %771  ;;  %v4007_v37 = vpop.permute.xlu0 %769  ;;  %v2114_v31 = vor.u32 %v2113_v10, %v2109_v11  ;;  %v2104_v24 = vshll.u32 %v3218_v13, 16 }
  0xc5   : > { %2044 = vrot.lane.b32.xlu1 %v3469_v21, %s3641_s26  ;;  %2050 = vrot.lane.b32.xlu0 %v3470_v30, %s3641_s26  ;;  %v2092_v21 = vrot.slane %v2090_v56, 1  ;;  %v3222_v30 = vcombine.low %v3006_v1, %v3022_v7  ;;  %v2100_v1 = vor.u32 %v2099_v20, %v2095_v35  ;;  %v2123_v56 = vshrl.u32 %v3221_v3, 16  ;;  %v3027_v20 = vld [vmem:[%s3791_s13 + $0x28] sm:$0xf] }
  0xc6   : > { %v2106_v11 = vrot.slane %v2104_v24, 1  ;;  %v3227_v42 = vcombine.low %v3027_v20, %v3027_v20  ;;  %v3025_v24 = vld [vmem:[%s3791_s13 + $0x18] sm:$0xf] }
  0xc7   : > { %v4014_v63 = vpop.permute.xlu1 %775  ;;  %v4016_v5 = vpop.permute.xlu0 %773  ;;  %v2093_v60 = vor.u32 %v2092_v21, %v2088_v14  ;;  %v2132_v7 = vshll.u32 %v3222_v30, 16  ;;  %v3023_v21 = vld [vmem:[%s3791_s13 + $0x8] sm:$0xf] }
  0xc9   : > { %2052 = vrot.lane.b32.xlu1 %v3471_v41, %s3641_s26  ;;  %2046 = vrot.lane.b32.xlu0 %v3472_v54, %s3641_s26  ;;  %v2125_v41 = vshll.u32 %v3221_v3, 16  ;;  %v2134_v14 = vrot.slane %v2132_v7, 1  ;;  %v3225_v7 = vcombine.low %v3025_v24, %v3025_v24 }
  0xcb   : > { %v4022_v25 = vpop.permute.xlu1 %859  ;;  %v4024_v58 = vpop.permute.xlu0 %857  ;;  %v2127_v62 = vrot.slane %v2125_v41, 1 }
  0xcc   : > { %4981 = vst [vmem:[#allocation2_spill] sm:$0xff] %v4022_v25  ;;  %4982 = vst [vmem:[#allocation3_spill] sm:$0xff] %v4024_v58 }
  0xcd   : > { %2136 = vrot.lane.b32.xlu1 %v2086_v50, %s3642_s27  ;;  %2054 = vrot.lane.b32.xlu0 %v3473_v52, %s3641_s26  ;;  %v2102_v50 = vshrl.u32 %v3218_v13, 16  ;;  %v2128_v12 = vor.u32 %v2127_v62, %v2123_v56  ;;  %v2130_v52 = vshrl.u32 %v3222_v30, 16  ;;  %v3024_v30 = vld [vmem:[%s3791_s13 + $0x10] sm:$0xf] }
  0xce   : > { %v3224_v48 = vcombine.low %v3024_v30, %v3024_v30  ;;  %v3028_v56 = vld [vmem:[%s3791_s13 + $0x30] sm:$0xf] }
  0xcf   : > { %v4028_v46 = vpop.permute.xlu1 %863  ;;  %v4030_v54 = vpop.permute.xlu0 %861  ;;  %v2107_v3 = vor.u32 %v2106_v11, %v2102_v50  ;;  %v2135_v35 = vor.u32 %v2134_v14, %v2130_v52  ;;  %v3029_v50 = vld [vmem:[%s3791_s13 + $0x38] sm:$0xf] }
  0xd0   : > { %4983 = vst [vmem:[#allocation4_spill] sm:$0xff] %v4028_v46  ;;  %4984 = vst [vmem:[#allocation5_spill] sm:$0xff] %v4030_v54  ;;  %v3229_v14 = vcombine.low %v3029_v50, %v3029_v50 }
  0xd1   : > { %2144 = vrot.lane.b32.xlu1 %v2114_v31, %s3642_s27  ;;  %2138 = vrot.lane.b32.xlu0 %v2093_v60, %s3642_s27  ;;  %v3223_v31 = vcombine.low %v3023_v21, %v3023_v21 }
  0xd3   : > { %v4034_v49 = vpop.permute.xlu1 %867  ;;  %v4036_v10 = vpop.permute.xlu0 %865 }
  0xd4   : > { %4985 = vst [vmem:[#allocation6_spill] sm:$0xff] %v4034_v49  ;;  %4986 = vst [vmem:[#allocation7_spill] sm:$0xff] %v4036_v10  ;;  %v3042_v49 = vld [vmem:[%s3791_s13 + $0x24] sm:$0x1] }
  0xd5   : > { %2140 = vrot.lane.b32.xlu1 %v2100_v1, %s3642_s27  ;;  %2146 = vrot.lane.b32.xlu0 %v2121_v40, %s3642_s27  ;;  %v3228_v40 = vcombine.low %v3028_v56, %v3028_v56 }
  0xd7   : > { %v4041_v22 = vpop.permute.xlu1 %871  ;;  %v4043_v13 = vpop.permute.xlu0 %869 }
  0xd8   : > { %4987 = vst [vmem:[#allocation8_spill] sm:$0xff] %v4041_v22  ;;  %4988 = vst [vmem:[#allocation9_spill] sm:$0xff] %v4043_v13  ;;  %v3045_v22 = vld [vmem:[%s3791_s13 + $0x3c] sm:$0x1] }
  0xd9   : > { %2148 = vrot.lane.b32.xlu1 %v2128_v12, %s3642_s27  ;;  %2142 = vrot.lane.b32.xlu0 %v2107_v3, %s3642_s27  ;;  %v3026_v12 = vld [vmem:[%s3791_s13 + $0x20] sm:$0xf] }
  0xda   : > { %v3226_v3 = vcombine.low %v3026_v12, %v3026_v12 }
  0xdb   : > { %v4048_v41 = vpop.permute.xlu1 %899  ;;  %v4051_v60 = vpop.permute.xlu0 %897 }
  0xdc   : > { %4989 = vst [vmem:[#allocation10_spill] sm:$0xff] %v4048_v41  ;;  %4990 = vst [vmem:[#allocation11_spill] sm:$0xff] %v4051_v60  ;;  %v3494_v41 = vld [vmem:[%s3791_s13 + $0x78] ss:$0 sps:$4 sm:$0xff]  }
  0xdd   : > { %2176 = vrot.lane.b32.xlu1 %v3223_v31, %s3643_s28  ;;  %2150 = vrot.lane.b32.xlu0 %v2135_v35, %s3642_s27  ;;  %v3030_v35 = vld [vmem:[%s3791_s13 + $0x40] sm:$0xf] }
  0xdf   : > { %v4056_v1 = vpop.permute.xlu1 %1784  ;;  %v4059_v62 = vpop.permute.xlu0 %901 }
  0xe0   : > { %4991 = vst [vmem:[#allocation12_spill] sm:$0xff] %v4056_v1  ;;  %4992 = vst [vmem:[#allocation13_spill] sm:$0xff] %v4059_v62 }
  0xe1   : > { %2184 = vrot.lane.b32.xlu1 %v3227_v42, %s3643_s28  ;;  %2178 = vrot.lane.b32.xlu0 %v3224_v48, %s3643_s28  ;;  %v3488_v48 = vld [vmem:[%s3791_s13 + $0x50] ss:$0 sps:$4 sm:$0xff]  }
  0xe3   : > { %v4064_v11 = vpop.permute.xlu1 %1792  ;;  %v4067_v52 = vpop.permute.xlu0 %1786 }
  0xe4   : > { %4993 = vst [vmem:[#allocation14_spill] sm:$0xff] %v4064_v11  ;;  %4994 = vst [vmem:[#allocation15_spill] sm:$0xff] %v4067_v52  ;;  %v3039_v11 = vld [vmem:[%s3791_s13 + $0xc] sm:$0x1] }
  0xe5   : > { %2180 = vrot.lane.b32.xlu1 %v3225_v7, %s3643_s28  ;;  %2186 = vrot.lane.b32.xlu0 %v3228_v40, %s3643_s28  ;;  %v3230_v7 = vcombine.low %v3030_v35, %v3030_v35  ;;  %v3239_v62 = vcombine.low %v3023_v21, %v3039_v11  ;;  %v3493_v21 = vld [vmem:[%s3791_s13 + $0x60] ss:$0 sps:$4 sm:$0xff]  }
  0xe7   : > { %v4071_v31 = vpop.permute.xlu1 %1788  ;;  %v4074_v42 = vpop.permute.xlu0 %1794  ;;  %v2259_v11 = vshll.u32 %v3239_v62, 16 }
  0xe8   : > { %4995 = vst [vmem:[#allocation16_spill] sm:$0xff] %v4071_v31  ;;  %4996 = vst [vmem:[#allocation17_spill] sm:$0xff] %v4074_v42  ;;  %v3491_v42 = vld [vmem:[%s3791_s13 + $0x70] ss:$0 sps:$4 sm:$0xff]   ;;  %v3043_v31 = vld [vmem:[%s3791_s13 + $0x2c] sm:$0x1] }
  0xe9   : > { %2188 = vrot.lane.b32.xlu1 %v3229_v14, %s3643_s28  ;;  %2182 = vrot.lane.b32.xlu0 %v3226_v3, %s3643_s28  ;;  %v3492_v14 = vld [vmem:[%s3791_s13 + $0x58] ss:$0 sps:$4 sm:$0xff]   ;;  %v3040_v3 = vld [vmem:[%s3791_s13 + $0x14] sm:$0x1] }
  0xea   : > { %v3240_v60 = vcombine.low %v3024_v30, %v3040_v3 }
  0xeb   : > { %v4080_v52 = vpop.permute.xlu1 %1796  ;;  %v4082_v40 = vpop.permute.xlu0 %1790 }
  0xec   : > { %4997 = vst [vmem:[#allocation18_spill] sm:$0xff] %v4080_v52  ;;  %4998 = vst [vmem:[#allocation19_spill] sm:$0xff] %v4082_v40  ;;  %v3243_v40 = vcombine.low %v3027_v20, %v3043_v31  ;;  %v3495_v20 = vld [vmem:[%s3791_s13 + $0x80] ss:$0 sps:$4 sm:$0xff]   ;;  %v2257_v31 = vshrl.u32 %v3239_v62, 16  ;;  %v2266_v10 = vshll.u32 %v3240_v60, 16 }
  0xed   : > { %2216 = vrot.lane.b32.xlu1 %v3488_v48, %s3644_s30  ;;  %2190 = vrot.lane.b32.xlu0 %v3230_v7, %s3643_s28  ;;  %v3041_v48 = vld [vmem:[%s3791_s13 + $0x1c] sm:$0x1]  ;;  %v3044_v7 = vld [vmem:[%s3791_s13 + $0x34] sm:$0x1] }
  0xee   : > { %v2287_v30 = vshll.u32 %v3243_v40, 16  ;;  %v3244_v3 = vcombine.low %v3028_v56, %v3044_v7  ;;  %v3497_v56 = vld [vmem:[%s3791_s13 + $0x88] ss:$0 sps:$4 sm:$0xff]   ;;  %v2268_v7 = vrot.slane %v2266_v10, 1 }
  0xef   : > { %v4090_v1 = vpop.permute.xlu1 %1824  ;;  %v4092_v52 = vpop.permute.xlu0 %1798 }
  0xf0   : > { %4999 = vst [vmem:[#allocation20_spill] sm:$0xff] %v4090_v1  ;;  %5000 = vst [vmem:[#allocation21_spill] sm:$0xff] %v4092_v52  ;;  %v3241_v52 = vcombine.low %v3025_v24, %v3041_v48  ;;  %v2289_v62 = vrot.slane %v2287_v30, 1  ;;  %v3242_v48 = vcombine.low %v3026_v12, %v3042_v49  ;;  %v2294_v58 = vshll.u32 %v3244_v3, 16 }
  0xf1   : > { %2224 = vrot.lane.b32.xlu1 %v3491_v42, %s3644_s30  ;;  %2218 = vrot.lane.b32.xlu0 %v3492_v14, %s3644_s30  ;;  %v2261_v42 = vrot.slane %v2259_v11, 1  ;;  %v3496_v14 = vld [vmem:[%s3791_s13 + $0x68] ss:$0 sps:$4 sm:$0xff]   ;;  %v2292_v12 = vshrl.u32 %v3244_v3, 16 }
  0xf2   : > { %v2273_v11 = vshll.u32 %v3241_v52, 16 }
  0xf3   : > { %v4100_v13 = vpop.permute.xlu1 %1832  ;;  %v4103_v1 = vpop.permute.xlu0 %1826  ;;  %v2262_v24 = vor.u32 %v2261_v42, %v2257_v31  ;;  %v2296_v42 = vrot.slane %v2294_v58, 1 }
  0xf4   : > { %5001 = vst [vmem:[#allocation22_spill] sm:$0xff] %v4100_v13  ;;  %5002 = vst [vmem:[#allocation23_spill] sm:$0xff] %v4103_v1  ;;  %v3245_v13 = vcombine.low %v3029_v50, %v3045_v22  ;;  %v3046_v1 = vld [vmem:[%s3791_s13 + $0x44] sm:$0x1] }
  0xf5   : > { %2220 = vrot.lane.b32.xlu1 %v3493_v21, %s3644_s30  ;;  %2226 = vrot.lane.b32.xlu0 %v3494_v41, %s3644_s30  ;;  %v2285_v21 = vshrl.u32 %v3243_v40, 16  ;;  %v2264_v41 = vshrl.u32 %v3240_v60, 16  ;;  %v2275_v40 = vrot.slane %v2273_v11, 1  ;;  %v2280_v60 = vshll.u32 %v3242_v48, 16 }
  0xf6   : > { %v2301_v31 = vshll.u32 %v3245_v13, 16 }
  0xf7   : > { %v4110_v54 = vpop.permute.xlu1 %1828  ;;  %v4112_v46 = vpop.permute.xlu0 %1834  ;;  %v2290_v50 = vor.u32 %v2289_v62, %v2285_v21  ;;  %v2269_v49 = vor.u32 %v2268_v7, %v2264_v41  ;;  %v2282_v21 = vrot.slane %v2280_v60, 1 }
  0xf8   : > { %5003 = vst [vmem:[#allocation24_spill] sm:$0xff] %v4110_v54  ;;  %v3246_v54 = vcombine.low %v3030_v35, %v3046_v1  ;;  %v2299_v35 = vshrl.u32 %v3245_v13, 16  ;;  %v2899_v13 = vld [vmem:[%s3724_s29 + $0x28] sm:$0xf] }
  0xf9   : > { %2228 = vrot.lane.b32.xlu1 %v3495_v20, %s3644_s30  ;;  %2222 = vrot.lane.b32.xlu0 %v3496_v14, %s3644_s30  ;;  %v2271_v20 = vshrl.u32 %v3241_v52, 16  ;;  %v2303_v14 = vrot.slane %v2301_v31, 1  ;;  %v2297_v52 = vor.u32 %v2296_v42, %v2292_v12  ;;  %v2898_v31 = vld [vmem:[%s3724_s29 + $0x20] sm:$0xf]  ;;  %v2900_v12 = vld [vmem:[%s3724_s29 + $0x30] sm:$0xf] }
  0xfa   : > { %v2308_v62 = vshll.u32 %v3246_v54, 16  ;;  %v2306_v41 = vshrl.u32 %v3246_v54, 16  ;;  %v3090_v54 = vcombine.low %v2898_v31, %v2898_v31  ;;  %v3092_v60 = vcombine.low %v2900_v12, %v2900_v12 }
  0xfb   : > { %v4118_v25 = vpop.permute.xlu1 %1836  ;;  %v4120_v22 = vpop.permute.xlu0 %1830  ;;  %v2276_v1 = vor.u32 %v2275_v40, %v2271_v20  ;;  %v2304_v11 = vor.u32 %v2303_v14, %v2299_v35  ;;  %v3091_v20 = vcombine.low %v2899_v13, %v2899_v13  ;;  %v2901_v14 = vld [vmem:[%s3724_s29 + $0x38] sm:$0xf] }
  0xfc   : > { %5004 = vst [vmem:[#allocation25_spill] sm:$0xff] %v4118_v25  ;;  %5005 = vst [vmem:[#allocation26_spill] sm:$0xff] %v4120_v22  ;;  %v2310_v7 = vrot.slane %v2308_v62, 1 }
  0xfd   : > { %2312 = vrot.lane.b32.xlu1 %v2262_v24, %s3645_s5  ;;  %2230 = vrot.lane.b32.xlu0 %v3497_v56, %s3644_s30  ;;  %v2278_v24 = vshrl.u32 %v3242_v48, 16 }
  0xfe   : > { %v2311_v40 = vor.u32 %v2310_v7, %v2306_v41  ;;  %v2912_v41 = vld [vmem:[%s3724_s29 + $0x14] sm:$0x1]  ;;  %v3509_v7 = vld [vmem:[%s3724_s29 + $0x50] ss:$0 sps:$4 sm:$0xff]  }
  0xff   : > { %v4124_v10 = vpop.permute.xlu1 %1864  ;;  %v4126_v30 = vpop.permute.xlu0 %1838  ;;  %v2283_v56 = vor.u32 %v2282_v21, %v2278_v24  ;;  %v3093_v21 = vcombine.low %v2901_v14, %v2901_v14 }
 0x100   : > { %5006 = vst [vmem:[#allocation27_spill] sm:$0xff] %v4124_v10  ;;  %5007 = vst [vmem:[#allocation28_spill] sm:$0xff] %v4126_v30  ;;  %v2917_v30 = vld [vmem:[%s3724_s29 + $0x3c] sm:$0x1] }
 0x101   : > { %2320 = vrot.lane.b32.xlu1 %v2290_v50, %s3645_s5  ;;  %2314 = vrot.lane.b32.xlu0 %v2269_v49, %s3645_s5 }
 0x103   : > { %v4130_v3 = vpop.permute.xlu1 %1872  ;;  %v4132_v58 = vpop.permute.xlu0 %1866 }
 0x104   : > { %5008 = vst [vmem:[#allocation29_spill] sm:$0xff] %v4130_v3  ;;  %5009 = vst [vmem:[#allocation30_spill] sm:$0xff] %v4132_v58 }
 0x105   : > { %2316 = vrot.lane.b32.xlu1 %v2276_v1, %s3645_s5  ;;  %2322 = vrot.lane.b32.xlu0 %v2297_v52, %s3645_s5  ;;  %v2902_v1 = vld [vmem:[%s3724_s29 + $0x40] sm:$0xf] }
 0x106   : > { %v3094_v24 = vcombine.low %v2902_v1, %v2902_v1 }
 0x107   : > { %v4137_v50 = vpop.permute.xlu1 %1868  ;;  %v4139_v48 = vpop.permute.xlu0 %1874 }
 0x108   : > { %5010 = vst [vmem:[#allocation31_spill] sm:$0xff] %v4137_v50  ;;  %5011 = vst [vmem:[#allocation32_spill] sm:$0xff] %v4139_v48  ;;  %v2918_v50 = vld [vmem:[%s3724_s29 + $0x44] sm:$0x1] }
 0x109   : > { %2324 = vrot.lane.b32.xlu1 %v2304_v11, %s3645_s5  ;;  %2318 = vrot.lane.b32.xlu0 %v2283_v56, %s3645_s5  ;;  %v3508_v56 = vld [vmem:[%s3724_s29 + $0x58] ss:$0 sps:$4 sm:$0xff]  }
 0x10b   : > { %v4144_v49 = vpop.permute.xlu1 %1876  ;;  %v4147_v42 = vpop.permute.xlu0 %1870 }
 0x10c   : > { %5012 = vst [vmem:[#allocation33_spill] sm:$0xff] %v4144_v49  ;;  %5013 = vst [vmem:[#allocation34_spill] sm:$0xff] %v4147_v42 }
 0x10d   : > { %905 = vrot.lane.b32.xlu1 %v3091_v20, %s3641_s26  ;;  %2326 = vrot.lane.b32.xlu0 %v2311_v40, %s3645_s5  ;;  %v2911_v20 = vld [vmem:[%s3724_s29 + $0xc] sm:$0x1] }
 0x10f   : > { %v4152_v35 = vpop.permute.xlu1 %1960  ;;  %v4155_v52 = vpop.permute.xlu0 %1878 }
 0x110   : > { %5014 = vst [vmem:[#allocation35_spill] sm:$0xff] %v4152_v35  ;;  %5015 = vst [vmem:[#allocation36_spill] sm:$0xff] %v4155_v52  ;;  %v2915_v52 = vld [vmem:[%s3724_s29 + $0x2c] sm:$0x1] }
 0x111   : > { %903 = vrot.lane.b32.xlu1 %v3090_v54, %s3641_s26  ;;  %907 = vrot.lane.b32.xlu0 %v3092_v60, %s3641_s26  ;;  %v3104_v60 = vcombine.low %v3836_v19, %v2912_v41 }
 0x113   : > { %v4159_v62 = vpop.permute.xlu1 %1968  ;;  %v4161_v11 = vpop.permute.xlu0 %1962  ;;  %v987_v42 = vshll.u32 %v3104_v60, 16 }
 0x114   : > { %5016 = vst [vmem:[#allocation37_spill] sm:$0xff] %v4159_v62  ;;  %5017 = vst [vmem:[#allocation38_spill] sm:$0xff] %v4161_v11  ;;  %v3510_v11 = vld [vmem:[%s3724_s29 + $0x78] ss:$0 sps:$4 sm:$0xff]   ;;  %v2916_v62 = vld [vmem:[%s3724_s29 + $0x34] sm:$0x1] }
 0x115   : > { %911 = vrot.lane.b32.xlu1 %v3094_v24, %s3641_s26  ;;  %909 = vrot.lane.b32.xlu0 %v3093_v21, %s3641_s26  ;;  %v3103_v24 = vcombine.low %v3841_v23, %v2911_v20  ;;  %v3511_v21 = vld [vmem:[%s3724_s29 + $0x70] ss:$0 sps:$4 sm:$0xff]   ;;  %v3108_v19 = vcombine.low %v2900_v12, %v2916_v62  ;;  %v3107_v23 = vcombine.low %v2899_v13, %v2915_v52  ;;  %v2914_v20 = vld [vmem:[%s3724_s29 + $0x24] sm:$0x1]  ;;  %v989_v12 = vrot.slane %v987_v42, 1 }
 0x116   : > { %v3106_v62 = vcombine.low %v2898_v31, %v2914_v20 }
 0x117   : > { %v4169_v40 = vpop.permute.xlu1 %1964  ;;  %v4171_v54 = vpop.permute.xlu0 %1970  ;;  %v980_v41 = vshll.u32 %v3103_v24, 16  ;;  %v1015_v13 = vshll.u32 %v3108_v19, 16  ;;  %v978_v52 = vshrl.u32 %v3103_v24, 16  ;;  %v1008_v3 = vshll.u32 %v3107_v23, 16 }
 0x118   : > { %5018 = vst [vmem:[#allocation39_spill] sm:$0xff] %v4169_v40  ;;  %5019 = vst [vmem:[#allocation40_spill] sm:$0xff] %v4171_v54  ;;  %v2913_v54 = vld [vmem:[%s3724_s29 + $0x1c] sm:$0x1]  ;;  %v1013_v42 = vshrl.u32 %v3108_v19, 16  ;;  %v1001_v20 = vshll.u32 %v3106_v62, 16 }
 0x119   : > { %939 = vrot.lane.b32.xlu1 %v3508_v56, %s3642_s27  ;;  %937 = vrot.lane.b32.xlu0 %v3509_v7, %s3642_s27  ;;  %v3512_v56 = vld [vmem:[%s3724_s29 + $0x68] ss:$0 sps:$4 sm:$0xff]   ;;  %v3513_v7 = vld [vmem:[%s3724_s29 + $0x60] ss:$0 sps:$4 sm:$0xff]   ;;  %v982_v58 = vrot.slane %v980_v41, 1  ;;  %v1006_v41 = vshrl.u32 %v3107_v23, 16 }
 0x11b   : > { %v4181_v35 = vpop.permute.xlu1 %1972  ;;  %v4183_v40 = vpop.permute.xlu0 %1966  ;;  %v983_v24 = vor.u32 %v982_v58, %v978_v52 }
 0x11c   : > { %5020 = vst [vmem:[#allocation41_spill] sm:$0xff] %v4181_v35  ;;  %5021 = vst [vmem:[#allocation42_spill] sm:$0xff] %v4183_v40  ;;  %v985_v35 = vshrl.u32 %v3104_v60, 16  ;;  %v3105_v40 = vcombine.low %v3854_v36, %v2913_v54  ;;  %v3110_v36 = vcombine.low %v2902_v1, %v2918_v50  ;;  %v999_v1 = vshrl.u32 %v3106_v62, 16 }
 0x11d   : > { %947 = vrot.lane.b32.xlu1 %v3510_v11, %s3642_s27  ;;  %945 = vrot.lane.b32.xlu0 %v3511_v21, %s3642_s27  ;;  %v3514_v11 = vld [vmem:[%s3724_s29 + $0x88] ss:$0 sps:$4 sm:$0xff]   ;;  %v3515_v21 = vld [vmem:[%s3724_s29 + $0x80] ss:$0 sps:$4 sm:$0xff]  }
 0x11e   : > { %v994_v60 = vshll.u32 %v3105_v40, 16  ;;  %v990_v31 = vor.u32 %v989_v12, %v985_v35  ;;  %v992_v35 = vshrl.u32 %v3105_v40, 16  ;;  %v1027_v23 = vshrl.u32 %v3110_v36, 16 }
 0x11f   : > { %v4191_v49 = vpop.permute.xlu1 %2000  ;;  %v4194_v48 = vpop.permute.xlu0 %1974 }
 0x120   : > { %5022 = vst [vmem:[#allocation43_spill] sm:$0xff] %v4191_v49  ;;  %5023 = vst [vmem:[#allocation44_spill] sm:$0xff] %v4194_v48  ;;  %v3109_v48 = vcombine.low %v2901_v14, %v2917_v30  ;;  %v996_v19 = vrot.slane %v994_v60, 1 }
 0x121   : > { %943 = vrot.lane.b32.xlu1 %v3512_v56, %s3642_s27  ;;  %941 = vrot.lane.b32.xlu0 %v3513_v7, %s3642_s27  ;;  %v1017_v56 = vrot.slane %v1015_v13, 1  ;;  %v1010_v7 = vrot.slane %v1008_v3, 1 }
 0x122   : > { %v1022_v14 = vshll.u32 %v3109_v48, 16  ;;  %v997_v62 = vor.u32 %v996_v19, %v992_v35  ;;  %v1020_v40 = vshrl.u32 %v3109_v48, 16  ;;  %v2922_v19 = vld [vmem:[%s3817_s24 + $0x138] sm:$0xf] }
 0x123   : > { %v4202_v49 = vpop.permute.xlu1 %2008  ;;  %v4204_v54 = vpop.permute.xlu0 %2002  ;;  %v1018_v50 = vor.u32 %v1017_v56, %v1013_v42  ;;  %v1011_v30 = vor.u32 %v1010_v7, %v1006_v41  ;;  %v2919_v56 = vld [vmem:[%s3817_s24 + $0x120] sm:$0xf]  ;;  %v2924_v41 = vld [vmem:[%s3817_s24 + $0x148] sm:$0xf] }
 0x124   : > { %5024 = vst [vmem:[#allocation45_spill] sm:$0xff] %v4202_v49  ;;  %5025 = vst [vmem:[#allocation46_spill] sm:$0xff] %v4204_v54  ;;  %v1003_v49 = vrot.slane %v1001_v20, 1  ;;  %v1024_v52 = vrot.slane %v1022_v14, 1  ;;  %v2921_v14 = vld [vmem:[%s3817_s24 + $0x130] sm:$0xf] }
 0x125   : > { %951 = vrot.lane.b32.xlu1 %v3514_v11, %s3642_s27  ;;  %949 = vrot.lane.b32.xlu0 %v3515_v21, %s3642_s27  ;;  %v1029_v11 = vshll.u32 %v3110_v36, 16  ;;  %s3650_s27 = smov 60  }
 0x126   : > { %v1004_v58 = vor.u32 %v1003_v49, %v999_v1  ;;  %v1025_v42 = vor.u32 %v1024_v52, %v1020_v40  ;;  %v2920_v49 = vld [vmem:[%s3817_s24 + $0x128] sm:$0xf]  ;;  %v2925_v52 = vld [vmem:[%s3817_s24 + $0x150] sm:$0xf] }
 0x127   : > { %v4208_v10 = vpop.permute.xlu1 %2004  ;;  %v4210_v22 = vpop.permute.xlu0 %2010  ;;  %v1031_v13 = vrot.slane %v1029_v11, 1  ;;  %v3112_v20 = vcombine.low %v2920_v49, %v2920_v49  ;;  %v3116_v11 = vcombine.low %v2924_v41, %v2924_v41 }
 0x128   : > { %5026 = vst [vmem:[#allocation47_spill] sm:$0xff] %v4208_v10  ;;  %5027 = vst [vmem:[#allocation48_spill] sm:$0xff] %v4210_v22 }
 0x129   : > { %1035 = vrot.lane.b32.xlu1 %v990_v31, %s3643_s28  ;;  %1033 = vrot.lane.b32.xlu0 %v983_v24, %s3643_s28  ;;  %v1032_v31 = vor.u32 %v1031_v13, %v1027_v23  ;;  %v3111_v24 = vcombine.low %v2919_v56, %v2919_v56  ;;  %v3114_v23 = vcombine.low %v2922_v19, %v2922_v19 }
 0x12a   : > { %v3113_v13 = vcombine.low %v2921_v14, %v2921_v14 }
 0x12b   : > { %v4214_v12 = vpop.permute.xlu1 %2012  ;;  %v4216_v3 = vpop.permute.xlu0 %2006 }
 0x12c   : > { %5028 = vst [vmem:[#allocation49_spill] sm:$0xff] %v4214_v12  ;;  %5029 = vst [vmem:[#allocation50_spill] sm:$0xff] %v4216_v3 }
 0x12d   : > { %1043 = vrot.lane.b32.xlu1 %v1018_v50, %s3643_s28  ;;  %1041 = vrot.lane.b32.xlu0 %v1011_v30, %s3643_s28  ;;  %v2923_v50 = vld [vmem:[%s3817_s24 + $0x140] sm:$0xf] }
 0x12e   : > { %v3115_v35 = vcombine.low %v2923_v50, %v2923_v50 }
 0x12f   : > { %v4220_v21 = vpop.permute.xlu1 %2040  ;;  %v4222_v60 = vpop.permute.xlu0 %2014 }
 0x130   : > { %5030 = vst [vmem:[#allocation51_spill] sm:$0xff] %v4220_v21  ;;  %5031 = vst [vmem:[#allocation52_spill] sm:$0xff] %v4222_v60  ;;  %v3534_v60 = vld [vmem:[%s3817_s24 + $0x190] ss:$0 sps:$4 sm:$0xff]  }
 0x131   : > { %1039 = vrot.lane.b32.xlu1 %v1004_v58, %s3643_s28  ;;  %1037 = vrot.lane.b32.xlu0 %v997_v62, %s3643_s28  ;;  %v2926_v62 = vld [vmem:[%s3817_s24 + $0x158] sm:$0xf] }
 0x133   : > { %v4227_v36 = vpop.permute.xlu1 %2048  ;;  %v4230_v48 = vpop.permute.xlu0 %2042 }
 0x134   : > { %5032 = vst [vmem:[#allocation53_spill] sm:$0xff] %v4227_v36  ;;  %5033 = vst [vmem:[#allocation54_spill] sm:$0xff] %v4230_v48  ;;  %v2937_v36 = vld [vmem:[%s3817_s24 + $0x134] sm:$0x1] }
 0x135   : > { %1047 = vrot.lane.b32.xlu1 %v1032_v31, %s3643_s28  ;;  %1045 = vrot.lane.b32.xlu0 %v1025_v42, %s3643_s28  ;;  %v3118_v42 = vcombine.low %v2926_v62, %v2926_v62 }
 0x137   : > { %v4235_v7 = vpop.permute.xlu1 %2044  ;;  %v4238_v1 = vpop.permute.xlu0 %2050 }
 0x138   : > { %5034 = vst [vmem:[#allocation55_spill] sm:$0xff] %v4235_v7  ;;  %5035 = vst [vmem:[#allocation56_spill] sm:$0xff] %v4238_v1  ;;  %v2942_v1 = vld [vmem:[%s3817_s24 + $0x15c] sm:$0x1] }
 0x139   : > { %1075 = vrot.lane.b32.xlu1 %v3112_v20, %s3644_s30  ;;  %1073 = vrot.lane.b32.xlu0 %v3111_v24, %s3644_s30  ;;  %v3117_v20 = vcombine.low %v2925_v52, %v2925_v52 }
 0x13b   : > { %v4243_v30 = vpop.permute.xlu1 %2052  ;;  %v4246_v58 = vpop.permute.xlu0 %2046 }
 0x13c   : > { %5036 = vst [vmem:[#allocation57_spill] sm:$0xff] %v4243_v30  ;;  %5037 = vst [vmem:[#allocation58_spill] sm:$0xff] %v4246_v58  ;;  %v2936_v30 = vld [vmem:[%s3817_s24 + $0x12c] sm:$0x1]  ;;  %v2939_v58 = vld [vmem:[%s3817_s24 + $0x144] sm:$0x1] }
 0x13d   : > { %1083 = vrot.lane.b32.xlu1 %v3116_v11, %s3644_s30  ;;  %1081 = vrot.lane.b32.xlu0 %v3115_v35, %s3644_s30  ;;  %v3532_v35 = vld [vmem:[%s3817_s24 + $0x170] ss:$0 sps:$4 sm:$0xff]   ;;  %v3128_v7 = vcombine.low %v2920_v49, %v2936_v30  ;;  %v3536_v49 = vld [vmem:[%s3817_s24 + $0x180] ss:$0 sps:$4 sm:$0xff]  }
 0x13f   : > { %v4251_v40 = vpop.permute.xlu1 %2136  ;;  %v4254_v31 = vpop.permute.xlu0 %2054  ;;  %v1163_v30 = vshll.u32 %v3128_v7, 16 }
 0x140   : > { %5038 = vst [vmem:[#allocation59_spill] sm:$0xff] %v4251_v40  ;;  %5039 = vst [vmem:[#allocation60_spill] sm:$0xff] %v4254_v31  ;;  %v3533_v31 = vld [vmem:[%s3817_s24 + $0x168] ss:$0 sps:$4 sm:$0xff]  }
 0x141   : > { %1079 = vrot.lane.b32.xlu1 %v3114_v23, %s3644_s30  ;;  %1077 = vrot.lane.b32.xlu0 %v3113_v13, %s3644_s30  ;;  %v2935_v23 = vld [vmem:[%s3817_s24 + $0x124] sm:$0x1] }
 0x143   : > { %v4258_v24 = vpop.permute.xlu1 %2144  ;;  %v4260_v11 = vpop.permute.xlu0 %2138 }
 0x144   : > { %5040 = vst [vmem:[#allocation61_spill] sm:$0xff] %v4258_v24  ;;  %5041 = vst [vmem:[#allocation62_spill] sm:$0xff] %v4260_v11  ;;  %v3127_v24 = vcombine.low %v2919_v56, %v2935_v23  ;;  %v2938_v56 = vld [vmem:[%s3817_s24 + $0x13c] sm:$0x1] }
 0x145   : > { %1087 = vrot.lane.b32.xlu1 %v3118_v42, %s3644_s30  ;;  %1085 = vrot.lane.b32.xlu0 %v3117_v20, %s3644_s30  ;;  %v2940_v42 = vld [vmem:[%s3817_s24 + $0x14c] sm:$0x1]  ;;  %v3535_v20 = vld [vmem:[%s3817_s24 + $0x188] ss:$0 sps:$4 sm:$0xff]  }
 0x146   : > { %v1156_v23 = vshll.u32 %v3127_v24, 16  ;;  %v1154_v11 = vshrl.u32 %v3127_v24, 16 }
 0x147   : > { %v4268_v12 = vpop.permute.xlu1 %2140  ;;  %v4270_v13 = vpop.permute.xlu0 %2146 }
 0x148   : > { %5042 = vst [vmem:[#allocation63_spill] sm:$0xff] %v4268_v12  ;;  %5043 = vst [vmem:[#allocation64_spill] sm:$0xff] %v4270_v13  ;;  %v3132_v13 = vcombine.low %v2924_v41, %v2940_v42  ;;  %v3130_v41 = vcombine.low %v2922_v19, %v2938_v56  ;;  %v1161_v42 = vshrl.u32 %v3128_v7, 16  ;;  %v1158_v40 = vrot.slane %v1156_v23, 1 }
 0x149   : > { %1115 = vrot.lane.b32.xlu1 %v3532_v35, %s3645_s5  ;;  %1113 = vrot.lane.b32.xlu0 %v3533_v31, %s3645_s5  ;;  %v3131_v35 = vcombine.low %v2923_v50, %v2939_v58  ;;  %v3537_v31 = vld [vmem:[%s3817_s24 + $0x178] ss:$0 sps:$4 sm:$0xff]   ;;  %v3129_v58 = vcombine.low %v2921_v14, %v2937_v36 }
 0x14a   : > { %v1191_v50 = vshll.u32 %v3132_v13, 16  ;;  %v1159_v36 = vor.u32 %v1158_v40, %v1154_v11 }
 0x14b   : > { %v4278_v10 = vpop.permute.xlu1 %2148  ;;  %v4280_v12 = vpop.permute.xlu0 %2142  ;;  %v1184_v48 = vshll.u32 %v3131_v35, 16  ;;  %v1182_v14 = vshrl.u32 %v3131_v35, 16  ;;  %v1170_v24 = vshll.u32 %v3129_v58, 16 }
 0x14c   : > { %5044 = vst [vmem:[#allocation65_spill] sm:$0xff] %v4278_v10  ;;  %5045 = vst [vmem:[#allocation66_spill] sm:$0xff] %v4280_v12  ;;  %v2941_v10 = vld [vmem:[%s3817_s24 + $0x154] sm:$0x1]  ;;  %v1165_v12 = vrot.slane %v1163_v30, 1  ;;  %v1193_v7 = vrot.slane %v1191_v50, 1 }
 0x14d   : > { %1123 = vrot.lane.b32.xlu1 %v3534_v60, %s3645_s5  ;;  %1121 = vrot.lane.b32.xlu0 %v3535_v20, %s3645_s5  ;;  %v3538_v60 = vld [vmem:[%s3817_s24 + $0x1a0] ss:$0 sps:$4 sm:$0xff]   ;;  %v3539_v20 = vld [vmem:[%s3817_s24 + $0x198] ss:$0 sps:$4 sm:$0xff]   ;;  %v3133_v54 = vcombine.low %v2925_v52, %v2941_v10  ;;  %v1177_v30 = vshll.u32 %v3130_v41, 16  ;;  %v1186_v56 = vrot.slane %v1184_v48, 1 }
 0x14e   : > { %v1166_v19 = vor.u32 %v1165_v12, %v1161_v42 }
 0x14f   : > { %v4288_v3 = vpop.permute.xlu1 %2176  ;;  %v4292_v22 = vpop.permute.xlu0 %2150  ;;  %v1187_v52 = vor.u32 %v1186_v56, %v1182_v14  ;;  %v1198_v40 = vshll.u32 %v3133_v54, 16  ;;  %v2943_v14 = vld [vmem:[%s3817_s24 + $0x1b0] sm:$0xf] }
 0x150   : > { %5046 = vst [vmem:[#allocation67_spill] sm:$0xff] %v4288_v3  ;;  %5047 = vst [vmem:[#allocation68_spill] sm:$0xff] %v4292_v22  ;;  %v3134_v3 = vcombine.low %v2926_v62, %v2942_v1  ;;  %v1175_v1 = vshrl.u32 %v3130_v41, 16  ;;  %v1179_v62 = vrot.slane %v1177_v30, 1 }
 0x151   : > { %1119 = vrot.lane.b32.xlu1 %v3536_v49, %s3645_s5  ;;  %1117 = vrot.lane.b32.xlu0 %v3537_v31, %s3645_s5  ;;  %v1189_v49 = vshrl.u32 %v3132_v13, 16  ;;  %v1168_v13 = vshrl.u32 %v3129_v58, 16 }
 0x152   : > { %v1205_v12 = vshll.u32 %v3134_v3, 16  ;;  %v1180_v35 = vor.u32 %v1179_v62, %v1175_v1  ;;  %v1203_v42 = vshrl.u32 %v3134_v3, 16  ;;  %v4336_v62 = vld [vmem:[%s3817_s24 + $0x1d0] sm:$0xf] }
 0x153   : > { %v4298_v21 = vpop.permute.xlu1 %2184  ;;  %v4300_v25 = vpop.permute.xlu0 %2178  ;;  %v1194_v10 = vor.u32 %v1193_v7, %v1189_v49 }
 0x154   : > { %v1207_v50 = vrot.slane %v1205_v12, 1 }
 0x155   : > { %1127 = vrot.lane.b32.xlu1 %v3538_v60, %s3645_s5  ;;  %1125 = vrot.lane.b32.xlu0 %v3539_v20, %s3645_s5  ;;  %v1172_v60 = vrot.slane %v1170_v24, 1  ;;  %v1196_v20 = vshrl.u32 %v3133_v54, 16  ;;  %v3135_v24 = vcombine.low %v2943_v14, %v2943_v14 }
 0x156   : > { %v1208_v7 = vor.u32 %v1207_v50, %v1203_v42 }
 0x157   : > { %v4304_v31 = vpop.permute.xlu1 %2180  ;;  %v4306_v23 = vpop.permute.xlu0 %2186  ;;  %v1173_v41 = vor.u32 %v1172_v60, %v1168_v13  ;;  %v3139_v13 = vcombine.low %v4336_v62, %v4336_v62  ;;  %v4345_v60 = vld [vmem:[%s3817_s24 + $0x1c8] sm:$0xf] }
 0x158   : > { %5048 = vst [vmem:[#allocation69_spill] sm:$0xff] %v4304_v31  ;;  %v3138_v50 = vcombine.low %v4345_v60, %v4345_v60 }
 0x159   : > { %1211 = vrot.lane.b32.xlu1 %v1166_v19, %s3646_s6  ;;  %1209 = vrot.lane.b32.xlu0 %v1159_v36, %s3646_s6  ;;  %v1200_v19 = vrot.slane %v1198_v40, 1  ;;  %v2944_v36 = vld [vmem:[%s3817_s24 + $0x1b8] sm:$0xf] }
 0x15a   : > { %v3136_v54 = vcombine.low %v2944_v36, %v2944_v36 }
 0x15b   : > { %v4310_v11 = vpop.permute.xlu1 %2188  ;;  %v4312_v48 = vpop.permute.xlu0 %2182  ;;  %v1201_v30 = vor.u32 %v1200_v19, %v1196_v20  ;;  %v4359_v20 = vld [vmem:[%s3817_s24 + $0x1e8] sm:$0xf] }
 0x15c   : > { %5049 = vst [vmem:[#allocation70_spill] sm:$0xff] %v4310_v11  ;;  %5050 = vst [vmem:[#allocation71_spill] sm:$0xff] %v4312_v48  ;;  %v2960_v11 = vld [vmem:[%s3817_s24 + $0x1bc] sm:$0x1]  ;;  %v3583_v48 = vld [vmem:[%s3724_s29 + $0x8] sm:$0xf] }
 0x15d   : > { %1219 = vrot.lane.b32.xlu1 %v1194_v10, %s3646_s6  ;;  %1217 = vrot.lane.b32.xlu0 %v1187_v52, %s3646_s6  ;;  %v4331_v10 = vld [vmem:[%s3817_s24 + $0x1d8] sm:$0xf]  ;;  %v4384_v22 = vcombine.low %v2944_v36, %v2960_v11  ;;  %v3581_v11 = vld [vmem:[%s3724_s29] sm:$0xf] }
 0x15e   : > { %v3140_v52 = vcombine.low %v4331_v10, %v4331_v10  ;;  %v1444_v36 = vsel %vm1441_vm0, %v3581_v11, %v3890_v27  ;;  %v3585_v27 = vld [vmem:[%s3724_s29 + $0x20] sm:$0xf] }
 0x15f   : > { %v4316_v58 = vpop.permute.xlu1 %2216  ;;  %v4318_v49 = vpop.permute.xlu0 %2190  ;;  %v1456_v11 = vsel %vm1441_vm0, %v3585_v27, %v3911_v45  ;;  %v1339_v45 = vshll.u32 %v4384_v22, 16  ;;  %v1468_v27 = vsel %vm1466_vm1, %v1444_v36, %v3928_v6 }
 0x160   : > { %5051 = vst [vmem:[#allocation72_spill] sm:$0xff] %v4318_v49 }
 0x161   : > { %1215 = vrot.lane.b32.xlu1 %v1180_v35, %s3646_s6  ;;  %1213 = vrot.lane.b32.xlu0 %v1173_v41, %s3646_s6  ;;  %v4350_v35 = vld [vmem:[%s3817_s24 + $0x1c0] sm:$0xf] }
 0x162   : > { %v3137_v41 = vcombine.low %v4350_v35, %v4350_v35 }
 0x163   : > { %v4323_v3 = vpop.permute.xlu1 %2224  ;;  %v4326_v56 = vpop.permute.xlu0 %2218 }
 0x165   : > { %1223 = vrot.lane.b32.xlu1 %v1208_v7, %s3646_s6  ;;  %1221 = vrot.lane.b32.xlu0 %v1201_v30, %s3646_s6  ;;  %v4364_v7 = vld [vmem:[%s3817_s24 + $0x1e0] sm:$0xf] }
 0x167   : > { %v4333_v1 = vpop.permute.xlu1 %2220  ;;  %v4338_v12 = vpop.permute.xlu0 %2226 }
 0x168   : > { %5052 = vst [vmem:[#allocation73_spill] sm:$0xff] %v4333_v1 }
 0x169   : > { %1251 = vrot.lane.b32.xlu1 %v3136_v54, %s3647_s7  ;;  %1249 = vrot.lane.b32.xlu0 %v3135_v24, %s3647_s7  ;;  %v3142_v54 = vcombine.low %v4359_v20, %v4359_v20  ;;  %v3141_v24 = vcombine.low %v4364_v7, %v4364_v7 }
 0x16b   : > { %v4347_v40 = vpop.permute.xlu1 %2228  ;;  %v4352_v42 = vpop.permute.xlu0 %2222 }
 0x16c   : > { %5053 = vst [vmem:[#allocation74_spill] sm:$0xff] %v4347_v40  ;;  %5054 = vst [vmem:[#allocation75_spill] sm:$0xff] %v4352_v42  ;;  %v3556_v40 = vld [vmem:[%s3817_s24 + $0x200] ss:$0 sps:$4 sm:$0xff]   ;;  %v3580_v42 = vld [vmem:[%s3724_s29 + $0x10] sm:$0xf] }
 0x16d   : > { %1259 = vrot.lane.b32.xlu1 %v3140_v52, %s3647_s7  ;;  %1257 = vrot.lane.b32.xlu0 %v3139_v13, %s3647_s7  ;;  %v1450_v31 = vsel %vm1441_vm0, %v3580_v42, %v3888_v26  ;;  %v1447_v26 = vsel %vm1441_vm0, %v3583_v48, %v3900_v34  ;;  %v3584_v42 = vld [vmem:[%s3724_s29 + $0x28] sm:$0xf]  ;;  %v3560_v48 = vld [vmem:[%s3817_s24 + $0x210] ss:$0 sps:$4 sm:$0xff]  }
 0x16f   : > { %v4361_v19 = vpop.permute.xlu1 %2312  ;;  %v4366_v30 = vpop.permute.xlu0 %2230 }
 0x170   : > { %5055 = vst [vmem:[#allocation76_spill] sm:$0xff] %v4366_v30  ;;  %v2959_v30 = vld [vmem:[%s3817_s24 + $0x1b4] sm:$0x1] }
 0x171   : > { %1255 = vrot.lane.b32.xlu1 %v3138_v50, %s3647_s7  ;;  %1253 = vrot.lane.b32.xlu0 %v3137_v41, %s3647_s7  ;;  %v3557_v50 = vld [vmem:[%s3817_s24 + $0x1f8] ss:$0 sps:$4 sm:$0xff]   ;;  %v4388_v1 = vcombine.low %v2943_v14, %v2959_v30  ;;  %v2963_v14 = vld [vmem:[%s3817_s24 + $0x1d4] sm:$0x1] }
 0x172   : > { %v3582_v30 = vld [vmem:[%s3724_s29 + $0x18] sm:$0xf] }
 0x173   : > { %v4372_v52 = vpop.permute.xlu1 %2320  ;;  %v4374_v13 = vpop.permute.xlu0 %2314 }
 0x174   : > { %5056 = vst [vmem:[#allocation77_spill] sm:$0xff] %v4372_v52  ;;  %v1459_v52 = vsel %vm1441_vm0, %v3584_v42, %v3908_v43  ;;  %v1470_v42 = vsel %vm1466_vm1, %v1447_v26, %v3926_v4  ;;  %v1472_v4 = vsel %vm1466_vm1, %v1450_v31, %v3934_v16  ;;  %v1485_v16 = vsel %vm1483_vm2, %v1468_v27, %v3955_v47  ;;  %v2965_v31 = vld [vmem:[%s3817_s24 + $0x1e4] sm:$0x1]  ;;  %v3563_v47 = vld [vmem:[%s3817_s24 + $0x228] ss:$0 sps:$4 sm:$0xff]  }
 0x175   : > { %1263 = vrot.lane.b32.xlu1 %v3142_v54, %s3647_s7  ;;  %1261 = vrot.lane.b32.xlu0 %v3141_v24, %s3647_s7  ;;  %v3558_v54 = vld [vmem:[%s3817_s24 + $0x220] ss:$0 sps:$4 sm:$0xff]   ;;  %v2964_v24 = vld [vmem:[%s3817_s24 + $0x1dc] sm:$0x1]  ;;  %v1478_v6 = vsel %vm1466_vm1, %v1459_v52, %v3938_v28  ;;  %v1341_v26 = vrot.slane %v1339_v45, 1 }
 0x176   : > { %v4423_v43 = vcombine.low %v4331_v10, %v2964_v24  ;;  %v3561_v10 = vld [vmem:[%s3817_s24 + $0x208] ss:$0 sps:$4 sm:$0xff]   ;;  %v2961_v24 = vld [vmem:[%s3817_s24 + $0x1c4] sm:$0x1]  ;;  %v2966_v28 = vld [vmem:[%s3817_s24 + $0x1ec] sm:$0x1] }
 0x177   : > { %v4380_v49 = vpop.permute.xlu1 %2316  ;;  %v4382_v41 = vpop.permute.xlu0 %2322 }
 0x178   : > { %5057 = vst [vmem:[#allocation78_spill] sm:$0xff] %v4380_v49  ;;  %5058 = vst [vmem:[#allocation79_spill] sm:$0xff] %v4382_v41  ;;  %v3559_v49 = vld [vmem:[%s3817_s24 + $0x218] ss:$0 sps:$4 sm:$0xff]  }
 0x179   : > { %1291 = vrot.lane.b32.xlu1 %v3556_v40, %s3648_s8  ;;  %1289 = vrot.lane.b32.xlu0 %v3557_v50, %s3648_s8  ;;  %v1453_v50 = vsel %vm1441_vm0, %v3582_v30, %v3898_v33  ;;  %v3586_v41 = vld [vmem:[%s3724_s29 + $0x38] sm:$0xf]  ;;  %v3587_v30 = vld [vmem:[%s3724_s29 + $0x30] sm:$0xf]  ;;  %s2860_s29 = sshll.u32 %s5154_s15, 3 }
 0x17a   : > { %v1465_v33 = vsel %vm1441_vm0, %v3586_v41, %v3918_v55  ;;  %v1462_v34 = vsel %vm1441_vm0, %v3587_v30, %v3920_v57  ;;  %v4433_v55 = vcombine.low %v4336_v62, %v2963_v14  ;;  %v2962_v57 = vld [vmem:[%s3817_s24 + $0x1cc] sm:$0x1]  ;;  %v1332_v41 = vshll.u32 %v4388_v1, 16 }
 0x17b   : > { %v4400_v40 = vpop.permute.xlu1 %2324  ;;  %v1476_v62 = vsel %vm1466_vm1, %v1456_v11, %v3940_v29  ;;  %v1480_v14 = vsel %vm1466_vm1, %v1462_v34, %v3947_v39  ;;  %v4463_v29 = vcombine.low %v4345_v60, %v2962_v57  ;;  %v1367_v39 = vshll.u32 %v4423_v43, 16 }
 0x17c   : > { %5059 = vst [vmem:[#allocation80_spill] sm:$0xff] %v4400_v40  ;;  %v4414_v40 = vpop.permute.xlu0 %2318  ;;  %v1330_v11 = vshrl.u32 %v4388_v1, 16  ;;  %v1360_v60 = vshll.u32 %v4433_v55, 16  ;;  %v1495_v34 = vsel %vm1483_vm2, %v1478_v6, %v3968_v59  ;;  %v1497_v45 = vsel %vm1483_vm2, %v1480_v14, %v3978_v2 }
 0x17d   : > { %1299 = vrot.lane.b32.xlu1 %v3558_v54, %s3648_s8  ;;  %1297 = vrot.lane.b32.xlu0 %v3559_v49, %s3648_s8  ;;  %v1474_v54 = vsel %vm1466_vm1, %v1453_v50, %v3932_v15  ;;  %v1482_v49 = vsel %vm1466_vm1, %v1465_v33, %v3945_v38  ;;  %v1487_v15 = vsel %vm1483_vm2, %v1470_v42, %v3952_v44  ;;  %v3562_v50 = vld [vmem:[%s3817_s24 + $0x230] ss:$0 sps:$4 sm:$0xff]   ;;  %v1337_v38 = vshrl.u32 %v4384_v22, 16 }
 0x17e   : > { %v4470_v44 = vcombine.low %v4350_v35, %v2961_v24  ;;  %v1334_v33 = vrot.slane %v1332_v41, 1  ;;  %v1491_v30 = vsel %vm1483_vm2, %v1474_v54, %v3960_v51  ;;  %v1489_v22 = vsel %vm1483_vm2, %v1472_v4, %v3963_v53 }
 0x17f   : > { %v4448_v36 = vpop.permute.xlu1 %905  ;;  %v1493_v35 = vsel %vm1483_vm2, %v1476_v62, %v3971_v61  ;;  %v1499_v1 = vsel %vm1483_vm2, %v1482_v49, %v3975_v0  ;;  %v4491_v42 = vcombine.low %v4359_v20, %v2966_v28  ;;  %v4494_v51 = vcombine.low %v4364_v7, %v2965_v31  ;;  %v3572_v0 = vld [vmem:[%s4979_s3 + $0x38] sm:$0xff]   ;;  %v5060_v31 = vld [vmem:[#allocation2_spill] sm:$0xff] }
 0x180   : > { %v4460_v52 = vpop.permute.xlu0 %2326  ;;  %v1342_v59 = vor.u32 %v1341_v26, %v1337_v38  ;;  %v1365_v61 = vshrl.u32 %v4423_v43, 16  ;;  %v1369_v27 = vrot.slane %v1367_v39, 1  ;;  %v1353_v57 = vshll.u32 %v4463_v29, 16  ;;  %3273 = vmatprep.subr.bf16.mxu0 %v3572_v0  ;;  %3297 = vmatprep.subr.bf16.mxu1 %v3572_v0  ;;  %v5061_v38 = vld [vmem:[#allocation3_spill] sm:$0xff]  ;;  %v5062_v39 = vld [vmem:[#allocation4_spill] sm:$0xff] }
 0x181   : > { %1295 = vrot.lane.b32.xlu1 %v3560_v48, %s3648_s8  ;;  %1293 = vrot.lane.b32.xlu0 %v3561_v10, %s3648_s8  ;;  %v1335_v2 = vor.u32 %v1334_v33, %v1330_v11  ;;  %v1358_v20 = vshrl.u32 %v4433_v55, 16  ;;  %v1362_v7 = vrot.slane %v1360_v60, 1  ;;  %v1346_v10 = vshll.u32 %v4470_v44, 16 }
 0x182   : > { %v1504_v41 = vsel %vm1500_vm3, %v1487_v15, %v3984_v8  ;;  %v1502_v43 = vsel %vm1500_vm3, %v1485_v16, %v3986_v9  ;;  %v1508_v54 = vsel %vm1500_vm3, %v1491_v30, %v3994_v17  ;;  %v1506_v6 = vsel %vm1500_vm3, %v1489_v22, %v3996_v18  ;;  %3274 = vmatpush3.bf16.msra.mxu0 %v3572_v0 }
 0x183   : > { %v4484_v48 = vpop.permute.xlu1 %903  ;;  %v1512_v55 = vsel %vm1500_vm3, %v1495_v34, %v4004_v32  ;;  %v1510_v62 = vsel %vm1500_vm3, %v1493_v35, %v4007_v37  ;;  %3305 = vmatpush3.bf16.msra.mxu1 %v3572_v0  ;;  %v1370_v9 = vor.u32 %v1369_v27, %v1365_v61  ;;  %v1351_v17 = vshrl.u32 %v4463_v29, 16  ;;  %v3573_v32 = vld [vmem:[%s4979_s3 + $0x30] sm:$0xff]   ;;  %v3574_v34 = vld [vmem:[%s4979_s3 + $0x28] sm:$0xff]   ;;  %v5067_v0 = vld [vmem:[#allocation9_spill] sm:$0xff] }
 0x184   : > { %v4496_v53 = vpop.permute.xlu0 %907  ;;  %v1355_v24 = vrot.slane %v1353_v57, 1  ;;  %v1381_v18 = vshll.u32 %v4491_v42, 16  ;;  %v1363_v37 = vor.u32 %v1362_v7, %v1358_v20  ;;  %v1344_v49 = vshrl.u32 %v4470_v44, 16  ;;  %3275 = vmatprep.subr.bf16.mxu0 %v3573_v32  ;;  %3298 = vmatprep.subr.bf16.mxu1 %v3573_v32  ;;  %v5065_v35 = vld [vmem:[#allocation7_spill] sm:$0xff]  ;;  %v5066_v57 = vld [vmem:[#allocation8_spill] sm:$0xff] }
 0x185   : > { %1303 = vrot.lane.b32.xlu1 %v3562_v50, %s3648_s8  ;;  %1301 = vrot.lane.b32.xlu0 %v3563_v47, %s3648_s8  ;;  %v1348_v14 = vrot.slane %v1346_v10, 1  ;;  %v1374_v15 = vshll.u32 %v4494_v51, 16  ;;  %v1516_v16 = vsel %vm1500_vm3, %v1499_v1, %v4014_v63  ;;  %v1514_v28 = vsel %vm1500_vm3, %v1497_v45, %v4016_v5  ;;  %v5063_v47 = vld [vmem:[#allocation5_spill] sm:$0xff]  ;;  %v5064_v5 = vld [vmem:[#allocation6_spill] sm:$0xff]  ;;  %v2975_v45 = vld [vmem:[%s3817_s24 + $0x170] sm:$0xf] }
 0x186   : > { %v1521_v29 = vsel %vm1517_vm4, %v1504_v41, %v5060_v31  ;;  %v1519_v26 = vsel %vm1517_vm4, %v1502_v43, %v5061_v38  ;;  %v1525_v44 = vsel %vm1517_vm4, %v1508_v54, %v5062_v39  ;;  %v1523_v63 = vsel %vm1517_vm4, %v1506_v6, %v5063_v47  ;;  %3276 = vmatpush3.bf16.msra.mxu0 %v3573_v32  ;;  %v2979_v20 = vld [vmem:[%s3817_s24 + $0x190] sm:$0xf]  ;;  %v2976_v7 = vld [vmem:[%s3817_s24 + $0x178] sm:$0xf]  ;;  %v2977_v54 = vld [vmem:[%s3817_s24 + $0x180] sm:$0xf] }
 0x187   : > { %v4513_v4 = vpop.permute.xlu1 %911  ;;  %3306 = vmatpush3.bf16.msra.mxu1 %v3573_v32  ;;  %v1529_v33 = vsel %vm1517_vm4, %v1512_v55, %v5064_v5  ;;  %v1356_v60 = vor.u32 %v1355_v24, %v1351_v17  ;;  %v1379_v30 = vshrl.u32 %v4491_v42, 16  ;;  %v1383_v22 = vrot.slane %v1381_v18, 1  ;;  %3277 = vmatprep.subr.bf16.mxu0 %v3574_v34  ;;  %v2980_v6 = vld [vmem:[%s3817_s24 + $0x198] sm:$0xf]  ;;  %v5070_v24 = vld [vmem:[#allocation12_spill] sm:$0xff] }
 0x188   : > { %v4521_v8 = vpop.permute.xlu0 %909  ;;  %v1527_v1 = vsel %vm1517_vm4, %v1510_v62, %v5065_v35  ;;  %v1372_v61 = vshrl.u32 %v4494_v51, 16  ;;  %v1376_v27 = vrot.slane %v1374_v15, 1  ;;  %v1533_v42 = vsel %vm1517_vm4, %v1516_v16, %v5066_v57  ;;  %3299 = vmatprep.subr.bf16.mxu1 %v3574_v34  ;;  %v5068_v51 = vld [vmem:[#allocation10_spill] sm:$0xff]  ;;  %v5071_v15 = vld [vmem:[#allocation13_spill] sm:$0xff]  ;;  %v5074_v47 = vld [vmem:[#allocation16_spill] sm:$0xff] }
 0x189   : > { %1387 = vrot.lane.b32.xlu1 %v1342_v59, %s3649_s10  ;;  %1385 = vrot.lane.b32.xlu0 %v1335_v2, %s3649_s10  ;;  %v1349_v59 = vor.u32 %v1348_v14, %v1344_v49  ;;  %v4564_v2 = vsel %vm1517_vm4, %v1514_v28, %v5067_v0  ;;  %v1546_v10 = vsel %vm1534_vm5, %v1529_v33, %v4496_v53  ;;  %v5069_v53 = vld [vmem:[#allocation11_spill] sm:$0xff]  ;;  %v2981_v32 = vld [vmem:[%s3817_s24 + $0x1a0] sm:$0xf]  ;;  %v5075_v33 = vld [vmem:[#allocation17_spill] sm:$0xff] }
 0x18a   : > { %v4572_v43 = vsel %vm1534_vm5, %v1521_v29, %v5068_v51  ;;  %v1544_v55 = vsel %vm1534_vm5, %v1527_v1, %v4448_v36  ;;  %3278 = vmatpush3.bf16.msra.mxu0 %v3574_v34  ;;  %v4583_v17 = vsel %vm1534_vm5, %v1519_v26, %v5069_v53  ;;  %v2330_v18 = vsel %vm1441_vm0, %v2975_v45, %v5070_v24  ;;  %v3575_v14 = vld [vmem:[%s4979_s3 + $0x20] sm:$0xff]   ;;  %v5073_v29 = vld [vmem:[#allocation15_spill] sm:$0xff]  ;;  %v5083_v24 = vld [vmem:[#allocation25_spill] sm:$0xff] }
 0x18b   : > { %v4538_v50 = vpop.permute.xlu1 %939  ;;  %3307 = vmatpush3.bf16.msra.mxu1 %v3574_v34  ;;  %v1384_v36 = vor.u32 %v1383_v22, %v1379_v30  ;;  %v4598_v16 = vsel %vm1534_vm5, %v1523_v63, %v5071_v15  ;;  %v5072_v28 = vld [vmem:[#allocation14_spill] sm:$0xff]  ;;  %v2333_v38 = vsel %vm1441_vm0, %v2976_v7, %v5073_v29  ;;  %v2982_v26 = vld [vmem:[%s3817_s24 + $0x1a8] sm:$0xf]  ;;  %v1377_v39 = vor.u32 %v1376_v27, %v1372_v61  ;;  %v5078_v61 = vld [vmem:[#allocation20_spill] sm:$0xff] }
 0x18c   : > { %v4546_v11 = vpop.permute.xlu0 %937  ;;  %v2342_v31 = vsel %vm1441_vm0, %v2979_v20, %v5072_v28  ;;  %v2336_v5 = vsel %vm1441_vm0, %v2977_v54, %v5074_v47  ;;  %v1542_v63 = vsel %vm1534_vm5, %v1525_v44, %v4484_v48  ;;  %3279 = vmatprep.subr.bf16.mxu0 %v3575_v14  ;;  %3300 = vmatprep.subr.bf16.mxu1 %v3575_v14  ;;  %v5076_v22 = vld [vmem:[#allocation18_spill] sm:$0xff]  ;;  %v5077_v35 = vld [vmem:[#allocation19_spill] sm:$0xff]  ;;  %v5079_v44 = vld [vmem:[#allocation21_spill] sm:$0xff] }
 0x18d   : > { %1395 = vrot.lane.b32.xlu1 %v1370_v9, %s3649_s10  ;;  %1393 = vrot.lane.b32.xlu0 %v1363_v37, %s3649_s10  ;;  %v2978_v37 = vld [vmem:[%s3817_s24 + $0x188] sm:$0xf]  ;;  %v2348_v34 = vsel %vm1441_vm0, %v2981_v32, %v5076_v22  ;;  %v2353_v48 = vsel %vm1466_vm1, %v2330_v18, %v5078_v61  ;;  %v2351_v27 = vsel %vm1441_vm0, %v2982_v26, %v5079_v44  ;;  %v5080_v57 = vld [vmem:[#allocation22_spill] sm:$0xff]  ;;  %v3588_v20 = vld [vmem:[%s3817_s24 + $0x130] sm:$0xf] }
 0x18e   : > { %v2339_v1 = vsel %vm1441_vm0, %v2978_v37, %v5077_v35  ;;  %3280 = vmatpush3.bf16.msra.mxu0 %v3575_v14  ;;  %v2361_v0 = vsel %vm1466_vm1, %v2342_v31, %v5080_v57  ;;  %v3160_v7 = vcombine.low %v3588_v20, %v3588_v20  ;;  %v5082_v54 = vld [vmem:[#allocation24_spill] sm:$0xff]  ;;  %v2365_v18 = vsel %vm1466_vm1, %v2348_v34, %v5083_v24  ;;  %v5084_v32 = vld [vmem:[#allocation26_spill] sm:$0xff]  ;;  %v5085_v15 = vld [vmem:[#allocation27_spill] sm:$0xff] }
 0x18f   : > { %v948_v41 = vpop.permute.xlu1 %947  ;;  %3308 = vmatpush3.bf16.msra.mxu1 %v3575_v14  ;;  %v2359_v37 = vsel %vm1466_vm1, %v2339_v1, %v5084_v32  ;;  %v1548_v28 = vsel %vm1534_vm5, %v4564_v2, %v4521_v8  ;;  %v3590_v8 = vld [vmem:[%s3817_s24 + $0x150] sm:$0xf]  ;;  %v3591_v34 = vld [vmem:[%s3817_s24 + $0x148] sm:$0xf]  ;;  %v5091_v1 = vld [vmem:[#allocation33_spill] sm:$0xff] }
 0x190   : > { %v4579_v62 = vsel %vm1551_vm6, %v1546_v10, %v948_v41  ;;  %v946_v9 = vpop.permute.xlu0 %945  ;;  %v3576_v10 = vld [vmem:[%s4979_s3 + $0x18] sm:$0xff]   ;;  %v5081_v41 = vld [vmem:[#allocation23_spill] sm:$0xff]  ;;  %v3164_v2 = vcombine.low %v3590_v8, %v3590_v8  ;;  %v3577_v47 = vld [vmem:[%s4979_s3 + $0x10] sm:$0xff]   ;;  %v3163_v35 = vcombine.low %v3591_v34, %v3591_v34  ;;  %v2381_v61 = vsel %vm1483_vm2, %v2365_v18, %v5091_v1 }
 0x191   : > { %v4590_v49 = vsel %vm1551_vm6, %v1544_v55, %v946_v9  ;;  %1391 = vrot.lane.b32.xlu1 %v1356_v60, %s3649_s10  ;;  %1389 = vrot.lane.b32.xlu0 %v1349_v59, %s3649_s10  ;;  %v2345_v60 = vsel %vm1441_vm0, %v2980_v6, %v5075_v33  ;;  %v2355_v51 = vsel %vm1466_vm1, %v2333_v38, %v5081_v41  ;;  %v3589_v9 = vld [vmem:[%s3817_s24 + $0x128] sm:$0xf]  ;;  %v5086_v38 = vld [vmem:[#allocation28_spill] sm:$0xff]  ;;  %v3593_v32 = vld [vmem:[%s3817_s24 + $0x138] sm:$0xf] }
 0x192   : > { %v2357_v6 = vsel %vm1466_vm1, %v2336_v5, %v5082_v54  ;;  %v2363_v55 = vsel %vm1466_vm1, %v2345_v60, %v4112_v46  ;;  %v3159_v53 = vcombine.low %v3589_v9, %v3589_v9  ;;  %3281 = vmatprep.subr.bf16.mxu0 %v3576_v10  ;;  %3301 = vmatprep.subr.bf16.mxu1 %v3576_v10  ;;  %v5088_v5 = vld [vmem:[#allocation30_spill] sm:$0xff]  ;;  %v5089_v60 = vld [vmem:[#allocation31_spill] sm:$0xff]  ;;  %v5095_v54 = vld [vmem:[#allocation37_spill] sm:$0xff] }
 0x193   : > { %v944_v30 = vpop.permute.xlu1 %943  ;;  %v2369_v46 = vsel %vm1483_vm2, %v2353_v48, %v5085_v15  ;;  %3282 = vmatpush3.bf16.msra.mxu0 %v3576_v10  ;;  %3309 = vmatpush3.bf16.msra.mxu1 %v3576_v10  ;;  %v2371_v33 = vsel %vm1483_vm2, %v2355_v51, %v5088_v5  ;;  %v5092_v48 = vld [vmem:[#allocation34_spill] sm:$0xff]  ;;  %v5097_v24 = vld [vmem:[#allocation39_spill] sm:$0xff]  ;;  %v5099_v15 = vld [vmem:[#allocation41_spill] sm:$0xff] }
 0x194   : > { %v4617_v45 = vsel %vm1551_vm6, %v1542_v63, %v944_v30  ;;  %v4619_v59 = vpop.permute.xlu0 %941  ;;  %v2373_v63 = vsel %vm1483_vm2, %v2357_v6, %v5089_v60  ;;  %v5090_v30 = vld [vmem:[#allocation32_spill] sm:$0xff]  ;;  %v2375_v44 = vsel %vm1483_vm2, %v2359_v37, %v5092_v48  ;;  %3283 = vmatprep.subr.bf16.mxu0 %v3577_v47  ;;  %3302 = vmatprep.subr.bf16.mxu1 %v3577_v47  ;;  %v5096_v9 = vld [vmem:[#allocation38_spill] sm:$0xff] }
 0x195   : > { %1399 = vrot.lane.b32.xlu1 %v1384_v36, %s3649_s10  ;;  %1397 = vrot.lane.b32.xlu0 %v1377_v39, %s3649_s10  ;;  %v1550_v36 = vsel %vm1534_vm5, %v1533_v42, %v4513_v4  ;;  %v2367_v4 = vsel %vm1466_vm1, %v2351_v27, %v5086_v38  ;;  %v5087_v42 = vld [vmem:[#allocation29_spill] sm:$0xff]  ;;  %v2379_v22 = vsel %vm1483_vm2, %v2363_v55, %v5090_v30  ;;  %v5101_v38 = vld [vmem:[#allocation43_spill] sm:$0xff]  ;;  %v3579_v60 = vld [vmem:[%s4979_s3] sm:$0xff]   ;;  %s309_s10 = sadd.s32 %s2861_s9, %s2860_s29 }
 0x196   : > { %v2377_v26 = vsel %vm1483_vm2, %v2361_v0, %v5087_v42  ;;  %v1555_v27 = vsel %vm1551_vm6, %v4572_v43, %v4538_v50  ;;  %v5093_v0 = vld [vmem:[#allocation35_spill] sm:$0xff]  ;;  %v5094_v43 = vld [vmem:[#allocation36_spill] sm:$0xff]  ;;  %v2389_v18 = vsel %vm1500_vm3, %v2373_v63, %v5097_v24  ;;  %v3161_v37 = vcombine.low %v3593_v32, %v3593_v32  ;;  %s2862_s11 = sshll.u32 %s309_s10, 3 }
 0x197   : > { %v952_v14 = vpop.permute.xlu1 %951  ;;  %v2385_v20 = vsel %vm1500_vm3, %v2369_v46, %v5093_v0  ;;  %3284 = vmatpush3.bf16.msra.mxu0 %v3577_v47  ;;  %v3578_v50 = vld [vmem:[%s4979_s3 + $0x8] sm:$0xff]   ;;  %3310 = vmatpush3.bf16.msra.mxu1 %v3577_v47  ;;  %v2383_v51 = vsel %vm1483_vm2, %v2367_v4, %v5094_v43  ;;  %v2393_v6 = vsel %vm1500_vm3, %v2377_v26, %v5095_v54  ;;  %v5102_v26 = vld [vmem:[#allocation44_spill] sm:$0xff]  ;;  %s311_s14 = scalar_lea.vmem %s4980_s4, %s2862_s11 }
 0x198   : > { %v4652_v31 = vsel %vm1551_vm6, %v1550_v36, %v952_v14  ;;  %v950_v29 = vpop.permute.xlu0 %949  ;;  %3285 = vmatprep.subr.bf16.mxu0 %v3578_v50  ;;  %v5098_v36 = vld [vmem:[#allocation40_spill] sm:$0xff]  ;;  %v4711_v46 = vsel %vm1500_vm3, %v2381_v61, %v5099_v15  ;;  %v2401_v4 = vsel %vm1517_vm4, %v2385_v20, %v5101_v38  ;;  %3303 = vmatprep.subr.bf16.mxu1 %v3578_v50  ;;  %v5104_v63 = vld [vmem:[#allocation51_spill] sm:$0xff]  ;;  %v5108_v20 = vld [vmem:[#allocation45_spill] sm:$0xff] }
 0x199   : > { %v4659_v39 = vsel %vm1551_vm6, %v1548_v28, %v950_v29  ;;  %1427 = vrot.lane.b32.xlu1 %v3160_v7, %s3650_s27  ;;  %1425 = vrot.lane.b32.xlu0 %v3159_v53, %s3650_s27  ;;  %v1553_v7 = vsel %vm1551_vm6, %v4583_v17, %v4546_v11  ;;  %v3592_v11 = vld [vmem:[%s3817_s24 + $0x140] sm:$0xf]  ;;  %v2387_v53 = vsel %vm1500_vm3, %v2371_v33, %v5096_v9  ;;  %v5106_v61 = vld [vmem:[#allocation59_spill] sm:$0xff] }
 0x19a   : > { %v3162_v17 = vcombine.low %v3592_v11, %v3592_v11  ;;  %v2395_v14 = vsel %vm1500_vm3, %v2379_v22, %v5098_v36  ;;  %v5100_v28 = vld [vmem:[#allocation42_spill] sm:$0xff]  ;;  %v2399_v8 = vsel %vm1500_vm3, %v2383_v51, %v5102_v26  ;;  %v2417_v30 = vsel %vm1534_vm5, %v2401_v4, %v5104_v63  ;;  %v5114_v36 = vld [vmem:[#allocation64_spill] sm:$0xff]  ;;  %v5117_v4 = vld [vmem:[#allocation61_spill] sm:$0xff] }
 0x19b   : > { %v1036_v57 = vpop.permute.xlu1 %1035  ;;  %v2391_v29 = vsel %vm1500_vm3, %v2375_v44, %v5100_v28  ;;  %3286 = vmatpush3.bf16.msra.mxu0 %v3578_v50  ;;  %3311 = vmatpush3.bf16.msra.mxu1 %v3578_v50  ;;  %v5105_v22 = vld [vmem:[#allocation54_spill] sm:$0xff]  ;;  %v2433_v48 = vsel %vm1551_vm6, %v2417_v30, %v5106_v61  ;;  %v5110_v50 = vld [vmem:[#allocation67_spill] sm:$0xff] }
 0x19c   : > { %v4687_v10 = vsel %vm1568_vm7, %v1555_v27, %v1036_v57  ;;  %v1034_v41 = vpop.permute.xlu0 %1033  ;;  %v5107_v44 = vld [vmem:[#allocation62_spill] sm:$0xff]  ;;  %v3595_v57 = vld [vmem:[%s3817_s24 + $0x158] sm:$0xf]  ;;  %3287 = vmatprep.subr.bf16.mxu0 %v3579_v60  ;;  %v2449_v43 = vsel %vm1568_vm7, %v2433_v48, %v5110_v50  ;;  %3304 = vmatprep.subr.bf16.mxu1 %v3579_v60  ;;  %v5118_v30 = vld [vmem:[#allocation79_spill] sm:$0xff] }
 0x19d   : > { %v4697_v55 = vsel %vm1568_vm7, %v1553_v7, %v1034_v41  ;;  %1435 = vrot.lane.b32.xlu1 %v3164_v2, %s3650_s27  ;;  %1433 = vrot.lane.b32.xlu0 %v3163_v35, %s3650_s27  ;;  %v5103_v2 = vld [vmem:[#allocation46_spill] sm:$0xff]  ;;  %v3165_v0 = vcombine.low %v3595_v57, %v3595_v57  ;;  %v5109_v7 = vld [vmem:[#allocation48_spill] sm:$0xff]  ;;  %v2465_v24 = vsel %vm1585_vm8, %v2449_v43, %v4316_v58  ;;  %v5123_v48 = vld [vmem:[#allocation49_spill] sm:$0xff] }
 0x19e   : > { %v2403_v47 = vsel %vm1517_vm4, %v2387_v53, %v5103_v2  ;;  %v2411_v41 = vsel %vm1517_vm4, %v2395_v14, %v5109_v7  ;;  %v5111_v53 = vld [vmem:[#allocation56_spill] sm:$0xff]  ;;  %v2481_v58 = vsel %vm1602_vm9, %v2465_v24, %v4361_v19  ;;  %v5116_v28 = vld [vmem:[#allocation58_spill] sm:$0xff]  ;;  %v5125_v57 = vld [vmem:[#allocation63_spill] sm:$0xff] }
 0x19f   : > { %v1044_v42 = vpop.permute.xlu1 %1043  ;;  %v2419_v34 = vsel %vm1534_vm5, %v2403_v47, %v5105_v22  ;;  %3288 = vmatpush3.bf16.msra.mxu0 %v3579_v60  ;;  %3312 = vmatpush3.bf16.msra.mxu1 %v3579_v60  ;;  %v2497_v63 = vsel %vm1619_vm10, %v2481_v58, 1065369472  ;;  %v5127_v7 = vld [vmem:[#allocation69_spill] sm:$0xff]  ;;  %v5128_v50 = vld [vmem:[#allocation75_spill] sm:$0xff]  ;;  %v5135_v58 = vld [vmem:[#allocation70_spill] sm:$0xff] }
 0x1a0   : > { %v4723_v5 = vsel %vm1568_vm7, %v4579_v62, %v1044_v42  ;;  %v1042_v33 = vpop.permute.xlu0 %1041  ;;  %v3594_v62 = vld [vmem:[%s3817_s24 + $0x160] sm:$0xf]  ;;  %v2435_v27 = vsel %vm1551_vm6, %v2419_v34, %v5107_v44  ;;  %s3651_s24 = smov 64   ;;  %v5120_v34 = vld [vmem:[#allocation55_spill] sm:$0xff]  ;;  %v5124_v44 = vld [vmem:[#allocation60_spill] sm:$0xff] }
 0x1a1   : > { %v4734_v35 = vsel %vm1568_vm7, %v4590_v49, %v1042_v33  ;;  %1431 = vrot.lane.b32.xlu1 %v3162_v17, %s3650_s27  ;;  %v3166_v1 = vcombine.low %v3594_v62, %v3594_v62  ;;  %1429 = vrot.lane.b32.xlu0 %v3161_v37, %s3650_s27  ;;  %v2409_v49 = vsel %vm1517_vm4, %v2393_v6, %v5108_v20  ;;  %v5121_v62 = vld [vmem:[#allocation66_spill] sm:$0xff]  ;;  %v5130_v24 = vld [vmem:[#allocation57_spill] sm:$0xff] }
 0x1a2   : > { %v2451_v51 = vsel %vm1568_vm7, %v2435_v27, %v4300_v25  ;;  %v1557_v17 = vsel %vm1551_vm6, %v4598_v16, %v4619_v59  ;;  %v2427_v25 = vsel %vm1534_vm5, %v2411_v41, %v5111_v53  ;;  %v5112_v16 = vld [vmem:[#allocation50_spill] sm:$0xff]  ;;  %v5113_v59 = vld [vmem:[#allocation53_spill] sm:$0xff] }
 0x1a3   : > { %v1040_v54 = vpop.permute.xlu1 %1039  ;;  %v2467_v11 = vsel %vm1585_vm8, %v2451_v51, %v4326_v56  ;;  %v2425_v37 = vsel %vm1534_vm5, %v2409_v49, %v5113_v59  ;;  %v2443_v14 = vsel %vm1551_vm6, %v2427_v25, %v5114_v36 }
 0x1a4   : > { %v4759_v6 = vsel %vm1568_vm7, %v4617_v45, %v1040_v54  ;;  %v1038_v9 = vpop.permute.xlu0 %1037  ;;  %v2483_v56 = vsel %vm1602_vm9, %v2467_v11, %v4374_v13  ;;  %v2407_v45 = vsel %vm1517_vm4, %v2391_v29, %v5112_v16  ;;  %v5115_v13 = vld [vmem:[#allocation47_spill] sm:$0xff]  ;;  %v2441_v29 = vsel %vm1551_vm6, %v2425_v37, %v5117_v4  ;;  %v5129_v11 = vld [vmem:[#allocation73_spill] sm:$0xff]  ;;  %v5131_v16 = vld [vmem:[#allocation68_spill] sm:$0xff] }
 0x1a5   : > { %v4768_v32 = vsel %vm1568_vm7, %v1557_v17, %v1038_v9  ;;  %1439 = vrot.lane.b32.xlu1 %v3166_v1, %s3650_s27  ;;  %1437 = vrot.lane.b32.xlu0 %v3165_v0, %s3650_s27  ;;  %v2405_v15 = vsel %vm1517_vm4, %v2389_v18, %v5115_v13  ;;  %v2423_v38 = vsel %vm1534_vm5, %v2407_v45, %v5116_v28  ;;  %v2498_v47 = vsel %vm1619_vm10, %v2483_v56, 1065369472  ;;  %v5122_v1 = vld [vmem:[#allocation77_spill] sm:$0xff]  ;;  %v5126_v0 = vld [vmem:[#allocation71_spill] sm:$0xff]  ;;  %v5132_v45 = vld [vmem:[#allocation78_spill] sm:$0xff] }
 0x1a6   : > { %v2459_v42 = vsel %vm1568_vm7, %v2443_v14, %v4306_v23  ;;  %v2457_v2 = vsel %vm1568_vm7, %v2441_v29, %v4298_v21  ;;  %v5133_v37 = vld [vmem:[#allocation65_spill] sm:$0xff] }
 0x1a7   : > { %v1048_v26 = vpop.permute.xlu1 %1047  ;;  %v2475_v19 = vsel %vm1585_vm8, %v2459_v42, %v4338_v12  ;;  %v2473_v60 = vsel %vm1585_vm8, %v2457_v2, %v4323_v3  ;;  %v5119_v12 = vld [vmem:[#allocation52_spill] sm:$0xff]  ;;  %v2439_v3 = vsel %vm1551_vm6, %v2423_v38, %v5121_v62  ;;  %v5137_v42 = vld [vmem:[#allocation74_spill] sm:$0xff] }
 0x1a8   : > { %v1584_v18 = vsel %vm1568_vm7, %v4652_v31, %v1048_v26  ;;  %v1046_v33 = vpop.permute.xlu0 %1045  ;;  %v2491_v23 = vsel %vm1602_vm9, %v2475_v19, %v5118_v30  ;;  %v2415_v22 = vsel %vm1517_vm4, %v2399_v8, %v5119_v12  ;;  %v2421_v31 = vsel %vm1534_vm5, %v2405_v15, %v5120_v34  ;;  %v5136_v15 = vld [vmem:[#allocation76_spill] sm:$0xff] }
 0x1a9   : > { %v1582_v21 = vsel %vm1568_vm7, %v4659_v39, %v1046_v33  ;;  %2515 = vrot.lane.b32.xlu1 %v2498_v47, %s3651_s24  ;;  %v2489_v61 = vsel %vm1602_vm9, %v2473_v60, %v5122_v1  ;;  %2513 = vrot.lane.b32.xlu0 %v2497_v63, %s3651_s24  ;;  %v2413_v39 = vsel %vm1517_vm4, %v4711_v46, %v5123_v48  ;;  %v2502_v51 = vsel %vm1619_vm10, %v2491_v23, 1065369472  ;;  %v5138_v33 = vld [vmem:[#allocation80_spill] sm:$0xff] }
 0x1aa   : > { %v2431_v27 = vsel %vm1534_vm5, %v2415_v22, %v5124_v44  ;;  %v2437_v8 = vsel %vm1551_vm6, %v2421_v31, %v5125_v57  ;;  %v2455_v20 = vsel %vm1568_vm7, %v2439_v3, %v5126_v0  ;;  %v2501_v9 = vsel %vm1619_vm10, %v2489_v61, 1065369472 }
 0x1ab   : > { %v1076_v49 = vpop.permute.xlu1 %1075  ;;  %v2453_v41 = vsel %vm1568_vm7, %v2437_v8, %v5127_v7  ;;  %v2471_v43 = vsel %vm1585_vm8, %v2455_v20, %v5128_v50  ;;  %v2429_v56 = vsel %vm1534_vm5, %v2413_v39, %v5130_v24 }
 0x1ac   : > { %v1589_v46 = vsel %vm1585_vm8, %v4687_v10, %v1076_v49  ;;  %v1074_v54 = vpop.permute.xlu0 %1073  ;;  %v2469_v17 = vsel %vm1585_vm8, %v2453_v41, %v5129_v11  ;;  %v2487_v53 = vsel %vm1602_vm9, %v2471_v43, %v4414_v40  ;;  %v2447_v10 = vsel %vm1551_vm6, %v2431_v27, %v5131_v16  ;;  %v5134_v40 = vld [vmem:[#allocation72_spill] sm:$0xff] }
 0x1ad   : > { %v1587_v25 = vsel %vm1585_vm8, %v4697_v55, %v1074_v54  ;;  %2523 = vrot.lane.b32.xlu1 %v2502_v51, %s3651_s24  ;;  %v2485_v59 = vsel %vm1602_vm9, %v2469_v17, %v5132_v45  ;;  %2521 = vrot.lane.b32.xlu0 %v2501_v9, %s3651_s24  ;;  %v2445_v36 = vsel %vm1551_vm6, %v2429_v56, %v5133_v37  ;;  %v2500_v38 = vsel %vm1619_vm10, %v2487_v53, 1065369472 }
 0x1ae   : > { %v2463_v14 = vsel %vm1568_vm7, %v2447_v10, %v5134_v40  ;;  %v2461_v13 = vsel %vm1568_vm7, %v2445_v36, %v5135_v58  ;;  %v2499_v2 = vsel %vm1619_vm10, %v2485_v59, 1065369472 }
 0x1af   : > { %v1084_v55 = vpop.permute.xlu1 %1083  ;;  %v2479_v28 = vsel %vm1585_vm8, %v2463_v14, %v5136_v15  ;;  %v2477_v26 = vsel %vm1585_vm8, %v2461_v13, %v5137_v42 }
 0x1b0   : > { %v1597_v4 = vsel %vm1585_vm8, %v4723_v5, %v1084_v55  ;;  %v1082_v29 = vpop.permute.xlu0 %1081  ;;  %v2495_v19 = vsel %vm1602_vm9, %v2479_v28, %v4460_v52  ;;  %v2493_v60 = vsel %vm1602_vm9, %v2477_v26, %v5138_v33 }
 0x1b1   : > { %v1595_v47 = vsel %vm1585_vm8, %v4734_v35, %v1082_v29  ;;  %2519 = vrot.lane.b32.xlu1 %v2500_v38, %s3651_s24  ;;  %2517 = vrot.lane.b32.xlu0 %v2499_v2, %s3651_s24  ;;  %v2504_v63 = vsel %vm1619_vm10, %v2495_v19, 1065369472  ;;  %v2503_v12 = vsel %vm1619_vm10, %v2493_v60, 1065369472 }
 0x1b3   : > { %v1080_v5 = vpop.permute.xlu1 %1079 }
 0x1b4   : > { %v1593_v30 = vsel %vm1585_vm8, %v4759_v6, %v1080_v5  ;;  %v1078_v23 = vpop.permute.xlu0 %1077 }
 0x1b5   : > { %v1591_v52 = vsel %vm1585_vm8, %v4768_v32, %v1078_v23  ;;  %2527 = vrot.lane.b32.xlu1 %v2504_v63, %s3651_s24  ;;  %2525 = vrot.lane.b32.xlu0 %v2503_v12, %s3651_s24 }
 0x1b7   : > { %v1088_v35 = vpop.permute.xlu1 %1087 }
 0x1b8   : > { %v1601_v22 = vsel %vm1585_vm8, %v1584_v18, %v1088_v35  ;;  %v1086_v34 = vpop.permute.xlu0 %1085 }
 0x1b9   : > { %v1599_v31 = vsel %vm1585_vm8, %v1582_v21, %v1086_v34 }
 0x1bb   : > { %v1116_v62 = vpop.permute.xlu1 %1115 }
 0x1bc   : > { %v1606_v3 = vsel %vm1602_vm9, %v1589_v46, %v1116_v62  ;;  %v1114_v6 = vpop.permute.xlu0 %1113 }
 0x1bd   : > { %v1604_v1 = vsel %vm1602_vm9, %v1587_v25, %v1114_v6 }
 0x1bf   : > { %v1124_v61 = vpop.permute.xlu1 %1123 }
 0x1c0   : > { %v1614_v48 = vsel %vm1602_vm9, %v1597_v4, %v1124_v61  ;;  %v1122_v32 = vpop.permute.xlu0 %1121 }
 0x1c1   : > { %v1612_v39 = vsel %vm1602_vm9, %v1595_v47, %v1122_v32 }
 0x1c3   : > { %v1120_v44 = vpop.permute.xlu1 %1119 }
 0x1c4   : > { %v1610_v27 = vsel %vm1602_vm9, %v1593_v30, %v1120_v44  ;;  %v1118_v57 = vpop.permute.xlu0 %1117 }
 0x1c5   : > { %v1608_v18 = vsel %vm1602_vm9, %v1591_v52, %v1118_v57 }
 0x1c7   : > { %v1128_v8 = vpop.permute.xlu1 %1127 }
 0x1c8   : > { %v1618_v21 = vsel %vm1602_vm9, %v1601_v22, %v1128_v8  ;;  %v1126_v0 = vpop.permute.xlu0 %1125 }
 0x1c9   : > { %v1616_v20 = vsel %vm1602_vm9, %v1599_v31, %v1126_v0 }
 0x1cb   : > { %v1212_v49 = vpop.permute.xlu1 %1211 }
 0x1cc   : > { %v1623_v7 = vsel %vm1619_vm10, %v1606_v3, %v1212_v49  ;;  %v1210_v41 = vpop.permute.xlu0 %1209 }
 0x1cd   : > { %v1621_v50 = vsel %vm1619_vm10, %v1604_v1, %v1210_v41 }
 0x1cf   : > { %v1220_v43 = vpop.permute.xlu1 %1219 }
 0x1d0   : > { %v1631_v51 = vsel %vm1619_vm10, %v1614_v48, %v1220_v43  ;;  %v1218_v46 = vpop.permute.xlu0 %1217 }
 0x1d1   : > { %v1629_v54 = vsel %vm1619_vm10, %v1612_v39, %v1218_v46 }
 0x1d3   : > { %v1216_v11 = vpop.permute.xlu1 %1215 }
 0x1d4   : > { %v4888_v17 = vsel %vm1619_vm10, %v1610_v27, %v1216_v11  ;;  %v1214_v9 = vpop.permute.xlu0 %1213 }
 0x1d5   : > { %v4891_v53 = vsel %vm1619_vm10, %v1608_v18, %v1214_v9 }
 0x1d7   : > { %v1224_v25 = vpop.permute.xlu1 %1223 }
 0x1d8   : > { %v4894_v24 = vsel %vm1619_vm10, %v1618_v21, %v1224_v25  ;;  %v1222_v56 = vpop.permute.xlu0 %1221 }
 0x1d9   : > { %v4897_v16 = vsel %vm1619_vm10, %v1616_v20, %v1222_v56 }
 0x1db   : > { %v1252_v10 = vpop.permute.xlu1 %1251 }
 0x1dc   : > { %v1250_v45 = vpop.permute.xlu0 %1249  ;;  %v1640_v31 = vsel %vm1636_vm11, %v1623_v7, %v1252_v10 }
 0x1dd   : > { %v1638_v3 = vsel %vm1636_vm11, %v1621_v50, %v1250_v45 }
 0x1df   : > { %v1260_v59 = vpop.permute.xlu1 %1259 }
 0x1e0   : > { %v1258_v37 = vpop.permute.xlu0 %1257  ;;  %v1648_v44 = vsel %vm1636_vm11, %v1631_v51, %v1260_v59 }
 0x1e1   : > { %v1646_v8 = vsel %vm1636_vm11, %v1629_v54, %v1258_v37 }
 0x1e3   : > { %v1256_v36 = vpop.permute.xlu1 %1255 }
 0x1e4   : > { %v1254_v40 = vpop.permute.xlu0 %1253  ;;  %v1644_v51 = vsel %vm1636_vm11, %v4888_v17, %v1256_v36 }
 0x1e5   : > { %v1642_v9 = vsel %vm1636_vm11, %v4891_v53, %v1254_v40 }
 0x1e7   : > { %v4899_v14 = vpop.permute.xlu1 %1263 }
 0x1e8   : > { %v4901_v55 = vpop.permute.xlu0 %1261 }
 0x1eb   : > { %v1292_v58 = vpop.permute.xlu1 %1291 }
 0x1ec   : > { %v1290_v13 = vpop.permute.xlu0 %1289  ;;  %v1657_v6 = vsel %vm1653_vm12, %v1640_v31, %v1292_v58  ;;  %v1652_v58 = vsel %vm1636_vm11, %v4894_v24, %v4899_v14 }
 0x1ed   : > { %v1655_v1 = vsel %vm1653_vm12, %v1638_v3, %v1290_v13 }
 0x1ef   : > { %v1300_v15 = vpop.permute.xlu1 %1299 }
 0x1f0   : > { %v1298_v28 = vpop.permute.xlu0 %1297  ;;  %v1665_v21 = vsel %vm1653_vm12, %v1648_v44, %v1300_v15  ;;  %v1650_v15 = vsel %vm1636_vm11, %v4897_v16, %v4901_v55 }
 0x1f1   : > { %v1663_v20 = vsel %vm1653_vm12, %v1646_v8, %v1298_v28 }
 0x1f3   : > { %v1296_v38 = vpop.permute.xlu1 %1295 }
 0x1f4   : > { %v1294_v4 = vpop.permute.xlu0 %1293  ;;  %v1661_v25 = vsel %vm1653_vm12, %v1644_v51, %v1296_v38 }
 0x1f5   : > { %v1659_v10 = vsel %vm1653_vm12, %v1642_v9, %v1294_v4 }
 0x1f7   : > { %v4903_v29 = vpop.permute.xlu1 %1303 }
 0x1f8   : > { %v4905_v42 = vpop.permute.xlu0 %1301  ;;  %v1669_v28 = vsel %vm1653_vm12, %v1652_v58, %v4903_v29 }
 0x1f9   : > { %v1667_v24 = vsel %vm1653_vm12, %v1650_v15, %v4905_v42 }
 0x1fb   : > { %v1388_v26 = vpop.permute.xlu1 %1387 }
 0x1fc   : > { %v1386_v2 = vpop.permute.xlu0 %1385  ;;  %v1674_v61 = vsel %vm1670_vm13, %v1657_v6, %v1388_v26 }
 0x1fd   : > { %v1672_v48 = vsel %vm1670_vm13, %v1655_v1, %v1386_v2 }
 0x1ff   : > { %v1396_v19 = vpop.permute.xlu1 %1395 }
 0x200   : > { %v1394_v47 = vpop.permute.xlu0 %1393  ;;  %v1682_v49 = vsel %vm1670_vm13, %v1665_v21, %v1396_v19 }
 0x201   : > { %v1680_v41 = vsel %vm1670_vm13, %v1663_v20, %v1394_v47 }
 0x203   : > { %v1392_v33 = vpop.permute.xlu1 %1391 }
 0x204   : > { %v1390_v60 = vpop.permute.xlu0 %1389  ;;  %v1678_v45 = vsel %vm1670_vm13, %v1661_v25, %v1392_v33 }
 0x205   : > { %v1676_v17 = vsel %vm1670_vm13, %v1659_v10, %v1390_v60 }
 0x207   : > { %v1400_v5 = vpop.permute.xlu1 %1399 }
 0x208   : > { %v1398_v63 = vpop.permute.xlu0 %1397  ;;  %v1686_v14 = vsel %vm1670_vm13, %v1669_v28, %v1400_v5 }
 0x209   : > { %v1684_v26 = vsel %vm1670_vm13, %v1667_v24, %v1398_v63 }
 0x20b   : > { %v1428_v30 = vpop.permute.xlu1 %1427 }
 0x20c   : > { %v1426_v23 = vpop.permute.xlu0 %1425  ;;  %v1691_v32 = vsel %vm1687_vm14, %v1674_v61, %v1428_v30 }
 0x20d   : > { %v1689_v27 = vsel %vm1687_vm14, %v1672_v48, %v1426_v23 }
 0x20f   : > { %v1436_v12 = vpop.permute.xlu1 %1435 }
 0x210   : > { %v1434_v52 = vpop.permute.xlu0 %1433  ;;  %v1699_v50 = vsel %vm1687_vm14, %v1682_v49, %v1436_v12 }
 0x211   : > { %v1697_v46 = vsel %vm1687_vm14, %v1680_v41, %v1434_v52 }
 0x213   : > { %v1432_v35 = vpop.permute.xlu1 %1431 }
 0x214   : > { %v1430_v22 = vpop.permute.xlu0 %1429  ;;  %v1695_v37 = vsel %vm1687_vm14, %v1678_v45, %v1432_v35 }
 0x215   : > { %v1693_v53 = vsel %vm1687_vm14, %v1676_v17, %v1430_v22 }
 0x217   : > { %v1440_v34 = vpop.permute.xlu1 %1439 }
 0x218   : > { %v1438_v62 = vpop.permute.xlu0 %1437  ;;  %v1703_v2 = vsel %vm1687_vm14, %v1686_v14, %v1440_v34 }
 0x219   : > { %v1701_v16 = vsel %vm1687_vm14, %v1684_v26, %v1438_v62 }
 0x21b   : > { %v2516_v39 = vpop.permute.xlu1 %2515 }
 0x21c   : > { %v2514_v57 = vpop.permute.xlu0 %2513  ;;  %v2533_v18 = vsel %vm2529_vm15, %v1691_v32, %v2516_v39 }
 0x21d   : > { %v2531_v0 = vsel %vm2529_vm15, %v1689_v27, %v2514_v57 }
 0x21e   : > { %v3247_v7 = vcombine.low %v2531_v0, %v2533_v18 }
 0x21f   : > { %v2524_v43 = vpop.permute.xlu1 %2523 }
 0x220   : > { %3289 = vmatprep.mubr.bf16.mxu0 %v3247_v7  ;;  %v2522_v54 = vpop.permute.xlu0 %2521  ;;  %v2541_v11 = vsel %vm2529_vm15, %v1699_v50, %v2524_v43 }
 0x221   : > { %v2539_v56 = vsel %vm2529_vm15, %v1697_v46, %v2522_v54 }
 0x222   : > { %v3249_v59 = vcombine.low %v2539_v56, %v2541_v11 }
 0x223   : > { %v2520_v36 = vpop.permute.xlu1 %2519 }
 0x224   : > { %v2537_v40 = vsel %vm2529_vm15, %v1695_v37, %v2520_v36  ;;  %3293 = vmatprep.mubr.bf16.mxu1 %v3249_v59  ;;  %v2518_v13 = vpop.permute.xlu0 %2517 }
 0x225   : > { %v2535_v38 = vsel %vm2529_vm15, %v1693_v53, %v2518_v13 }
 0x226   : > { %v3248_v4 = vcombine.low %v2535_v38, %v2537_v40 }
 0x227   : > { %v2528_v19 = vpop.permute.xlu1 %2527 }
 0x228   : > { %v2545_v55 = vsel %vm2529_vm15, %v1703_v2, %v2528_v19  ;;  %3290 = vmatmul.mubr.bf16.vlgmr.msra.gmra.mxu0 %v3248_v4  ;;  %v2526_v29 = vpop.permute.xlu0 %2525 }
 0x229   : > { %v2543_v47 = vsel %vm2529_vm15, %v1701_v16, %v2526_v29 }
 0x22a   : > { %v3250_v33 = vcombine.low %v2543_v47, %v2545_v55 }
 0x22c   : > { %3294 = vmatmul.mubr.bf16.vlgmr.msra.gmra.mxu1 %v3250_v33 }
 0x2e8   : > { %v3291_v42 = vpop.f32.mrf.mxu0 }
 0x2e9   : > { %2701 = vst [vmem:[%s311_s14 + $0x10] sm:$0xff] %v3291_v42 }
 0x2ea   : > { %v2668_v60 = vpop.f32.mrf.mxu0 }
 0x2eb   : > { %2699 = vst [vmem:[%s311_s14] sm:$0xff] %v2668_v60 }
 0x2ec   : > { %v3292_v5 = vpop.f32.mrf.mxu0  ;;  %v3295_v63 = vpop.f32.mrf.mxu1 }
 0x2ed   : > { %2702 = vst [vmem:[%s311_s14 + $0x18] sm:$0xff] %v3292_v5  ;;  %2705 = vst [vmem:[%s311_s14 + $0x30] sm:$0xff] %v3295_v63 }
 0x2ee   : > { %v2671_v30 = vpop.f32.mrf.mxu0  ;;  %v2684_v23 = vpop.f32.mrf.mxu1 }
 0x2ef   : > { %2700 = vst [vmem:[%s311_s14 + $0x8] sm:$0xff] %v2671_v30  ;;  %2703 = vst [vmem:[%s311_s14 + $0x20] sm:$0xff] %v2684_v23 }
 0x2f0   : > { %v3296_v12 = vpop.f32.mrf.mxu1 }
 0x2f1   : > { %2706 = vst [vmem:[%s311_s14 + $0x38] sm:$0xff] %v3296_v12 }
 0x2f2   : > { %v2687_v52 = vpop.f32.mrf.mxu1 }
 0x2f3   : > { %2704 = vst [vmem:[%s311_s14 + $0x28] sm:$0xff] %v2687_v52 }
 0x2f4 PF: > { %s14_s19 = sadd.s32 1, %s3634_s19   ;;  %s5139_s15 = smov %s3626_s17 }
 0x2f5   : > { %p11_p9 = scmp.ge.s32.totalorder %s14_s19, 18   ;;  %s5140_s16 = smov %s3630_s18 }
 0x2f6   : > { %s5141_s17 = smov %s5144_s20  ;;  %s5142_s18 = smov %s5148_s21 }
 0x2f7   :  { %13 = sbr.rel (!%p11_p9) target bundleno = 3 (0x3), region = 87 }

</bundles_post_ra>
